<compile_context>
chip_gen: v7x
topology: tpu7x:2x2x1
jax: 0.10.0
libtpu: 0.0.40
codegen_flags: <defaults>
</compile_context>

<pallas_src>
import functools

import jax
import jax.numpy as jnp
import numpy as np
from jax import lax
from jax.experimental import pallas as pl
from jax.experimental.pallas import tpu as pltpu


def _round_up(x, m):
    return ((x + m - 1) // m) * m


# ----------------------------------------------------------------------------
# Parameter initialization (deterministic, kaiming-normal-like, biases = 0)
# ----------------------------------------------------------------------------
def _kaiming_normal(key, shape, fan_out):
    std = float(np.sqrt(2.0 / fan_out))
    return std * jax.random.normal(key, shape, dtype=jnp.float32)


def init_params(key, in_ch, out_ch, kernel_num, K, reduction=0.0625, min_channel=16):
    A = max(int(in_ch * reduction), min_channel)  # attention_channel
    keys = jax.random.split(key, 6)
    return dict(
        attn_ch=A,
        # Attention.fc : 1x1 conv in_ch -> A, no bias
        fc_w=_kaiming_normal(keys[0], (A, in_ch), fan_out=A),
        # Attention.channel_fc : A -> in_ch
        channel_fc_w=_kaiming_normal(keys[1], (in_ch, A), fan_out=in_ch),
        channel_fc_b=jnp.zeros((in_ch,), jnp.float32),
        # Attention.filter_fc : A -> out_ch
        filter_fc_w=_kaiming_normal(keys[2], (out_ch, A), fan_out=out_ch),
        filter_fc_b=jnp.zeros((out_ch,), jnp.float32),
        # Attention.spatial_fc : A -> K*K
        spatial_fc_w=_kaiming_normal(keys[3], (K * K, A), fan_out=K * K),
        spatial_fc_b=jnp.zeros((K * K,), jnp.float32),
        # Attention.kernel_fc : A -> kernel_num
        kernel_fc_w=_kaiming_normal(keys[4], (kernel_num, A), fan_out=kernel_num),
        kernel_fc_b=jnp.zeros((kernel_num,), jnp.float32),
        # ODConv2d.weight : (kernel_num, out_ch, in_ch, K, K)
        weight=_kaiming_normal(
            keys[5], (kernel_num, out_ch, in_ch, K, K), fan_out=out_ch * K * K),
    )


# ----------------------------------------------------------------------------
# Pallas kernel: in-kernel weight aggregation + dense im2col + one MXU matmul
# ----------------------------------------------------------------------------
def _odconv_kernel(x_ref, wb_ref, rs_ref, sc_ref, kr_ref, o_ref, w_ref, *,
                   W, K, Cin, KKC, KKC_pad, kernel_num, batch_tile, row_tile,
                   compute_dtype):
    # x_ref  : (Bt, Hp, Wp, Cin)          padded NHWC input, bf16 (resident per sample)
    # wb_ref : (N, KKC_pad, Cout_pad)     shared base weight, bf16, resident (const idx)
    # rs_ref : (Bt, KKC_pad, 1)           (spatial ⊗ channel) attention row scale, f32
    # sc_ref : (Bt, 1, Cout_pad)          filter attention * BN scale, f32
    # kr_ref : (B*N,)                     kernel attention (softmax), f32, flat SMEM
    # o_ref  : (Bt, row_tile*W, Cout_pad) lane-dense bf16 output block
    # w_ref  : (Bt, KKC_pad, Cout_pad)    per-sample aggregated weight scratch, bf16
    g = pl.program_id(0)          # batch-tile index (parallel)
    r = pl.program_id(1)          # row-chunk index (inner, arbitrary)

    # (1) Per-sample aggregated weight, once per sample: kernel-attention sum of
    #     the shared base weight (f32 accumulation over kernel_num terms), with
    #     the (spatial ⊗ channel) row scale folded in, stored bf16 into the
    #     persistent scratch and reused by every row chunk (r > 0).
    @pl.when(r == 0)
    def _():
        for bt in range(batch_tile):
            b = g * batch_tile + bt
            w = kr_ref[b * kernel_num] * wb_ref[0]
            for n in range(1, kernel_num):
                w = w + kr_ref[b * kernel_num + n] * wb_ref[n]
            w_ref[bt] = (w * rs_ref[bt]).astype(compute_dtype)

    row0 = pl.multiple_of(r * row_tile, row_tile)   # first output row of this chunk
    rows = row_tile * W
    zero_tail = (jnp.zeros((rows, KKC_pad - KKC), compute_dtype)
                 if KKC_pad > KKC else None)

    for bt in range(batch_tile):
        # (2) im2col for this row chunk: pure bf16 copies (attentions already
        #     folded into w_ref).  Columns are packed densely (stride Cin) and
        #     padded once to KKC_pad with zeros (facing zero weight rows).
        pieces = []
        for ky in range(K):
            for kx in range(K):
                piece = x_ref[bt, pl.ds(row0 + ky, row_tile), kx:kx + W, :]
                pieces.append(piece.reshape(rows, Cin))
        if zero_tail is not None:
            pieces.append(zero_tail)
        patch = jnp.concatenate(pieces, axis=-1)          # (rows, KKC_pad) bf16

        # (3) One fused MXU matmul over all K*K taps (f32 accumulation).
        acc = jnp.dot(patch, w_ref[bt], preferred_element_type=jnp.float32)

        # (4) Filter attention folded with the eval-mode BatchNorm scale,
        #     then LeakyReLU(0.01); lane-dense bf16 store.
        y = acc * sc_ref[bt]
        o_ref[bt] = jnp.where(y >= 0, y, 0.01 * y).astype(o_ref.dtype)


# ----------------------------------------------------------------------------
# Full ODConvLayer forward
# ----------------------------------------------------------------------------
def odconv_layer_forward(x_nchw, params, *, K, out_ch, eps=1e-5, temperature=1.0,
                         batch_tile=None, row_tile=None,
                         compute_dtype=jnp.bfloat16, out_dtype=jnp.float32):
    B, Cin, H, W = x_nchw.shape
    pad = K // 2
    kernel_num = params["weight"].shape[0]

    if batch_tile is None:
        batch_tile = 2 if B % 2 == 0 else 1
    assert B % batch_tile == 0

    if row_tile is None:
        row_tile = max(1, min(H, 512 // max(W, 1)))
        while H % row_tile != 0:
            row_tile -= 1
    assert H % row_tile == 0
    assert (row_tile * W) % 8 == 0 or row_tile == H, \
        "row_tile*W should be a multiple of 8 (or row_tile == H)"

    KKC = K * K * Cin
    KKC_pad = _round_up(KKC, 128)        # contraction padded once (not per tap)
    Cout_pad = _round_up(out_ch, 128)    # lane-dense output stores
    # NOTE(v6e/v7x): Cout_pad=128 uses only half of the 256-wide MXU; prefer
    # out_ch (or padding) that is a multiple of 256 on those chips.
    Hp, Wp = H + 2 * pad, W + 2 * pad

    # ---------------- Attention branch (tiny matvecs): plain-JAX glue --------
    pooled = jnp.mean(x_nchw, axis=(2, 3))                                    # (B, Cin)
    a = pooled @ params["fc_w"].T                                             # (B, A)
    a = a / jnp.sqrt(1.0 + eps)                                               # attn BN (eval)
    a = jnp.maximum(a, 0.0)                                                   # ReLU
    ch_att = jax.nn.sigmoid(
        (a @ params["channel_fc_w"].T + params["channel_fc_b"]) / temperature)   # (B, Cin)
    flt_att = jax.nn.sigmoid(
        (a @ params["filter_fc_w"].T + params["filter_fc_b"]) / temperature)     # (B, Cout)
    sp_att = jax.nn.sigmoid(
        (a @ params["spatial_fc_w"].T + params["spatial_fc_b"]) / temperature)   # (B, K*K)
    kr_att = jax.nn.softmax(
        (a @ params["kernel_fc_w"].T + params["kernel_fc_b"]) / temperature, axis=1)  # (B, N)

    # -------- shared base weight: (N, KKC_pad, Cout_pad), bf16, DMAed once ---
    wb = jnp.transpose(params["weight"], (0, 3, 4, 2, 1))      # (N, K, K, Cin, Cout)
    wb = wb.reshape(kernel_num, KKC, out_ch)
    wb = jnp.pad(wb, ((0, 0), (0, KKC_pad - KKC), (0, Cout_pad - out_ch)))
    wb = wb.astype(compute_dtype)

    # ---- (spatial ⊗ channel) attention row scale, folded into the weight ----
    rs = (sp_att[:, :, None] * ch_att[:, None, :]).reshape(B, KKC)
    rs = jnp.pad(rs, ((0, 0), (0, KKC_pad - KKC)))
    rs = rs.reshape(B, KKC_pad, 1).astype(jnp.float32)

    # ---- filter attention folded with the outer BatchNorm (eval) scale ------
    bn_scale = 1.0 / np.sqrt(1.0 + eps)
    sc = jnp.pad(flt_att * bn_scale, ((0, 0), (0, Cout_pad - out_ch)))
    sc = sc.reshape(B, 1, Cout_pad).astype(jnp.float32)

    # kernel attention as a flat 1-D SMEM array (2-D SMEM pads to 8x128 words)
    kr_flat = kr_att.reshape(B * kernel_num).astype(jnp.float32)

    # ---------------- layout conversion + halo padding (once, in bf16) -------
    x_nhwc = jnp.transpose(x_nchw, (0, 2, 3, 1)).astype(compute_dtype)
    x_pad = jnp.pad(x_nhwc, ((0, 0), (pad, pad), (pad, pad), (0, 0)))

    # ---------------- explicit VMEM budget -----------------------------------
    def _nbytes(shape, dtype):
        return int(np.prod(shape)) * int(np.dtype(dtype).itemsize)

    vmem_est = (
        2 * _nbytes((batch_tile, Hp, Wp, Cin), compute_dtype)               # input (x2 buf)
        + 2 * _nbytes((kernel_num, KKC_pad, Cout_pad), compute_dtype)       # base weight
        + 2 * _nbytes((batch_tile, KKC_pad, 1), jnp.float32)                # row scale
        + 2 * _nbytes((batch_tile, 1, Cout_pad), jnp.float32)               # filter*BN scale
        + 2 * _nbytes((batch_tile, row_tile * W, Cout_pad), compute_dtype)  # output (x2 buf)
        + _nbytes((batch_tile, KKC_pad, Cout_pad), compute_dtype)           # w scratch
        + batch_tile * _nbytes((row_tile * W, KKC_pad), compute_dtype)      # in-reg patches
        + _nbytes((KKC_pad, Cout_pad), jnp.float32)                         # f32 agg temp
    )
    vmem_limit = int(vmem_est) + (8 << 20)   # headroom for compiler temporaries

    kernel = functools.partial(
        _odconv_kernel, W=W, K=K, Cin=Cin, KKC=KKC, KKC_pad=KKC_pad,
        kernel_num=kernel_num, batch_tile=batch_tile, row_tile=row_tile,
        compute_dtype=compute_dtype)

    out = pl.pallas_call(
        kernel,
        out_shape=jax.ShapeDtypeStruct((B, H * W, Cout_pad), compute_dtype),
        grid_spec=pltpu.PrefetchScalarGridSpec(
            num_scalar_prefetch=0,
            grid=(B // batch_tile, H // row_tile),
            in_specs=[
                # padded input: resident across the inner row axis
                pl.BlockSpec((batch_tile, Hp, Wp, Cin), lambda g, r: (g, 0, 0, 0)),
                # shared base weight: constant index_map -> DMAed once, resident
                pl.BlockSpec((kernel_num, KKC_pad, Cout_pad), lambda g, r: (0, 0, 0)),
                pl.BlockSpec((batch_tile, KKC_pad, 1), lambda g, r: (g, 0, 0)),
                pl.BlockSpec((batch_tile, 1, Cout_pad), lambda g, r: (g, 0, 0)),
                pl.BlockSpec(memory_space=pltpu.MemorySpace.SMEM),   # kr_flat
            ],
            out_specs=pl.BlockSpec((batch_tile, row_tile * W, Cout_pad),
                                   lambda g, r: (g, r, 0)),
            scratch_shapes=[
                pltpu.VMEM((batch_tile, KKC_pad, Cout_pad), compute_dtype)],
        ),
        # Batch axis parallel (v7x dual TensorCore); row axis carries the
        # aggregated-weight scratch -> "arbitrary".
        compiler_params=pltpu.CompilerParams(
            dimension_semantics=("parallel", "arbitrary"),
            vmem_limit_bytes=vmem_limit),
    )(x_pad, wb, rs, sc, kr_flat)

    out = out.reshape(B, H, W, Cout_pad)[..., :out_ch]
    return jnp.transpose(out, (0, 3, 1, 2)).astype(out_dtype)


# ----------------------------------------------------------------------------
# Pure-JAX f32 reference (independent of the kernel path, incl. attention glue)
# ----------------------------------------------------------------------------
def _reference_forward(x_nchw, params, *, K, eps=1e-5, temperature=1.0):
    B, Cin, H, W = x_nchw.shape
    pad = K // 2
    pooled = jnp.mean(x_nchw, axis=(2, 3))
    a = jnp.maximum((pooled @ params["fc_w"].T) / jnp.sqrt(1.0 + eps), 0.0)
    ch_att = jax.nn.sigmoid(
        (a @ params["channel_fc_w"].T + params["channel_fc_b"]) / temperature)
    flt_att = jax.nn.sigmoid(
        (a @ params["filter_fc_w"].T + params["filter_fc_b"]) / temperature)
    sp_att = jax.nn.sigmoid(
        (a @ params["spatial_fc_w"].T + params["spatial_fc_b"]) / temperature)
    kr_att = jax.nn.softmax(
        (a @ params["kernel_fc_w"].T + params["kernel_fc_b"]) / temperature, axis=1)
    sp_att = sp_att.reshape(B, K, K)

    agg = jnp.einsum("bn,bpq,noipq->boipq", kr_att, sp_att, params["weight"])
    x_mod = x_nchw * ch_att[:, :, None, None]

    def conv_one(xb, wb):  # xb: (Cin,H,W), wb: (Cout,Cin,K,K)
        return lax.conv_general_dilated(
            xb[None], wb, window_strides=(1, 1),
            padding=[(pad, pad), (pad, pad)],
            dimension_numbers=("NCHW", "OIHW", "NCHW"))[0]

    ref = jax.vmap(conv_one)(x_mod, agg)                  # (B, Cout, H, W)
    ref = ref * flt_att[:, :, None, None]
    ref = ref / jnp.sqrt(1.0 + eps)                       # outer BatchNorm2d (eval)
    return jnp.where(ref >= 0, ref, 0.01 * ref)           # LeakyReLU(0.01)


if __name__ == "__main__":
    B, Cin, H, W = 2, 4, 16, 16
    Cout, K, kernel_num = 8, 3, 4

    key = jax.random.PRNGKey(0)
    k_in, k_par = jax.random.split(key)
    x = jax.random.normal(k_in, (B, Cin, H, W), dtype=jnp.float32)
    params = init_params(k_par, Cin, Cout, kernel_num, K)

    out = odconv_layer_forward(x, params, K=K, out_ch=Cout,
                               batch_tile=2, row_tile=8)
    out = jax.block_until_ready(out)
    assert out.shape == (B, Cout, H, W)

    ref = _reference_forward(x, params, K=K)
    # tolerance accounts for bf16 MXU operands and bf16 output vs. f32 reference
    np.testing.assert_allclose(np.asarray(out), np.asarray(ref), rtol=4e-2, atol=4e-2)

    print("KERNEL_OK")
</pallas_src>

<mosaic_0001>
module attributes {stable_mosaic.version = 11 : i64} {
  func.func @_odconv_kernel(%arg0: i32, %arg1: i32, %arg2: memref<2x18x18x4xbf16, #tpu.memory_space<vmem>>, %arg3: memref<4x128x128xbf16, #tpu.memory_space<vmem>>, %arg4: memref<2x128x1xf32, #tpu.memory_space<vmem>>, %arg5: memref<2x1x128xf32, #tpu.memory_space<vmem>>, %arg6: memref<8xf32, #tpu.memory_space<smem>>, %arg7: memref<2x128x128xbf16, #tpu.memory_space<vmem>>, %arg8: memref<2x128x128xbf16, #tpu.memory_space<vmem>>) attributes {dimension_semantics = [#tpu.dimension_semantics<parallel>, #tpu.dimension_semantics<arbitrary>], iteration_bounds = array<i64: 1, 2>, scalar_prefetch = 0 : i64, scratch_operands = 1 : i64, tpu.core_type = #tpu.core_type<tc>, window_params = [{transform_indices = @transform_0, window_bounds = array<i64: 2, 18, 18, 4>}, {pipeline_mode = #tpu.pipeline_mode<synchronous>, transform_indices = @transform_1, window_bounds = array<i64: 4, 128, 128>}, {transform_indices = @transform_2, window_bounds = array<i64: 2, 128, 1>}, {transform_indices = @transform_3, window_bounds = array<i64: 2, 1, 128>}, {transform_indices = @transform_4, window_bounds = array<i64: 8>}, {transform_indices = @transform_5, window_bounds = array<i64: 2, 128, 128>}]} {
    %c0_i32 = arith.constant 0 : i32
    %0 = arith.cmpi eq, %arg1, %c0_i32 : i32
    %1 = arith.extui %0 : i1 to i32
    %c0_i32_0 = arith.constant 0 : i32
    %2 = arith.cmpi ne, %1, %c0_i32_0 : i32
    scf.if %2 {
      %c2_i32_92 = arith.constant 2 : i32
      %130 = arith.muli %arg0, %c2_i32_92 : i32
      %c0_i32_93 = arith.constant 0 : i32
      %131 = arith.addi %130, %c0_i32_93 : i32
      %c4_i32 = arith.constant 4 : i32
      %132 = arith.muli %131, %c4_i32 : i32
      %133 = arith.index_cast %132 : i32 to index
      %134 = memref.load %arg6[%133] : memref<8xf32, #tpu.memory_space<smem>>
      %c0_94 = arith.constant 0 : index
      %c0_95 = arith.constant 0 : index
      %c0_96 = arith.constant 0 : index
      %135 = vector.load %arg3[%c0_94, %c0_95, %c0_96] : memref<4x128x128xbf16, #tpu.memory_space<vmem>>, vector<1x128x128xbf16>
      %136 = vector.shape_cast %135 : vector<1x128x128xbf16> to vector<128x128xbf16>
      %137 = arith.extf %136 : vector<128x128xbf16> to vector<128x128xf32>
      %138 = vector.broadcast %134 : f32 to vector<128x128xf32>
      %139 = arith.mulf %138, %137 : vector<128x128xf32>
      %c4_i32_97 = arith.constant 4 : i32
      %140 = arith.muli %131, %c4_i32_97 : i32
      %c1_i32_98 = arith.constant 1 : i32
      %141 = arith.addi %140, %c1_i32_98 : i32
      %142 = arith.index_cast %141 : i32 to index
      %143 = memref.load %arg6[%142] : memref<8xf32, #tpu.memory_space<smem>>
      %c1_99 = arith.constant 1 : index
      %c0_100 = arith.constant 0 : index
      %c0_101 = arith.constant 0 : index
      %144 = vector.load %arg3[%c1_99, %c0_100, %c0_101] : memref<4x128x128xbf16, #tpu.memory_space<vmem>>, vector<1x128x128xbf16>
      %145 = vector.shape_cast %144 : vector<1x128x128xbf16> to vector<128x128xbf16>
      %146 = arith.extf %145 : vector<128x128xbf16> to vector<128x128xf32>
      %147 = vector.broadcast %143 : f32 to vector<128x128xf32>
      %148 = arith.mulf %147, %146 : vector<128x128xf32>
      %149 = arith.addf %139, %148 : vector<128x128xf32>
      %c4_i32_102 = arith.constant 4 : i32
      %150 = arith.muli %131, %c4_i32_102 : i32
      %c2_i32_103 = arith.constant 2 : i32
      %151 = arith.addi %150, %c2_i32_103 : i32
      %152 = arith.index_cast %151 : i32 to index
      %153 = memref.load %arg6[%152] : memref<8xf32, #tpu.memory_space<smem>>
      %c2_104 = arith.constant 2 : index
      %c0_105 = arith.constant 0 : index
      %c0_106 = arith.constant 0 : index
      %154 = vector.load %arg3[%c2_104, %c0_105, %c0_106] : memref<4x128x128xbf16, #tpu.memory_space<vmem>>, vector<1x128x128xbf16>
      %155 = vector.shape_cast %154 : vector<1x128x128xbf16> to vector<128x128xbf16>
      %156 = arith.extf %155 : vector<128x128xbf16> to vector<128x128xf32>
      %157 = vector.broadcast %153 : f32 to vector<128x128xf32>
      %158 = arith.mulf %157, %156 : vector<128x128xf32>
      %159 = arith.addf %149, %158 : vector<128x128xf32>
      %c4_i32_107 = arith.constant 4 : i32
      %160 = arith.muli %131, %c4_i32_107 : i32
      %c3_i32 = arith.constant 3 : i32
      %161 = arith.addi %160, %c3_i32 : i32
      %162 = arith.index_cast %161 : i32 to index
      %163 = memref.load %arg6[%162] : memref<8xf32, #tpu.memory_space<smem>>
      %c3 = arith.constant 3 : index
      %c0_108 = arith.constant 0 : index
      %c0_109 = arith.constant 0 : index
      %164 = vector.load %arg3[%c3, %c0_108, %c0_109] : memref<4x128x128xbf16, #tpu.memory_space<vmem>>, vector<1x128x128xbf16>
      %165 = vector.shape_cast %164 : vector<1x128x128xbf16> to vector<128x128xbf16>
      %166 = arith.extf %165 : vector<128x128xbf16> to vector<128x128xf32>
      %167 = vector.broadcast %163 : f32 to vector<128x128xf32>
      %168 = arith.mulf %167, %166 : vector<128x128xf32>
      %169 = arith.addf %159, %168 : vector<128x128xf32>
      %c0_110 = arith.constant 0 : index
      %c0_111 = arith.constant 0 : index
      %c0_112 = arith.constant 0 : index
      %170 = vector.load %arg4[%c0_110, %c0_111, %c0_112] : memref<2x128x1xf32, #tpu.memory_space<vmem>>, vector<1x128x1xf32>
      %171 = vector.shape_cast %170 : vector<1x128x1xf32> to vector<128x1xf32>
      %172 = vector.broadcast %171 : vector<128x1xf32> to vector<128x128xf32>
      %173 = arith.mulf %169, %172 : vector<128x128xf32>
      %174 = arith.truncf %173 : vector<128x128xf32> to vector<128x128xbf16>
      %c0_113 = arith.constant 0 : index
      %c0_114 = arith.constant 0 : index
      %c0_115 = arith.constant 0 : index
      %175 = vector.load %arg8[%c0_113, %c0_114, %c0_115] : memref<2x128x128xbf16, #tpu.memory_space<vmem>>, vector<1x128x128xbf16>
      %176 = vector.shape_cast %175 : vector<1x128x128xbf16> to vector<128x128xbf16>
      %177 = vector.shape_cast %174 : vector<128x128xbf16> to vector<1x128x128xbf16>
      tpu.vector_store %arg8[%c0_113, %c0_114, %c0_115], %177 {strides = array<i32>} : memref<2x128x128xbf16, #tpu.memory_space<vmem>>, vector<1x128x128xbf16>,
      %c2_i32_116 = arith.constant 2 : i32
      %178 = arith.muli %arg0, %c2_i32_116 : i32
      %c1_i32_117 = arith.constant 1 : i32
      %179 = arith.addi %178, %c1_i32_117 : i32
      %c4_i32_118 = arith.constant 4 : i32
      %180 = arith.muli %179, %c4_i32_118 : i32
      %181 = arith.index_cast %180 : i32 to index
      %182 = memref.load %arg6[%181] : memref<8xf32, #tpu.memory_space<smem>>
      %c0_119 = arith.constant 0 : index
      %c0_120 = arith.constant 0 : index
      %c0_121 = arith.constant 0 : index
      %183 = vector.load %arg3[%c0_119, %c0_120, %c0_121] : memref<4x128x128xbf16, #tpu.memory_space<vmem>>, vector<1x128x128xbf16>
      %184 = vector.shape_cast %183 : vector<1x128x128xbf16> to vector<128x128xbf16>
      %185 = arith.extf %184 : vector<128x128xbf16> to vector<128x128xf32>
      %186 = vector.broadcast %182 : f32 to vector<128x128xf32>
      %187 = arith.mulf %186, %185 : vector<128x128xf32>
      %c4_i32_122 = arith.constant 4 : i32
      %188 = arith.muli %179, %c4_i32_122 : i32
      %c1_i32_123 = arith.constant 1 : i32
      %189 = arith.addi %188, %c1_i32_123 : i32
      %190 = arith.index_cast %189 : i32 to index
      %191 = memref.load %arg6[%190] : memref<8xf32, #tpu.memory_space<smem>>
      %c1_124 = arith.constant 1 : index
      %c0_125 = arith.constant 0 : index
      %c0_126 = arith.constant 0 : index
      %192 = vector.load %arg3[%c1_124, %c0_125, %c0_126] : memref<4x128x128xbf16, #tpu.memory_space<vmem>>, vector<1x128x128xbf16>
      %193 = vector.shape_cast %192 : vector<1x128x128xbf16> to vector<128x128xbf16>
      %194 = arith.extf %193 : vector<128x128xbf16> to vector<128x128xf32>
      %195 = vector.broadcast %191 : f32 to vector<128x128xf32>
      %196 = arith.mulf %195, %194 : vector<128x128xf32>
      %197 = arith.addf %187, %196 : vector<128x128xf32>
      %c4_i32_127 = arith.constant 4 : i32
      %198 = arith.muli %179, %c4_i32_127 : i32
      %c2_i32_128 = arith.constant 2 : i32
      %199 = arith.addi %198, %c2_i32_128 : i32
      %200 = arith.index_cast %199 : i32 to index
      %201 = memref.load %arg6[%200] : memref<8xf32, #tpu.memory_space<smem>>
      %c2_129 = arith.constant 2 : index
      %c0_130 = arith.constant 0 : index
      %c0_131 = arith.constant 0 : index
      %202 = vector.load %arg3[%c2_129, %c0_130, %c0_131] : memref<4x128x128xbf16, #tpu.memory_space<vmem>>, vector<1x128x128xbf16>
      %203 = vector.shape_cast %202 : vector<1x128x128xbf16> to vector<128x128xbf16>
      %204 = arith.extf %203 : vector<128x128xbf16> to vector<128x128xf32>
      %205 = vector.broadcast %201 : f32 to vector<128x128xf32>
      %206 = arith.mulf %205, %204 : vector<128x128xf32>
      %207 = arith.addf %197, %206 : vector<128x128xf32>
      %c4_i32_132 = arith.constant 4 : i32
      %208 = arith.muli %179, %c4_i32_132 : i32
      %c3_i32_133 = arith.constant 3 : i32
      %209 = arith.addi %208, %c3_i32_133 : i32
      %210 = arith.index_cast %209 : i32 to index
      %211 = memref.load %arg6[%210] : memref<8xf32, #tpu.memory_space<smem>>
      %c3_134 = arith.constant 3 : index
      %c0_135 = arith.constant 0 : index
      %c0_136 = arith.constant 0 : index
      %212 = vector.load %arg3[%c3_134, %c0_135, %c0_136] : memref<4x128x128xbf16, #tpu.memory_space<vmem>>, vector<1x128x128xbf16>
      %213 = vector.shape_cast %212 : vector<1x128x128xbf16> to vector<128x128xbf16>
      %214 = arith.extf %213 : vector<128x128xbf16> to vector<128x128xf32>
      %215 = vector.broadcast %211 : f32 to vector<128x128xf32>
      %216 = arith.mulf %215, %214 : vector<128x128xf32>
      %217 = arith.addf %207, %216 : vector<128x128xf32>
      %c1_137 = arith.constant 1 : index
      %c0_138 = arith.constant 0 : index
      %c0_139 = arith.constant 0 : index
      %218 = vector.load %arg4[%c1_137, %c0_138, %c0_139] : memref<2x128x1xf32, #tpu.memory_space<vmem>>, vector<1x128x1xf32>
      %219 = vector.shape_cast %218 : vector<1x128x1xf32> to vector<128x1xf32>
      %220 = vector.broadcast %219 : vector<128x1xf32> to vector<128x128xf32>
      %221 = arith.mulf %217, %220 : vector<128x128xf32>
      %222 = arith.truncf %221 : vector<128x128xf32> to vector<128x128xbf16>
      %c1_140 = arith.constant 1 : index
      %c0_141 = arith.constant 0 : index
      %c0_142 = arith.constant 0 : index
      %223 = vector.load %arg8[%c1_140, %c0_141, %c0_142] : memref<2x128x128xbf16, #tpu.memory_space<vmem>>, vector<1x128x128xbf16>
      %224 = vector.shape_cast %223 : vector<1x128x128xbf16> to vector<128x128xbf16>
      %225 = vector.shape_cast %222 : vector<128x128xbf16> to vector<1x128x128xbf16>
      tpu.vector_store %arg8[%c1_140, %c0_141, %c0_142], %225 {strides = array<i32>} : memref<2x128x128xbf16, #tpu.memory_space<vmem>>, vector<1x128x128xbf16>,
    } else {
    }
    %c8_i32 = arith.constant 8 : i32
    %3 = arith.muli %arg1, %c8_i32 : i32
    %4 = tpu.assume_multiple %3, 8 : i32
    %cst = arith.constant 0.000000e+00 : bf16
    %5 = vector.broadcast %cst : bf16 to vector<128x92xbf16>
    %c0_i32_1 = arith.constant 0 : i32
    %6 = arith.addi %4, %c0_i32_1 : i32
    %c0 = arith.constant 0 : index
    %7 = arith.index_cast %6 : i32 to index
    %c0_2 = arith.constant 0 : index
    %c0_3 = arith.constant 0 : index
    %8 = vector.load %arg2[%c0, %7, %c0_2, %c0_3] : memref<2x18x18x4xbf16, #tpu.memory_space<vmem>>, vector<1x8x16x4xbf16>
    %9 = vector.shape_cast %8 : vector<1x8x16x4xbf16> to vector<8x16x4xbf16>
    %10 = vector.shape_cast %9 : vector<8x16x4xbf16> to vector<128x4xbf16>
    %c0_i32_4 = arith.constant 0 : i32
    %11 = arith.addi %4, %c0_i32_4 : i32
    %c0_5 = arith.constant 0 : index
    %12 = arith.index_cast %11 : i32 to index
    %c1 = arith.constant 1 : index
    %c0_6 = arith.constant 0 : index
    %13 = vector.load %arg2[%c0_5, %12, %c1, %c0_6] : memref<2x18x18x4xbf16, #tpu.memory_space<vmem>>, vector<1x8x16x4xbf16>
    %14 = vector.shape_cast %13 : vector<1x8x16x4xbf16> to vector<8x16x4xbf16>
    %15 = vector.shape_cast %14 : vector<8x16x4xbf16> to vector<128x4xbf16>
    %c0_i32_7 = arith.constant 0 : i32
    %16 = arith.addi %4, %c0_i32_7 : i32
    %c0_8 = arith.constant 0 : index
    %17 = arith.index_cast %16 : i32 to index
    %c2 = arith.constant 2 : index
    %c0_9 = arith.constant 0 : index
    %18 = vector.load %arg2[%c0_8, %17, %c2, %c0_9] : memref<2x18x18x4xbf16, #tpu.memory_space<vmem>>, vector<1x8x16x4xbf16>
    %19 = vector.shape_cast %18 : vector<1x8x16x4xbf16> to vector<8x16x4xbf16>
    %20 = vector.shape_cast %19 : vector<8x16x4xbf16> to vector<128x4xbf16>
    %c1_i32 = arith.constant 1 : i32
    %21 = arith.addi %4, %c1_i32 : i32
    %c0_10 = arith.constant 0 : index
    %22 = arith.index_cast %21 : i32 to index
    %c0_11 = arith.constant 0 : index
    %c0_12 = arith.constant 0 : index
    %23 = vector.load %arg2[%c0_10, %22, %c0_11, %c0_12] : memref<2x18x18x4xbf16, #tpu.memory_space<vmem>>, vector<1x8x16x4xbf16>
    %24 = vector.shape_cast %23 : vector<1x8x16x4xbf16> to vector<8x16x4xbf16>
    %25 = vector.shape_cast %24 : vector<8x16x4xbf16> to vector<128x4xbf16>
    %c1_i32_13 = arith.constant 1 : i32
    %26 = arith.addi %4, %c1_i32_13 : i32
    %c0_14 = arith.constant 0 : index
    %27 = arith.index_cast %26 : i32 to index
    %c1_15 = arith.constant 1 : index
    %c0_16 = arith.constant 0 : index
    %28 = vector.load %arg2[%c0_14, %27, %c1_15, %c0_16] : memref<2x18x18x4xbf16, #tpu.memory_space<vmem>>, vector<1x8x16x4xbf16>
    %29 = vector.shape_cast %28 : vector<1x8x16x4xbf16> to vector<8x16x4xbf16>
    %30 = vector.shape_cast %29 : vector<8x16x4xbf16> to vector<128x4xbf16>
    %c1_i32_17 = arith.constant 1 : i32
    %31 = arith.addi %4, %c1_i32_17 : i32
    %c0_18 = arith.constant 0 : index
    %32 = arith.index_cast %31 : i32 to index
    %c2_19 = arith.constant 2 : index
    %c0_20 = arith.constant 0 : index
    %33 = vector.load %arg2[%c0_18, %32, %c2_19, %c0_20] : memref<2x18x18x4xbf16, #tpu.memory_space<vmem>>, vector<1x8x16x4xbf16>
    %34 = vector.shape_cast %33 : vector<1x8x16x4xbf16> to vector<8x16x4xbf16>
    %35 = vector.shape_cast %34 : vector<8x16x4xbf16> to vector<128x4xbf16>
    %c2_i32 = arith.constant 2 : i32
    %36 = arith.addi %4, %c2_i32 : i32
    %c0_21 = arith.constant 0 : index
    %37 = arith.index_cast %36 : i32 to index
    %c0_22 = arith.constant 0 : index
    %c0_23 = arith.constant 0 : index
    %38 = vector.load %arg2[%c0_21, %37, %c0_22, %c0_23] : memref<2x18x18x4xbf16, #tpu.memory_space<vmem>>, vector<1x8x16x4xbf16>
    %39 = vector.shape_cast %38 : vector<1x8x16x4xbf16> to vector<8x16x4xbf16>
    %40 = vector.shape_cast %39 : vector<8x16x4xbf16> to vector<128x4xbf16>
    %c2_i32_24 = arith.constant 2 : i32
    %41 = arith.addi %4, %c2_i32_24 : i32
    %c0_25 = arith.constant 0 : index
    %42 = arith.index_cast %41 : i32 to index
    %c1_26 = arith.constant 1 : index
    %c0_27 = arith.constant 0 : index
    %43 = vector.load %arg2[%c0_25, %42, %c1_26, %c0_27] : memref<2x18x18x4xbf16, #tpu.memory_space<vmem>>, vector<1x8x16x4xbf16>
    %44 = vector.shape_cast %43 : vector<1x8x16x4xbf16> to vector<8x16x4xbf16>
    %45 = vector.shape_cast %44 : vector<8x16x4xbf16> to vector<128x4xbf16>
    %c2_i32_28 = arith.constant 2 : i32
    %46 = arith.addi %4, %c2_i32_28 : i32
    %c0_29 = arith.constant 0 : index
    %47 = arith.index_cast %46 : i32 to index
    %c2_30 = arith.constant 2 : index
    %c0_31 = arith.constant 0 : index
    %48 = vector.load %arg2[%c0_29, %47, %c2_30, %c0_31] : memref<2x18x18x4xbf16, #tpu.memory_space<vmem>>, vector<1x8x16x4xbf16>
    %49 = vector.shape_cast %48 : vector<1x8x16x4xbf16> to vector<8x16x4xbf16>
    %50 = vector.shape_cast %49 : vector<8x16x4xbf16> to vector<128x4xbf16>
    %51 = tpu.concatenate %10, %15, %20, %25, %30, %35, %40, %45, %50, %5 in 1 : vector<128x4xbf16>, vector<128x4xbf16>, vector<128x4xbf16>, vector<128x4xbf16>, vector<128x4xbf16>, vector<128x4xbf16>, vector<128x4xbf16>, vector<128x4xbf16>, vector<128x4xbf16>, vector<128x92xbf16> -> vector<128x128xbf16>
    %c0_32 = arith.constant 0 : index
    %c0_33 = arith.constant 0 : index
    %c0_34 = arith.constant 0 : index
    %52 = vector.load %arg8[%c0_32, %c0_33, %c0_34] : memref<2x128x128xbf16, #tpu.memory_space<vmem>>, vector<1x128x128xbf16>
    %53 = vector.shape_cast %52 : vector<1x128x128xbf16> to vector<128x128xbf16>
    %cst_35 = arith.constant dense<0.000000e+00> : vector<128x128xf32>
    %54 = tpu.matmul %51, %53, %cst_35 {dimension_numbers = #tpu.dot_dimension_numbers<[1], [0], [0], [1], [0, 0, 1, 1], [], []>} : vector<128x128xbf16>, vector<128x128xbf16>, vector<128x128xf32> -> vector<128x128xf32>
    %c0_36 = arith.constant 0 : index
    %c0_37 = arith.constant 0 : index
    %c0_38 = arith.constant 0 : index
    %55 = vector.load %arg5[%c0_36, %c0_37, %c0_38] : memref<2x1x128xf32, #tpu.memory_space<vmem>>, vector<1x1x128xf32>
    %56 = vector.shape_cast %55 : vector<1x1x128xf32> to vector<1x128xf32>
    %57 = vector.broadcast %56 : vector<1x128xf32> to vector<128x128xf32>
    %58 = arith.mulf %54, %57 : vector<128x128xf32>
    %cst_39 = arith.constant 0.000000e+00 : f32
    %59 = vector.broadcast %cst_39 : f32 to vector<128x128xf32>
    %60 = arith.cmpf oge, %58, %59 : vector<128x128xf32>
    %cst_40 = arith.constant 0.00999999977 : f32
    %61 = vector.broadcast %cst_40 : f32 to vector<128x128xf32>
    %62 = arith.mulf %61, %58 : vector<128x128xf32>
    %63 = arith.select %60, %58, %62 : vector<128x128xi1>, vector<128x128xf32>
    %64 = arith.truncf %63 : vector<128x128xf32> to vector<128x128xbf16>
    %c0_41 = arith.constant 0 : index
    %c0_42 = arith.constant 0 : index
    %c0_43 = arith.constant 0 : index
    %65 = vector.load %arg7[%c0_41, %c0_42, %c0_43] : memref<2x128x128xbf16, #tpu.memory_space<vmem>>, vector<1x128x128xbf16>
    %66 = vector.shape_cast %65 : vector<1x128x128xbf16> to vector<128x128xbf16>
    %67 = vector.shape_cast %64 : vector<128x128xbf16> to vector<1x128x128xbf16>
    tpu.vector_store %arg7[%c0_41, %c0_42, %c0_43], %67 {strides = array<i32>} : memref<2x128x128xbf16, #tpu.memory_space<vmem>>, vector<1x128x128xbf16>,
    %c0_i32_44 = arith.constant 0 : i32
    %68 = arith.addi %4, %c0_i32_44 : i32
    %c1_45 = arith.constant 1 : index
    %69 = arith.index_cast %68 : i32 to index
    %c0_46 = arith.constant 0 : index
    %c0_47 = arith.constant 0 : index
    %70 = vector.load %arg2[%c1_45, %69, %c0_46, %c0_47] : memref<2x18x18x4xbf16, #tpu.memory_space<vmem>>, vector<1x8x16x4xbf16>
    %71 = vector.shape_cast %70 : vector<1x8x16x4xbf16> to vector<8x16x4xbf16>
    %72 = vector.shape_cast %71 : vector<8x16x4xbf16> to vector<128x4xbf16>
    %c0_i32_48 = arith.constant 0 : i32
    %73 = arith.addi %4, %c0_i32_48 : i32
    %c1_49 = arith.constant 1 : index
    %74 = arith.index_cast %73 : i32 to index
    %c1_50 = arith.constant 1 : index
    %c0_51 = arith.constant 0 : index
    %75 = vector.load %arg2[%c1_49, %74, %c1_50, %c0_51] : memref<2x18x18x4xbf16, #tpu.memory_space<vmem>>, vector<1x8x16x4xbf16>
    %76 = vector.shape_cast %75 : vector<1x8x16x4xbf16> to vector<8x16x4xbf16>
    %77 = vector.shape_cast %76 : vector<8x16x4xbf16> to vector<128x4xbf16>
    %c0_i32_52 = arith.constant 0 : i32
    %78 = arith.addi %4, %c0_i32_52 : i32
    %c1_53 = arith.constant 1 : index
    %79 = arith.index_cast %78 : i32 to index
    %c2_54 = arith.constant 2 : index
    %c0_55 = arith.constant 0 : index
    %80 = vector.load %arg2[%c1_53, %79, %c2_54, %c0_55] : memref<2x18x18x4xbf16, #tpu.memory_space<vmem>>, vector<1x8x16x4xbf16>
    %81 = vector.shape_cast %80 : vector<1x8x16x4xbf16> to vector<8x16x4xbf16>
    %82 = vector.shape_cast %81 : vector<8x16x4xbf16> to vector<128x4xbf16>
    %c1_i32_56 = arith.constant 1 : i32
    %83 = arith.addi %4, %c1_i32_56 : i32
    %c1_57 = arith.constant 1 : index
    %84 = arith.index_cast %83 : i32 to index
    %c0_58 = arith.constant 0 : index
    %c0_59 = arith.constant 0 : index
    %85 = vector.load %arg2[%c1_57, %84, %c0_58, %c0_59] : memref<2x18x18x4xbf16, #tpu.memory_space<vmem>>, vector<1x8x16x4xbf16>
    %86 = vector.shape_cast %85 : vector<1x8x16x4xbf16> to vector<8x16x4xbf16>
    %87 = vector.shape_cast %86 : vector<8x16x4xbf16> to vector<128x4xbf16>
    %c1_i32_60 = arith.constant 1 : i32
    %88 = arith.addi %4, %c1_i32_60 : i32
    %c1_61 = arith.constant 1 : index
    %89 = arith.index_cast %88 : i32 to index
    %c1_62 = arith.constant 1 : index
    %c0_63 = arith.constant 0 : index
    %90 = vector.load %arg2[%c1_61, %89, %c1_62, %c0_63] : memref<2x18x18x4xbf16, #tpu.memory_space<vmem>>, vector<1x8x16x4xbf16>
    %91 = vector.shape_cast %90 : vector<1x8x16x4xbf16> to vector<8x16x4xbf16>
    %92 = vector.shape_cast %91 : vector<8x16x4xbf16> to vector<128x4xbf16>
    %c1_i32_64 = arith.constant 1 : i32
    %93 = arith.addi %4, %c1_i32_64 : i32
    %c1_65 = arith.constant 1 : index
    %94 = arith.index_cast %93 : i32 to index
    %c2_66 = arith.constant 2 : index
    %c0_67 = arith.constant 0 : index
    %95 = vector.load %arg2[%c1_65, %94, %c2_66, %c0_67] : memref<2x18x18x4xbf16, #tpu.memory_space<vmem>>, vector<1x8x16x4xbf16>
    %96 = vector.shape_cast %95 : vector<1x8x16x4xbf16> to vector<8x16x4xbf16>
    %97 = vector.shape_cast %96 : vector<8x16x4xbf16> to vector<128x4xbf16>
    %c2_i32_68 = arith.constant 2 : i32
    %98 = arith.addi %4, %c2_i32_68 : i32
    %c1_69 = arith.constant 1 : index
    %99 = arith.index_cast %98 : i32 to index
    %c0_70 = arith.constant 0 : index
    %c0_71 = arith.constant 0 : index
    %100 = vector.load %arg2[%c1_69, %99, %c0_70, %c0_71] : memref<2x18x18x4xbf16, #tpu.memory_space<vmem>>, vector<1x8x16x4xbf16>
    %101 = vector.shape_cast %100 : vector<1x8x16x4xbf16> to vector<8x16x4xbf16>
    %102 = vector.shape_cast %101 : vector<8x16x4xbf16> to vector<128x4xbf16>
    %c2_i32_72 = arith.constant 2 : i32
    %103 = arith.addi %4, %c2_i32_72 : i32
    %c1_73 = arith.constant 1 : index
    %104 = arith.index_cast %103 : i32 to index
    %c1_74 = arith.constant 1 : index
    %c0_75 = arith.constant 0 : index
    %105 = vector.load %arg2[%c1_73, %104, %c1_74, %c0_75] : memref<2x18x18x4xbf16, #tpu.memory_space<vmem>>, vector<1x8x16x4xbf16>
    %106 = vector.shape_cast %105 : vector<1x8x16x4xbf16> to vector<8x16x4xbf16>
    %107 = vector.shape_cast %106 : vector<8x16x4xbf16> to vector<128x4xbf16>
    %c2_i32_76 = arith.constant 2 : i32
    %108 = arith.addi %4, %c2_i32_76 : i32
    %c1_77 = arith.constant 1 : index
    %109 = arith.index_cast %108 : i32 to index
    %c2_78 = arith.constant 2 : index
    %c0_79 = arith.constant 0 : index
    %110 = vector.load %arg2[%c1_77, %109, %c2_78, %c0_79] : memref<2x18x18x4xbf16, #tpu.memory_space<vmem>>, vector<1x8x16x4xbf16>
    %111 = vector.shape_cast %110 : vector<1x8x16x4xbf16> to vector<8x16x4xbf16>
    %112 = vector.shape_cast %111 : vector<8x16x4xbf16> to vector<128x4xbf16>
    %113 = tpu.concatenate %72, %77, %82, %87, %92, %97, %102, %107, %112, %5 in 1 : vector<128x4xbf16>, vector<128x4xbf16>, vector<128x4xbf16>, vector<128x4xbf16>, vector<128x4xbf16>, vector<128x4xbf16>, vector<128x4xbf16>, vector<128x4xbf16>, vector<128x4xbf16>, vector<128x92xbf16> -> vector<128x128xbf16>
    %c1_80 = arith.constant 1 : index
    %c0_81 = arith.constant 0 : index
    %c0_82 = arith.constant 0 : index
    %114 = vector.load %arg8[%c1_80, %c0_81, %c0_82] : memref<2x128x128xbf16, #tpu.memory_space<vmem>>, vector<1x128x128xbf16>
    %115 = vector.shape_cast %114 : vector<1x128x128xbf16> to vector<128x128xbf16>
    %cst_83 = arith.constant dense<0.000000e+00> : vector<128x128xf32>
    %116 = tpu.matmul %113, %115, %cst_83 {dimension_numbers = #tpu.dot_dimension_numbers<[1], [0], [0], [1], [0, 0, 1, 1], [], []>} : vector<128x128xbf16>, vector<128x128xbf16>, vector<128x128xf32> -> vector<128x128xf32>
    %c1_84 = arith.constant 1 : index
    %c0_85 = arith.constant 0 : index
    %c0_86 = arith.constant 0 : index
    %117 = vector.load %arg5[%c1_84, %c0_85, %c0_86] : memref<2x1x128xf32, #tpu.memory_space<vmem>>, vector<1x1x128xf32>
    %118 = vector.shape_cast %117 : vector<1x1x128xf32> to vector<1x128xf32>
    %119 = vector.broadcast %118 : vector<1x128xf32> to vector<128x128xf32>
    %120 = arith.mulf %116, %119 : vector<128x128xf32>
    %cst_87 = arith.constant 0.000000e+00 : f32
    %121 = vector.broadcast %cst_87 : f32 to vector<128x128xf32>
    %122 = arith.cmpf oge, %120, %121 : vector<128x128xf32>
    %cst_88 = arith.constant 0.00999999977 : f32
    %123 = vector.broadcast %cst_88 : f32 to vector<128x128xf32>
    %124 = arith.mulf %123, %120 : vector<128x128xf32>
    %125 = arith.select %122, %120, %124 : vector<128x128xi1>, vector<128x128xf32>
    %126 = arith.truncf %125 : vector<128x128xf32> to vector<128x128xbf16>
    %c1_89 = arith.constant 1 : index
    %c0_90 = arith.constant 0 : index
    %c0_91 = arith.constant 0 : index
    %127 = vector.load %arg7[%c1_89, %c0_90, %c0_91] : memref<2x128x128xbf16, #tpu.memory_space<vmem>>, vector<1x128x128xbf16>
    %128 = vector.shape_cast %127 : vector<1x128x128xbf16> to vector<128x128xbf16>
    %129 = vector.shape_cast %126 : vector<128x128xbf16> to vector<1x128x128xbf16>
    tpu.vector_store %arg7[%c1_89, %c0_90, %c0_91], %129 {strides = array<i32>} : memref<2x128x128xbf16, #tpu.memory_space<vmem>>, vector<1x128x128xbf16>,
    return
  }
  func.func @transform_0(%arg0: i32, %arg1: i32) -> (i32, i32, i32, i32) {
    %c0_i32 = arith.constant 0 : i32
    %c0_i32_0 = arith.constant 0 : i32
    %c0_i32_1 = arith.constant 0 : i32
    %c0_i32_2 = arith.constant 0 : i32
    return %arg0, %c0_i32, %c0_i32_0, %c0_i32_1 : i32, i32, i32, i32
  }
  func.func @transform_1(%arg0: i32, %arg1: i32) -> (i32, i32, i32) {
    %c0_i32 = arith.constant 0 : i32
    %c0_i32_0 = arith.constant 0 : i32
    %c0_i32_1 = arith.constant 0 : i32
    %c0_i32_2 = arith.constant 0 : i32
    return %c0_i32, %c0_i32_0, %c0_i32_1 : i32, i32, i32
  }
  func.func @transform_2(%arg0: i32, %arg1: i32) -> (i32, i32, i32) {
    %c0_i32 = arith.constant 0 : i32
    %c0_i32_0 = arith.constant 0 : i32
    %c0_i32_1 = arith.constant 0 : i32
    return %arg0, %c0_i32, %c0_i32_0 : i32, i32, i32
  }
  func.func @transform_3(%arg0: i32, %arg1: i32) -> (i32, i32, i32) {
    %c0_i32 = arith.constant 0 : i32
    %c0_i32_0 = arith.constant 0 : i32
    %c0_i32_1 = arith.constant 0 : i32
    return %arg0, %c0_i32, %c0_i32_0 : i32, i32, i32
  }
  func.func @transform_4(%arg0: i32, %arg1: i32) -> i32 {
    %c0_i32 = arith.constant 0 : i32
    %c0_i32_0 = arith.constant 0 : i32
    return %c0_i32 : i32
  }
  func.func @transform_5(%arg0: i32, %arg1: i32) -> (i32, i32, i32) {
    %c0_i32 = arith.constant 0 : i32
    %c0_i32_0 = arith.constant 0 : i32
    return %arg0, %arg1, %c0_i32 : i32, i32, i32
  }
}

</mosaic_0001>

<bundles_post_ra>
// kernel: tpu_custom_call.1
= control target key start
LH: loop header
LB: loop body
LE: loop exit
PB: predicated region body
PF: predicated region fallthrough
CT: control target
= control target key end

     0   :  { %10 = vsyncpa [#allocation5], 0  ;;  %s8713_s0 = inlined_call_operand.vmem [shape: bf16[2,18,18,4], index: 0, kind: input, shape index: {}]   ;;  %s8714_s1 = inlined_call_operand.vmem [shape: bf16[4,128,128], index: 1, kind: input, shape index: {}]   ;;  %s8715_s2 = inlined_call_operand.vmem [shape: f32[2,128,1], index: 2, kind: input, shape index: {}]   ;;  %s8716_s3 = inlined_call_operand.vmem [shape: f32[2,1,128], index: 3, kind: input, shape index: {}]   ;;  %s8717_s4 = inlined_call_operand.vmem [shape: f32[8], index: 4, kind: input, shape index: {}]   ;;  %s8718_s5 = inlined_call_operand.hbm [shape: bf16[2,256,128], index: 5, kind: output, shape index: {}]  }
   0x1   :  { %11 = vsyncpa [#allocation4], 0 }
   0x2   :  { %13 = vsyncpa [#allocation4 + $0x1], 0  ;;  %s6070_s18 = smov 0   ;;  %s6072_s19 = smov 0  }
   0x3   :  { %s6074_s20 = smov 0   ;;  %s6076_s21 = smov 0  }
   0x4   :  { %s6078_s22 = smov 0   ;;  %s6080_s23 = smov 0  }
   0x5 LB: > { %s4675_s24 = sadd.s32 4294967295, %s6021_s23   ;;  %s4676_s25 = sadd.s32 4294967294, %s6021_s23   ;;  %s6021_s23 = sphi %s6080_s23, %s19_s23   ;;  %s6017_s22 = sphi %s6078_s22, %s8871_s22   ;;  %s6013_s21 = sphi %s6076_s21, %s8870_s21   ;;  %s6009_s20 = sphi %s6074_s20, %s8869_s20   ;;  %s6005_s19 = sphi %s6072_s19, %s8868_s19   ;;  %s6001_s18 = sphi %s6070_s18, %s8867_s18  }
   0x6   : > { %s28_s26 = sadd.s32 1, %s6017_s22  ;;  %s160_s27 = sadd.s32 1, %s6009_s20 }
   0x7   : > { %p29_p0 = scmp.ge.s32.totalorder %s28_s26, 2  ;;  %p170_p1 = scmp.ne.s32.totalorder %s6009_s20, %s6005_s19 }
   0x8   : > { %p171_p2 = scmp.eq.s32.totalorder %s4675_s24, 1  ;;  %p176_p3 = scmp.ne.s32.totalorder %s6005_s19, %s6001_s18 }
   0x9   : > { %s8873_s26 = smov (%p29_p0, %s28_s26), 0  ;;  %p177_p5 = scmp.eq.s32.totalorder %s4676_s25, 1 }
   0xa   : > { %p6110_p4 = por %p171_p2, %p170_p1  ;;  %s156_s29 = ssub.s32 %s6017_s22, %s8873_s26 }
   0xb   : > { %p4677_p6 = scmp.ge.s32.totalorder %s6021_s23, 1  ;;  %p158_p7 = scmp.eq.s32.totalorder %s156_s29, 0 }
   0xc   : > { %p6117_p8 = por %p177_p5, %p176_p3  ;;  %p184_p9 = scmp.lt.s32.totalorder %s6021_s23, 3 }
   0xd   : > { %s6123_s6 = scalar_select %p158_p7, %s6009_s20, %s160_s27  }
   0xe   : > { %p6125_p10 = pnand %p4677_p6, %p184_p9  ;;  %p6129_p11 = scmp.eq.s32.totalorder %s4675_s24, 0 }
   0xf   : > { %s228_s11 = sshll.u32 %s8717_s4, 4  ;;  %s229_s11 = int_to_ptr.vmem [resolvable:$true] %s228_s11 }
  0x10   : > { %p5798_p12 = pneg %p6125_p10  ;;  %s5952_s12 = scalar_lea.vmem %s229_s11, 16 }
  0x11   : > { %p5953_p0 = scmp.ne.s32.totalorder %s229_s11, %s5952_s12  ;;  %p5960_p5 = scmp.lt.s32.totalorder %s229_s11, %s229_s11 }
  0x12   : > { %p5799_p13 = pnand %p6129_p11, %p5798_p12  ;;  %p5961_p6 = scmp.lt.s32.totalorder %s5952_s12, %s5952_s12 }
  0x14   : > { %p5954_p1 = pneg %p5799_p13  ;;  %p5962_p7 = por %p5961_p6, %p5960_p5 }
  0x16   : > { %p5955_p2 = pnand %p5954_p1, %p5953_p0 }
  0x18   : > { %p5956_p3 = pneg %p5955_p2 }
  0x1a   : > { %p5963_p9 = pnand %p5962_p7, %p5956_p3 }
  0x1c   : > { %5966 = shalt.err (!%p5963_p9)
}
  0x1d   : > { %s6023_s13 = smov [#allocation3]   ;;  %241 = sbr.rel (%p6125_p10) target bundleno = 924 (0x39c), region = 40 }
  0x1e   : > { %5801 = dma.vmem_to_smem (!%p5799_p13), %s229_s11, 16, %s6023_s13, [#allocation5]  }
  0x24   : > { %5992 = dma.done.wait (%p6129_p11), [#allocation5], 16  }
  0x25   : > { %5994 = vsyncadd (%p6129_p11), [#allocation5], 4294967280 }
  0x26   : > { %247 = sfence }
  0x27   : > { %s278_s14 = sand.u32 1, %s6005_s19   ;;  %p4685_p12 = scmp.ne.s32.totalorder %s6013_s21, 0 }
  0x28   : > { %s4684_s15 = sshll.u32 %s278_s14, 7 }
  0x29   : > { %s6149_s16 = scalar_lea.vmem [#allocation6], %s4684_s15  ;;  %306 = sbr.rel (%p4685_p12) target bundleno = 249 (0xf9), region = 48 }
  0x30   : > { %v564_v0 = vld [vmem:[%s8715_s2 + $0x10] sm:$0xff]  ;;  %v562_v1 = vld [vmem:[%s8715_s2] sm:$0xff]  ;;  %v6024_v2 = vmov 0   ;;  %v565_v3 = vld [vmem:[%s8715_s2 + $0x18] sm:$0xff]  ;;  %s308_s15 = sld [smem:[#allocation3]]  ;;  %s4686_s17 = sld [smem:[#allocation3 + $0x1]] }
  0x31   : > { %5875 = vset.pattern.permute.xlu1 %v6024_v2  ;;  %5874 = vset.pattern.permute.xlu0 %v6024_v2  ;;  %v563_v4 = vld [vmem:[%s8715_s2 + $0x8] sm:$0xff]  ;;  %v566_v6 = vld [vmem:[%s8715_s2 + $0x20] sm:$0xff]  ;;  %v569_v7 = vld [vmem:[%s8715_s2 + $0x38] sm:$0xff]  ;;  %s4703_s24 = sld [smem:[#allocation3 + $0x2]]  ;;  %s4720_s8 = sld [smem:[#allocation3 + $0x3]] }
  0x32   : > { %590 = vperm.xlu1 %5875, %v564_v0   ;;  %580 = vperm.xlu0 %5874, %v562_v1   ;;  %v567_v5 = vld [vmem:[%s8715_s2 + $0x28] sm:$0xff]  ;;  %v568_v8 = vld [vmem:[%s8715_s2 + $0x30] sm:$0xff]  ;;  %v570_v10 = vld [vmem:[%s8715_s2 + $0x40] sm:$0xff]  ;;  %s6626_s11 = sld [smem:[#allocation3 + $0x4]]  ;;  %s6628_s12 = sld [smem:[#allocation3 + $0x5]] }
  0x33   : > { %v571_v9 = vld [vmem:[%s8715_s2 + $0x48] sm:$0xff]  ;;  %v573_v11 = vld [vmem:[%s8715_s2 + $0x58] sm:$0xff]  ;;  %v572_v12 = vld [vmem:[%s8715_s2 + $0x50] sm:$0xff]  ;;  %s6656_s27 = sld [smem:[#allocation3 + $0x6]] }
  0x34   : > { %v575_v13 = vld [vmem:[%s8715_s2 + $0x68] sm:$0xff]  ;;  %v574_v14 = vld [vmem:[%s8715_s2 + $0x60] sm:$0xff]  ;;  %v577_v15 = vld [vmem:[%s8715_s2 + $0x78] sm:$0xff] }
  0x35   : > { %v576_v16 = vld [vmem:[%s8715_s2 + $0x70] sm:$0xff]  ;;  %v4790_v17 = vld [vmem:[%s8715_s2 + $0x88] sm:$0xff]  ;;  %v4789_v18 = vld [vmem:[%s8715_s2 + $0x80] sm:$0xff] }
  0x36   : > { %595 = vperm.xlu1 %5875, %v565_v3   ;;  %585 = vperm.xlu0 %5874, %v563_v4   ;;  %v4792_v19 = vld [vmem:[%s8715_s2 + $0x98] sm:$0xff]  ;;  %v4791_v20 = vld [vmem:[%s8715_s2 + $0x90] sm:$0xff]  ;;  %v4794_v21 = vld [vmem:[%s8715_s2 + $0xa8] sm:$0xff]  ;;  %v6275_v40 = vstv %s308_s15 }
  0x37   : > { %v4793_v22 = vld [vmem:[%s8715_s2 + $0xa0] sm:$0xff]  ;;  %v4796_v23 = vld [vmem:[%s8715_s2 + $0xb8] sm:$0xff]  ;;  %v4795_v24 = vld [vmem:[%s8715_s2 + $0xb0] sm:$0xff]  ;;  %v6277_v41 = vstv %s4686_s17  ;;  %s6687_s17 = sld [smem:[#allocation3 + $0x7]] }
  0x38   : > { %v4798_v25 = vld [vmem:[%s8715_s2 + $0xc8] sm:$0xff]  ;;  %v4797_v26 = vld [vmem:[%s8715_s2 + $0xc0] sm:$0xff]  ;;  %v4800_v27 = vld [vmem:[%s8715_s2 + $0xd8] sm:$0xff]  ;;  %v6281_v44 = vstv %s4703_s24 }
  0x39   : > { %v4799_v28 = vld [vmem:[%s8715_s2 + $0xd0] sm:$0xff]  ;;  %v4802_v29 = vld [vmem:[%s8715_s2 + $0xe8] sm:$0xff]  ;;  %v4801_v30 = vld [vmem:[%s8715_s2 + $0xe0] sm:$0xff]  ;;  %v6304_v54 = vstv %s4720_s8 }
  0x3a   : > { %605 = vperm.xlu1 %5875, %v567_v5   ;;  %600 = vperm.xlu0 %5874, %v566_v6   ;;  %v4804_v31 = vld [vmem:[%s8715_s2 + $0xf8] sm:$0xff]  ;;  %v4803_v32 = vld [vmem:[%s8715_s2 + $0xf0] sm:$0xff]  ;;  %v6251_v33 = vld [vmem:[%s8714_s1 + $0x8] sm:$0xff]  }
  0x3b   : > { %v6256_v34 = vld [vmem:[%s8714_s1 + $0x48] sm:$0xff]   ;;  %v6266_v36 = vld [vmem:[%s8714_s1] sm:$0xff]   ;;  %v8742_v37 = vunpack.c.l.bf16 %v6251_v33  ;;  %v8751_v48 = vunpack.c.h.bf16 %v6251_v33  ;;  %v6332_v0 = vld [vmem:[%s8714_s1 + $0x10] sm:$0xff]  }
  0x3c   : > { %v6261_v35 = vld [vmem:[%s8714_s1 + $0x88] sm:$0xff]   ;;  %v8738_v38 = vunpack.c.l.bf16 %v6256_v34  ;;  %v6273_v39 = vld [vmem:[%s8714_s1 + $0x40] sm:$0xff]   ;;  %v8754_v43 = vunpack.c.l.bf16 %v6266_v36  ;;  %v8749_v49 = vunpack.c.h.bf16 %v6256_v34  ;;  %v8757_v52 = vunpack.c.h.bf16 %v6266_v36  ;;  %v6337_v1 = vld [vmem:[%s8714_s1 + $0x50] sm:$0xff]  }
  0x3d   : > { %v8726_v42 = vunpack.c.l.bf16 %v6261_v35  ;;  %v6286_v45 = vld [vmem:[%s8714_s1 + $0xc8] sm:$0xff]   ;;  %v8752_v46 = vunpack.c.l.bf16 %v6273_v39  ;;  %v6292_v47 = vld [vmem:[%s8714_s1 + $0x80] sm:$0xff]   ;;  %v344_v50 = vmul.f32 %v8742_v37, %v6275_v40  ;;  %v8755_v53 = vunpack.c.h.bf16 %v6273_v39  ;;  %v6542_v37 = vld [vmem:[%s8714_s1 + $0x70] sm:$0xff]  }
  0x3e   : > { %615 = vperm.xlu1 %5875, %v569_v7   ;;  %610 = vperm.xlu0 %5874, %v568_v8   ;;  %v396_v51 = vmul.f32 %v8738_v38, %v6277_v41  ;;  %v8721_v56 = vunpack.c.l.bf16 %v6286_v45  ;;  %v342_v57 = vmul.f32 %v8754_v43, %v6275_v40  ;;  %v8747_v58 = vunpack.c.l.bf16 %v6292_v47  ;;  %v6317_v59 = vld [vmem:[%s8714_s1 + $0xc0] sm:$0xff]  }
  0x3f   : > { %v464_v55 = vmul.f32 %v8726_v42, %v6281_v44  ;;  %v394_v60 = vmul.f32 %v8752_v46, %v6277_v41  ;;  %v345_v61 = vmul.f32 %v8751_v48, %v6275_v40  ;;  %v397_v62 = vmul.f32 %v8749_v49, %v6277_v41  ;;  %v6518_v38 = vld [vmem:[%s8714_s1 + $0xe0] sm:$0xff]  }
  0x40   : > { %v8746_v63 = vunpack.c.h.bf16 %v6261_v35  ;;  %v412_v2 = vadd.f32 %v396_v51, %v344_v50  ;;  %v343_v3 = vmul.f32 %v8757_v52, %v6275_v40  ;;  %v395_v4 = vmul.f32 %v8755_v53, %v6277_v41  ;;  %8787 = vst [vmem:[#allocation13_spill] sm:$0xff] %v6518_v38 }
  0x41   : > { %v8748_v5 = vunpack.c.h.bf16 %v6292_v47  ;;  %v8735_v6 = vunpack.c.l.bf16 %v6317_v59  ;;  %v532_v7 = vmul.f32 %v8721_v56, %v6304_v54  ;;  %v462_v8 = vmul.f32 %v8747_v58, %v6281_v44 }
  0x42   : > { %625 = vperm.xlu1 %5875, %v571_v9   ;;  %620 = vperm.xlu0 %5874, %v570_v10   ;;  %v8732_v9 = vunpack.c.h.bf16 %v6332_v0  ;;  %v8731_v10 = vunpack.c.h.bf16 %v6337_v1 }
  0x46   : > { %635 = vperm.xlu1 %5875, %v573_v11   ;;  %630 = vperm.xlu0 %5874, %v572_v12   ;;  %v6358_v11 = vld [vmem:[%s8714_s1 + $0x90] sm:$0xff]   ;;  %v410_v12 = vadd.f32 %v394_v60, %v342_v57 }
  0x4a   : > { %645 = vperm.xlu1 %5875, %v575_v13   ;;  %640 = vperm.xlu0 %5874, %v574_v14   ;;  %v413_v13 = vadd.f32 %v397_v62, %v345_v61  ;;  %v465_v14 = vmul.f32 %v8746_v63, %v6281_v44 }
  0x4e   : > { %655 = vperm.xlu1 %5875, %v577_v15   ;;  %650 = vperm.xlu0 %5874, %v576_v16   ;;  %v8727_v15 = vunpack.c.h.bf16 %v6286_v45  ;;  %v6367_v16 = vld [vmem:[%s8714_s1 + $0x18] sm:$0xff]  }
  0x50   : > { %v533_v50 = vmul.f32 %v8727_v15, %v6304_v54  ;;  %v6481_v15 = vld [vmem:[%s8714_s1 + $0xa0] sm:$0xff]  }
  0x52   : > { %968 = vperm.xlu1 %5875, %v4790_v17   ;;  %963 = vperm.xlu0 %5874, %v4789_v18   ;;  %v6372_v17 = vld [vmem:[%s8714_s1 + $0x58] sm:$0xff]   ;;  %v480_v18 = vadd.f32 %v464_v55, %v412_v2 }
  0x53   : > { %v6404_v55 = vld [vmem:[%s8714_s1 + $0x98] sm:$0xff]  }
  0x54   : > { %v6406_v57 = vadd.f32 %v532_v7, %v480_v18  ;;  %v6424_v7 = vld [vmem:[%s8714_s1 + $0xd8] sm:$0xff]   ;;  %v6436_v18 = vld [vmem:[%s8714_s1 + $0x20] sm:$0xff]  }
  0x55   : > { %v8733_v56 = vunpack.c.h.bf16 %v6424_v7 }
  0x56   : > { %978 = vperm.xlu1 %5875, %v4792_v19   ;;  %973 = vperm.xlu0 %5874, %v4791_v20   ;;  %v411_v19 = vadd.f32 %v395_v4, %v343_v3  ;;  %v463_v20 = vmul.f32 %v8748_v5, %v6281_v44  ;;  %v8729_v4 = vunpack.c.l.bf16 %v6358_v11 }
  0x58   : > { %v479_v60 = vadd.f32 %v463_v20, %v411_v19  ;;  %v6441_v19 = vld [vmem:[%s8714_s1 + $0x60] sm:$0xff]  }
  0x5a   : > { %988 = vperm.xlu1 %5875, %v4794_v21   ;;  %983 = vperm.xlu0 %5874, %v4793_v22   ;;  %v8736_v21 = vunpack.c.h.bf16 %v6317_v59  ;;  %v6381_v22 = vld [vmem:[%s8714_s1 + $0xd0] sm:$0xff]  }
  0x5b   : > { %v8724_v51 = vunpack.c.h.bf16 %v6381_v22 }
  0x5c   : > { %v531_v61 = vmul.f32 %v8736_v21, %v6304_v54 }
  0x5e   : > { %998 = vperm.xlu1 %5875, %v4796_v23   ;;  %993 = vperm.xlu0 %5874, %v4795_v24   ;;  %v530_v23 = vmul.f32 %v8735_v6, %v6304_v54  ;;  %v8722_v24 = vunpack.c.h.bf16 %v6358_v11  ;;  %v8753_v6 = vunpack.c.h.bf16 %v6481_v15 }
  0x60   : > { %v467_v62 = vmul.f32 %v8722_v24, %v6281_v44  ;;  %v8734_v24 = vunpack.c.l.bf16 %v6367_v16  ;;  %v471_v49 = vmul.f32 %v8753_v6, %v6281_v44 }
  0x62   : > { %1008 = vperm.xlu1 %5875, %v4798_v25   ;;  %1003 = vperm.xlu0 %5874, %v4797_v26   ;;  %v8725_v25 = vunpack.c.l.bf16 %v6332_v0  ;;  %v8723_v26 = vunpack.c.l.bf16 %v6337_v1 }
  0x64   : > { %v346_v2 = vmul.f32 %v8725_v25, %v6275_v40  ;;  %v398_v3 = vmul.f32 %v8723_v26, %v6277_v41  ;;  %v8737_v26 = vunpack.c.l.bf16 %v6372_v17 }
  0x66   : > { %1018 = vperm.xlu1 %5875, %v4800_v27   ;;  %1013 = vperm.xlu0 %5874, %v4799_v28   ;;  %v347_v27 = vmul.f32 %v8732_v9, %v6275_v40  ;;  %v399_v28 = vmul.f32 %v8731_v10, %v6277_v41  ;;  %v6505_v10 = vld [vmem:[%s8714_s1 + $0xa8] sm:$0xff]  }
  0x6a   : > { %1028 = vperm.xlu1 %5875, %v4802_v29   ;;  %1023 = vperm.xlu0 %5874, %v4801_v30   ;;  %v8720_v29 = vunpack.c.h.bf16 %v6367_v16  ;;  %v8719_v30 = vunpack.c.h.bf16 %v6372_v17 }
  0x6e   : > { %1038 = vperm.xlu1 %5875, %v4804_v31   ;;  %1033 = vperm.xlu0 %5874, %v4803_v32   ;;  %v478_v31 = vadd.f32 %v462_v8, %v410_v12  ;;  %v481_v32 = vadd.f32 %v465_v14, %v413_v13  ;;  %v415_v8 = vadd.f32 %v399_v28, %v347_v27  ;;  %v8728_v14 = vunpack.c.h.bf16 %v6404_v55 }
  0x6f   : > { %v349_v12 = vmul.f32 %v8720_v29, %v6275_v40  ;;  %v401_v13 = vmul.f32 %v8719_v30, %v6277_v41  ;;  %v6450_v28 = vmul.f32 %v8724_v51, %v6304_v54  ;;  %v8730_v30 = vunpack.c.l.bf16 %v6381_v22 }
  0x70   : > { %v6443_v20 = vadd.f32 %v530_v23, %v478_v31  ;;  %v6445_v27 = vadd.f32 %v533_v50, %v481_v32  ;;  %v6453_v29 = vadd.f32 %v531_v61, %v479_v60  ;;  %v6461_v23 = vld [vmem:[%s8714_s1 + $0x28] sm:$0xff]   ;;  %v414_v32 = vadd.f32 %v398_v3, %v346_v2 }
  0x71   : > { %8785 = vst [vmem:[#allocation11_spill] sm:$0xff] %v6461_v23  ;;  %v6466_v31 = vld [vmem:[%s8714_s1 + $0x68] sm:$0xff]   ;;  %v466_v50 = vmul.f32 %v8729_v4, %v6281_v44  ;;  %v8740_v60 = vunpack.c.h.bf16 %v6436_v18  ;;  %v8739_v61 = vunpack.c.h.bf16 %v6441_v19  ;;  %v6473_v51 = vadd.f32 %v467_v62, %v415_v8 }
  0x72   : > { %8786 = vst [vmem:[#allocation12_spill] sm:$0xff] %v6466_v31  ;;  %v417_v25 = vadd.f32 %v401_v13, %v349_v12  ;;  %v469_v42 = vmul.f32 %v8728_v14, %v6281_v44  ;;  %v8741_v2 = vunpack.c.l.bf16 %v6436_v18  ;;  %v6487_v3 = vmul.f32 %v8730_v30, %v6304_v54 }
  0x73   : > { %v8743_v62 = vunpack.c.l.bf16 %v6441_v19  ;;  %v8744_v8 = vunpack.c.h.bf16 %v6461_v23  ;;  %v8745_v12 = vunpack.c.h.bf16 %v6466_v31  ;;  %v537_v13 = vmul.f32 %v8733_v56, %v6304_v54 }
  0x74   : > { %v348_v14 = vmul.f32 %v8734_v24, %v6275_v40  ;;  %v400_v4 = vmul.f32 %v8737_v26, %v6277_v41  ;;  %v8750_v30 = vunpack.c.l.bf16 %v6404_v55  ;;  %v482_v9 = vadd.f32 %v466_v50, %v414_v32 }
  0x75   : > { %v351_v56 = vmul.f32 %v8740_v60, %v6275_v40  ;;  %v403_v24 = vmul.f32 %v8739_v61, %v6277_v41  ;;  %v485_v21 = vadd.f32 %v469_v42, %v417_v25  ;;  %v8756_v26 = vunpack.c.l.bf16 %v6424_v7 }
  0x76   : > { %v350_v32 = vmul.f32 %v8741_v2, %v6275_v40  ;;  %v8758_v50 = vunpack.c.l.bf16 %v6481_v15  ;;  %v402_v61 = vmul.f32 %v8743_v62, %v6277_v41  ;;  %v353_v42 = vmul.f32 %v8744_v8, %v6275_v40  ;;  %v6537_v2 = vld [vmem:[%s8714_s1 + $0x30] sm:$0xff]  }
  0x77   : > { %v405_v25 = vmul.f32 %v8745_v12, %v6277_v41  ;;  %v8759_v60 = vunpack.c.h.bf16 %v6505_v10  ;;  %v416_v62 = vadd.f32 %v400_v4, %v348_v14  ;;  %v468_v8 = vmul.f32 %v8750_v30, %v6281_v44  ;;  %v6550_v12 = vld [vmem:[%s8714_s1 + $0xe8] sm:$0xff]  }
  0x78   : > { %v8762_v63 = vunpack.c.l.bf16 %v6461_v23  ;;  %v8761_v58 = vunpack.c.l.bf16 %v6466_v31  ;;  %v419_v5 = vadd.f32 %v403_v24, %v351_v56  ;;  %v8760_v4 = vunpack.c.h.bf16 %v6518_v38  ;;  %v6570_v24 = vld [vmem:[%s8714_s1 + $0xb0] sm:$0xff]  }
  0x79   : > { %v536_v30 = vmul.f32 %v8756_v26, %v6304_v54  ;;  %v470_v48 = vmul.f32 %v8758_v50, %v6281_v44  ;;  %v418_v6 = vadd.f32 %v402_v61, %v350_v32  ;;  %v421_v43 = vadd.f32 %v405_v25, %v353_v42 }
  0x7a   : > { %v473_v53 = vmul.f32 %v8759_v60, %v6281_v44  ;;  %v8769_v26 = vunpack.c.h.bf16 %v6550_v12  ;;  %v484_v52 = vadd.f32 %v468_v8, %v416_v62  ;;  %v352_v50 = vmul.f32 %v8762_v63, %v6275_v40  ;;  %v6593_v8 = vld [vmem:[%s8714_s1 + $0xf0] sm:$0xff]  }
  0x7b   : > { %v404_v56 = vmul.f32 %v8761_v58, %v6277_v41  ;;  %v487_v14 = vadd.f32 %v471_v49, %v419_v5  ;;  %v539_v61 = vmul.f32 %v8760_v4, %v6304_v54  ;;  %v8788_v32 = vunpack.c.l.bf16 %v6518_v38  ;;  %8789 = vst [vmem:[#allocation14_spill] sm:$0xff] %v6593_v8 }
  0x7c   : > { %v8790_v25 = vunpack.c.h.bf16 %v6537_v2  ;;  %v8791_v49 = vunpack.c.h.bf16 %v6542_v37  ;;  %v489_v63 = vadd.f32 %v473_v53, %v421_v43  ;;  %v541_v62 = vmul.f32 %v8769_v26, %v6304_v54 }
  0x7d   : > { %v538_v42 = vmul.f32 %v8788_v32, %v6304_v54  ;;  %v486_v32 = vadd.f32 %v470_v48, %v418_v6  ;;  %v8771_v46 = vunpack.c.l.bf16 %v6550_v12  ;;  %v420_v23 = vadd.f32 %v404_v56, %v352_v50 }
  0x7e   : > { %v355_v60 = vmul.f32 %v8790_v25, %v6275_v40  ;;  %v407_v5 = vmul.f32 %v8791_v49, %v6277_v41  ;;  %v551_v25 = vadd.f32 %v6450_v28, %v6473_v51  ;;  %v8792_v49 = vunpack.c.l.bf16 %v6505_v10  ;;  %v6624_v51 = vld [vmem:[%s8714_s1 + $0x38] sm:$0xff]  }
  0x7f   : > { %v8770_v58 = vunpack.c.h.bf16 %v6593_v8  ;;  %v550_v43 = vadd.f32 %v6487_v3, %v482_v9  ;;  %v6614_v48 = vadd.f32 %v537_v13, %v485_v21  ;;  %v6616_v53 = vadd.f32 %v536_v30, %v484_v52 }
  0x80   : > { %v472_v4 = vmul.f32 %v8792_v49, %v6281_v44  ;;  %v8793_v6 = vunpack.c.h.bf16 %v6570_v24  ;;  %v423_v28 = vadd.f32 %v407_v5, %v355_v60  ;;  %v8794_v9 = vunpack.c.l.bf16 %v6537_v2  ;;  %v6649_v5 = vld [vmem:[%s8714_s1 + $0x78] sm:$0xff]  }
  0x81   : > { %v8795_v52 = vunpack.c.l.bf16 %v6542_v37  ;;  %v8773_v3 = vunpack.c.l.bf16 %v6570_v24  ;;  %v6637_v13 = vadd.f32 %v539_v61, %v487_v14  ;;  %v6639_v50 = vadd.f32 %v538_v42, %v486_v32 }
  0x82   : > { %v475_v26 = vmul.f32 %v8793_v6, %v6281_v44  ;;  %v354_v21 = vmul.f32 %v8794_v9, %v6275_v40  ;;  %v6641_v56 = vadd.f32 %v541_v62, %v489_v63  ;;  %v540_v60 = vmul.f32 %v8771_v46, %v6304_v54 }
  0x83   : > { %v406_v30 = vmul.f32 %v8795_v52, %v6277_v41  ;;  %v488_v9 = vadd.f32 %v472_v4, %v420_v23  ;;  %v543_v14 = vmul.f32 %v8770_v58, %v6304_v54  ;;  %v8772_v61 = vunpack.c.l.bf16 %v6593_v8  ;;  %v6665_v23 = vld [vmem:[%s8714_s1 + $0xb8] sm:$0xff]  }
  0x84   : > { %v491_v4 = vadd.f32 %v475_v26, %v423_v28  ;;  %v474_v46 = vmul.f32 %v8773_v3, %v6281_v44  ;;  %v8778_v63 = vunpack.c.h.bf16 %v6649_v5  ;;  %v8775_v26 = vunpack.c.l.bf16 %v6649_v5 }
  0x85   : > { %v422_v58 = vadd.f32 %v406_v30, %v354_v21  ;;  %v6678_v28 = vadd.f32 %v540_v60, %v488_v9  ;;  %v542_v21 = vmul.f32 %v8772_v61, %v6304_v54  ;;  %v8796_v30 = vunpack.c.h.bf16 %v6624_v51 }
  0x86   : > { %v6693_v60 = vstv %s6628_s12  ;;  %v6695_v9 = vadd.f32 %v543_v14, %v491_v4  ;;  %v6745_v8 = vstv %s6687_s17 }
  0xb1   : > { %v591_v38 = vpop.permute.xlu1 %590  ;;  %v581_v31 = vpop.permute.xlu0 %580 }
  0xb2   : > { %v660_v42 = vmul.f32 %v591_v38, %v6406_v57  ;;  %v658_v62 = vmul.f32 %v581_v31, %v6443_v20  ;;  %v8776_v20 = vunpack.c.l.bf16 %v6624_v51 }
  0xb5   : > { %v596_v49 = vpop.permute.xlu1 %595  ;;  %v586_v6 = vpop.permute.xlu0 %585 }
  0xb6   : > { %v661_v32 = vmul.f32 %v596_v49, %v6445_v27  ;;  %v659_v52 = vmul.f32 %v586_v6, %v6453_v29  ;;  %v6674_v29 = vld [vmem:[%s8714_s1 + $0xf8] sm:$0xff]   ;;  %v357_v49 = vmul.f32 %v8796_v30, %v6275_v40  ;;  %v8774_v6 = vunpack.c.h.bf16 %v6665_v23 }
  0xb7   : > { %v409_v30 = vmul.f32 %v8778_v63, %v6277_v41  ;;  %v8777_v61 = vunpack.c.h.bf16 %v6674_v29  ;;  %v8803_v63 = vunpack.c.h.bf16 %v6292_v47 }
  0xb8   : > { %v675_v38 = vpack.c.bf16 %v661_v32, %v660_v42  ;;  %v674_v57 = vpack.c.bf16 %v659_v52, %v658_v62  ;;  %v6690_v32 = vstv %s6626_s11  ;;  %v490_v52 = vadd.f32 %v474_v46, %v422_v58 }
  0xb9   : > { %v606_v27 = vpop.permute.xlu1 %605  ;;  %v601_v31 = vpop.permute.xlu0 %600  ;;  %v477_v46 = vmul.f32 %v8774_v6, %v6281_v44  ;;  %v8797_v58 = vunpack.c.h.bf16 %v6266_v36 }
  0xba   : > { %683 = vst [vmem:[#allocation2 + $0x8] sm:$0xff] %v675_v38  ;;  %682 = vst [vmem:[#allocation2] sm:$0xff] %v674_v57  ;;  %v663_v42 = vmul.f32 %v606_v27, %v551_v25  ;;  %v662_v62 = vmul.f32 %v601_v31, %v550_v43  ;;  %v356_v25 = vmul.f32 %v8776_v20, %v6275_v40  ;;  %v5371_v38 = vunpack.c.l.bf16 %v6665_v23 }
  0xbb   : > { %v408_v43 = vmul.f32 %v8775_v26, %v6277_v41  ;;  %v728_v57 = vmul.f32 %v8797_v58, %v6690_v32  ;;  %v8798_v27 = vunpack.c.h.bf16 %v6273_v39  ;;  %v6718_v31 = vstv %s6656_s27 }
  0xbc   : > { %v676_v3 = vpack.c.bf16 %v663_v42, %v662_v62  ;;  %v8799_v62 = vunpack.c.l.bf16 %v6266_v36  ;;  %v8800_v26 = vunpack.c.l.bf16 %v6273_v39  ;;  %v425_v20 = vadd.f32 %v409_v30, %v357_v49 }
  0xbd   : > { %v616_v14 = vpop.permute.xlu1 %615  ;;  %v611_v4 = vpop.permute.xlu0 %610  ;;  %v779_v40 = vmul.f32 %v8798_v27, %v6693_v60  ;;  %v545_v27 = vmul.f32 %v8777_v61, %v6304_v54  ;;  %v476_v39 = vmul.f32 %v5371_v38, %v6281_v44  ;;  %v8804_v44 = vunpack.c.l.bf16 %v6292_v47 }
  0xbe   : > { %684 = vst [vmem:[#allocation2 + $0x10] sm:$0xff] %v676_v3  ;;  %v665_v41 = vmul.f32 %v616_v14, %v6614_v48  ;;  %v664_v42 = vmul.f32 %v611_v4, %v6616_v53  ;;  %v727_v6 = vmul.f32 %v8799_v62, %v6690_v32  ;;  %v778_v58 = vmul.f32 %v8800_v26, %v6693_v60 }
  0xbf   : > { %v8801_v3 = vunpack.c.h.bf16 %v6251_v33  ;;  %v8802_v53 = vunpack.c.h.bf16 %v6256_v34  ;;  %v424_v4 = vadd.f32 %v408_v43, %v356_v25  ;;  %v5403_v26 = vunpack.c.l.bf16 %v6674_v29 }
  0xc0   : > { %v677_v36 = vpack.c.bf16 %v665_v41, %v664_v42  ;;  %v558_v62 = vadd.f32 %v542_v21, %v490_v52  ;;  %v795_v61 = vadd.f32 %v779_v40, %v728_v57  ;;  %v794_v43 = vadd.f32 %v778_v58, %v727_v6 }
  0xc1   : > { %v730_v48 = vmul.f32 %v8801_v3, %v6690_v32  ;;  %v781_v14 = vmul.f32 %v8802_v53, %v6693_v60  ;;  %v626_v49 = vpop.permute.xlu1 %625  ;;  %v621_v30 = vpop.permute.xlu0 %620  ;;  %v846_v3 = vmul.f32 %v8803_v63, %v6718_v31  ;;  %v845_v42 = vmul.f32 %v8804_v44, %v6718_v31 }
  0xc2   : > { %685 = vst [vmem:[#allocation2 + $0x18] sm:$0xff] %v677_v36  ;;  %v667_v41 = vmul.f32 %v626_v49, %v6637_v13  ;;  %v666_v25 = vmul.f32 %v621_v30, %v6639_v50  ;;  %v8805_v21 = vunpack.c.h.bf16 %v6261_v35  ;;  %v8806_v63 = vunpack.c.l.bf16 %v6251_v33 }
  0xc3   : > { %v797_v53 = vadd.f32 %v781_v14, %v730_v48  ;;  %v8807_v40 = vunpack.c.l.bf16 %v6256_v34  ;;  %v493_v50 = vadd.f32 %v477_v46, %v425_v20  ;;  %v492_v6 = vadd.f32 %v476_v39, %v424_v4 }
  0xc4   : > { %v848_v52 = vmul.f32 %v8805_v21, %v6718_v31  ;;  %v729_v57 = vmul.f32 %v8806_v63, %v6690_v32  ;;  %v678_v36 = vpack.c.bf16 %v667_v41, %v666_v25  ;;  %v544_v47 = vmul.f32 %v5403_v26, %v6304_v54 }
  0xc5   : > { %v780_v13 = vmul.f32 %v8807_v40, %v6693_v60  ;;  %v636_v58 = vpop.permute.xlu1 %635  ;;  %v631_v48 = vpop.permute.xlu0 %630  ;;  %v8808_v14 = vunpack.c.h.bf16 %v6317_v59  ;;  %v8809_v33 = vunpack.c.l.bf16 %v6317_v59  ;;  %v8810_v34 = vunpack.c.h.bf16 %v6332_v0 }
  0xc6   : > { %v8811_v20 = vunpack.c.h.bf16 %v6337_v1  ;;  %686 = vst [vmem:[#allocation2 + $0x20] sm:$0xff] %v678_v36  ;;  %v669_v54 = vmul.f32 %v636_v58, %v6641_v56  ;;  %v668_v4 = vmul.f32 %v631_v48, %v6678_v28  ;;  %v862_v39 = vadd.f32 %v846_v3, %v795_v61 }
  0xc7   : > { %v913_v49 = vmul.f32 %v8808_v14, %v6745_v8  ;;  %v912_v30 = vmul.f32 %v8809_v33, %v6745_v8  ;;  %v732_v41 = vmul.f32 %v8810_v34, %v6690_v32  ;;  %v8812_v25 = vunpack.c.h.bf16 %v6286_v45 }
  0xc8   : > { %v783_v46 = vmul.f32 %v8811_v20, %v6693_v60  ;;  %v861_v59 = vadd.f32 %v845_v42, %v794_v43  ;;  %v864_v21 = vadd.f32 %v848_v52, %v797_v53  ;;  %v796_v63 = vadd.f32 %v780_v13, %v729_v57 }
  0xc9   : > { %v915_v44 = vmul.f32 %v8812_v25, %v6745_v8  ;;  %v8813_v40 = vunpack.c.l.bf16 %v6261_v35  ;;  %v679_v33 = vpack.c.bf16 %v669_v54, %v668_v4  ;;  %v8814_v36 = vunpack.c.l.bf16 %v6332_v0  ;;  %v646_v28 = vpop.permute.xlu1 %645  ;;  %v641_v3 = vpop.permute.xlu0 %640 }
  0xca   : > { %v8815_v56 = vunpack.c.l.bf16 %v6337_v1  ;;  %v561_v58 = vadd.f32 %v545_v27, %v493_v50  ;;  %v560_v48 = vadd.f32 %v544_v47, %v492_v6  ;;  %v799_v43 = vadd.f32 %v783_v46, %v732_v41 }
  0xcb   : > { %v847_v14 = vmul.f32 %v8813_v40, %v6718_v31  ;;  %v731_v34 = vmul.f32 %v8814_v36, %v6690_v32  ;;  %v8816_v42 = vunpack.c.h.bf16 %v6358_v11  ;;  %687 = vst [vmem:[#allocation2 + $0x28] sm:$0xff] %v679_v33  ;;  %v671_v35 = vmul.f32 %v646_v28, %v6695_v9 }
  0xcc   : > { %v782_v61 = vmul.f32 %v8815_v56, %v6693_v60  ;;  %v670_v52 = vmul.f32 %v641_v3, %v558_v62  ;;  %v929_v57 = vadd.f32 %v913_v49, %v862_v39  ;;  %v8817_v0 = vunpack.c.l.bf16 %v6286_v45 }
  0xcd   : > { %v850_v53 = vmul.f32 %v8816_v42, %v6718_v31  ;;  %v928_v1 = vadd.f32 %v912_v30, %v861_v59  ;;  %v931_v20 = vadd.f32 %v915_v44, %v864_v21  ;;  %v863_v54 = vadd.f32 %v847_v14, %v796_v63  ;;  %v656_v49 = vpop.permute.xlu1 %655  ;;  %v651_v45 = vpop.permute.xlu0 %650 }
  0xce   : > { %v914_v13 = vmul.f32 %v8817_v0, %v6745_v8  ;;  %v8818_v27 = vunpack.c.h.bf16 %v6381_v22  ;;  %v680_v6 = vpack.c.bf16 %v671_v35, %v670_v52  ;;  %v798_v47 = vadd.f32 %v782_v61, %v731_v34 }
  0xcf   : > { %v8819_v41 = vunpack.c.l.bf16 %v6358_v11  ;;  %v8820_v9 = vunpack.c.h.bf16 %v6367_v16  ;;  %v866_v4 = vadd.f32 %v850_v53, %v799_v43  ;;  %v8821_v30 = vunpack.c.h.bf16 %v6372_v17 }
  0xd0   : > { %v917_v50 = vmul.f32 %v8818_v27, %v6745_v8  ;;  %v8822_v25 = vunpack.c.l.bf16 %v6367_v16  ;;  %v8823_v59 = vunpack.c.l.bf16 %v6372_v17  ;;  %688 = vst [vmem:[#allocation2 + $0x30] sm:$0xff] %v680_v6  ;;  %v673_v21 = vmul.f32 %v656_v49, %v561_v58 }
  0xd1   : > { %v849_v46 = vmul.f32 %v8819_v41, %v6718_v31  ;;  %v734_v62 = vmul.f32 %v8820_v9, %v6690_v32  ;;  %v785_v39 = vmul.f32 %v8821_v30, %v6693_v60  ;;  %v672_v63 = vmul.f32 %v651_v45, %v560_v48  ;;  %v964_v52 = vpop.permute.xlu0 %963 }
  0xd2   : > { %v733_v44 = vmul.f32 %v8822_v25, %v6690_v32  ;;  %v784_v11 = vmul.f32 %v8823_v59, %v6693_v60  ;;  %v8824_v40 = vunpack.c.h.bf16 %v6436_v18  ;;  %v8825_v33 = vunpack.c.h.bf16 %v6441_v19 }
  0xd3   : > { %v930_v34 = vadd.f32 %v914_v13, %v863_v54  ;;  %v8826_v16 = vunpack.c.l.bf16 %v6381_v22  ;;  %v8827_v17 = vunpack.c.l.bf16 %v6436_v18  ;;  %v8828_v28 = vunpack.c.l.bf16 %v6441_v19  ;;  %v969_v22 = vpop.permute.xlu1 %968 }
  0xd4   : > { %v736_v14 = vmul.f32 %v8824_v40, %v6690_v32  ;;  %v787_v36 = vmul.f32 %v8825_v33, %v6693_v60  ;;  %v681_v58 = vpack.c.bf16 %v673_v21, %v672_v63  ;;  %v865_v48 = vadd.f32 %v849_v46, %v798_v47 }
  0xd5   : > { %v916_v56 = vmul.f32 %v8826_v16, %v6745_v8  ;;  %v735_v61 = vmul.f32 %v8827_v17, %v6690_v32  ;;  %v786_v3 = vmul.f32 %v8828_v28, %v6693_v60  ;;  %v8829_v43 = vunpack.c.h.bf16 %v6404_v55  ;;  %v974_v63 = vpop.permute.xlu0 %973 }
  0xd6   : > { %v8830_v53 = vunpack.c.h.bf16 %v6424_v7  ;;  %v933_v0 = vadd.f32 %v917_v50, %v866_v4  ;;  %v801_v13 = vadd.f32 %v785_v39, %v734_v62  ;;  %v800_v18 = vadd.f32 %v784_v11, %v733_v44  ;;  %689 = vst [vmem:[#allocation2 + $0x38] sm:$0xff] %v681_v58  ;;  %v8834_v50 = vld [vmem:[#allocation11_spill] sm:$0xff] }
  0xd7   : > { %v852_v42 = vmul.f32 %v8829_v43, %v6718_v31  ;;  %v8831_v54 = vunpack.c.l.bf16 %v6404_v55  ;;  %v1042_v27 = vmul.f32 %v969_v22, %v929_v57  ;;  %v1041_v6 = vmul.f32 %v964_v52, %v928_v1  ;;  %v8836_v55 = vld [vmem:[#allocation12_spill] sm:$0xff]  ;;  %v979_v21 = vpop.permute.xlu1 %978 }
  0xd8   : > { %v919_v35 = vmul.f32 %v8830_v53, %v6745_v8  ;;  %v803_v47 = vadd.f32 %v787_v36, %v736_v14  ;;  %v8832_v41 = vunpack.c.h.bf16 %v6481_v15  ;;  %v802_v9 = vadd.f32 %v786_v3, %v735_v61  ;;  %v8841_v36 = vld [vmem:[#allocation13_spill] sm:$0xff] }
  0xd9   : > { %v851_v19 = vmul.f32 %v8831_v54, %v6718_v31  ;;  %v8833_v49 = vunpack.c.l.bf16 %v6481_v15  ;;  %v8835_v62 = vunpack.c.h.bf16 %v8834_v50  ;;  %v8837_v30 = vunpack.c.h.bf16 %v8836_v55 }
  0xda   : > { %v854_v46 = vmul.f32 %v8832_v41, %v6718_v31  ;;  %v1057_v57 = vpack.c.bf16 %v1042_v27, %v1041_v6  ;;  %v8838_v1 = vunpack.c.l.bf16 %v6424_v7  ;;  %v8839_v44 = vunpack.c.l.bf16 %v8834_v50  ;;  %v984_v27 = vpop.permute.xlu0 %983 }
  0xdb   : > { %v853_v45 = vmul.f32 %v8833_v49, %v6718_v31  ;;  %v738_v4 = vmul.f32 %v8835_v62, %v6690_v32  ;;  %v789_v39 = vmul.f32 %v8837_v30, %v6693_v60  ;;  %v8840_v15 = vunpack.c.l.bf16 %v8836_v55 }
  0xdc   : > { %v918_v25 = vmul.f32 %v8838_v1, %v6745_v8  ;;  %v737_v59 = vmul.f32 %v8839_v44, %v6690_v32  ;;  %v932_v40 = vadd.f32 %v916_v56, %v865_v48  ;;  %v868_v14 = vadd.f32 %v852_v42, %v801_v13  ;;  %1066 = vst [vmem:[#allocation2 + $0x40] sm:$0xff] %v1057_v57 }
  0xdd   : > { %v788_v11 = vmul.f32 %v8840_v15, %v6693_v60  ;;  %v867_v33 = vadd.f32 %v851_v19, %v800_v18  ;;  %v8842_v16 = vunpack.c.h.bf16 %v8841_v36  ;;  %v1044_v7 = vmul.f32 %v979_v21, %v931_v20  ;;  %v989_v19 = vpop.permute.xlu1 %988 }
  0xde   : > { %v1043_v61 = vmul.f32 %v974_v63, %v930_v34  ;;  %v870_v28 = vadd.f32 %v854_v46, %v803_v47  ;;  %v8843_v3 = vunpack.c.l.bf16 %v8841_v36  ;;  %v869_v43 = vadd.f32 %v853_v45, %v802_v9 }
  0xdf   : > { %v921_v17 = vmul.f32 %v8842_v16, %v6745_v8  ;;  %v805_v53 = vadd.f32 %v789_v39, %v738_v4  ;;  %v8844_v22 = vunpack.c.h.bf16 %v6505_v10  ;;  %v8845_v48 = vunpack.c.l.bf16 %v6505_v10 }
  0xe0   : > { %v920_v58 = vmul.f32 %v8843_v3, %v6745_v8  ;;  %v1058_v52 = vpack.c.bf16 %v1044_v7, %v1043_v61  ;;  %v804_v13 = vadd.f32 %v788_v11, %v737_v59  ;;  %v8846_v20 = vunpack.c.h.bf16 %v6537_v2  ;;  %v8858_v7 = vld [vmem:[#allocation14_spill] sm:$0xff] }
  0xe1   : > { %v856_v56 = vmul.f32 %v8844_v22, %v6718_v31  ;;  %v855_v42 = vmul.f32 %v8845_v48, %v6718_v31  ;;  %v8847_v18 = vunpack.c.h.bf16 %v6542_v37  ;;  %v935_v6 = vadd.f32 %v919_v35, %v868_v14  ;;  %v999_v44 = vpop.permute.xlu1 %998 }
  0xe2   : > { %v740_v34 = vmul.f32 %v8846_v20, %v6690_v32  ;;  %v8848_v47 = vunpack.c.l.bf16 %v6537_v2  ;;  %v8849_v10 = vunpack.c.l.bf16 %v6542_v37  ;;  %1067 = vst [vmem:[#allocation2 + $0x48] sm:$0xff] %v1058_v52  ;;  %v1046_v9 = vmul.f32 %v989_v19, %v933_v0 }
  0xe3   : > { %v791_v54 = vmul.f32 %v8847_v18, %v6693_v60  ;;  %v1045_v49 = vmul.f32 %v984_v27, %v932_v40  ;;  %v934_v45 = vadd.f32 %v918_v25, %v867_v33  ;;  %v8850_v50 = vunpack.c.h.bf16 %v6550_v12  ;;  %v994_v25 = vpop.permute.xlu0 %993 }
  0xe4   : > { %v739_v41 = vmul.f32 %v8848_v47, %v6690_v32  ;;  %v790_v46 = vmul.f32 %v8849_v10, %v6693_v60  ;;  %v937_v4 = vadd.f32 %v921_v17, %v870_v28  ;;  %v936_v55 = vadd.f32 %v920_v58, %v869_v43 }
  0xe5   : > { %v923_v62 = vmul.f32 %v8850_v50, %v6745_v8  ;;  %v872_v30 = vadd.f32 %v856_v56, %v805_v53  ;;  %v8851_v35 = vunpack.c.l.bf16 %v6550_v12  ;;  %v1059_v39 = vpack.c.bf16 %v1046_v9, %v1045_v49  ;;  %v1009_v56 = vpop.permute.xlu1 %1008 }
  0xe6   : > { %v871_v57 = vadd.f32 %v855_v42, %v804_v13  ;;  %v807_v1 = vadd.f32 %v791_v54, %v740_v34  ;;  %v8852_v37 = vunpack.c.h.bf16 %v6570_v24  ;;  %v806_v59 = vadd.f32 %v790_v46, %v739_v41 }
  0xe7   : > { %v922_v2 = vmul.f32 %v8851_v35, %v6745_v8  ;;  %v8853_v15 = vunpack.c.l.bf16 %v6570_v24  ;;  %v8854_v21 = vunpack.c.h.bf16 %v6624_v51  ;;  %v8855_v12 = vunpack.c.h.bf16 %v6649_v5  ;;  %1068 = vst [vmem:[#allocation2 + $0x50] sm:$0xff] %v1059_v39  ;;  %v1004_v48 = vpop.permute.xlu0 %1003 }
  0xe8   : > { %v858_v0 = vmul.f32 %v8852_v37, %v6718_v31  ;;  %v1048_v14 = vmul.f32 %v999_v44, %v935_v6  ;;  %v1047_v33 = vmul.f32 %v994_v25, %v934_v45  ;;  %v8856_v36 = vunpack.c.l.bf16 %v6624_v51 }
  0xe9   : > { %v857_v11 = vmul.f32 %v8853_v15, %v6718_v31  ;;  %v742_v63 = vmul.f32 %v8854_v21, %v6690_v32  ;;  %v793_v40 = vmul.f32 %v8855_v12, %v6693_v60  ;;  %v8857_v17 = vunpack.c.l.bf16 %v6649_v5  ;;  %v1019_v54 = vpop.permute.xlu1 %1018 }
  0xea   : > { %v741_v16 = vmul.f32 %v8856_v36, %v6690_v32  ;;  %v8859_v61 = vunpack.c.h.bf16 %v8858_v7  ;;  %v1060_v3 = vpack.c.bf16 %v1048_v14, %v1047_v33  ;;  %v939_v58 = vadd.f32 %v923_v62, %v872_v30 }
  0xeb   : > { %v792_v24 = vmul.f32 %v8857_v17, %v6693_v60  ;;  %v874_v43 = vadd.f32 %v858_v0, %v807_v1  ;;  %v8860_v53 = vunpack.c.l.bf16 %v8858_v7  ;;  %v938_v42 = vadd.f32 %v922_v2, %v871_v57  ;;  %v1014_v19 = vpop.permute.xlu0 %1013 }
  0xec   : > { %v925_v28 = vmul.f32 %v8859_v61, %v6745_v8  ;;  %v873_v51 = vadd.f32 %v857_v11, %v806_v59  ;;  %v809_v32 = vadd.f32 %v793_v40, %v742_v63  ;;  %v8861_v5 = vunpack.c.h.bf16 %v6665_v23  ;;  %1069 = vst [vmem:[#allocation2 + $0x58] sm:$0xff] %v1060_v3 }
  0xed   : > { %v924_v22 = vmul.f32 %v8860_v53, %v6745_v8  ;;  %v1050_v52 = vmul.f32 %v1009_v56, %v937_v4  ;;  %v1049_v13 = vmul.f32 %v1004_v48, %v936_v55  ;;  %v808_v20 = vadd.f32 %v792_v24, %v741_v16 }
  0xee   : > { %v860_v60 = vmul.f32 %v8861_v5, %v6718_v31  ;;  %v859_v34 = vmul.f32 %v5371_v38, %v6718_v31  ;;  %v941_v27 = vadd.f32 %v925_v28, %v874_v43  ;;  %v8862_v47 = vunpack.c.h.bf16 %v6674_v29  ;;  %v1029_v38 = vpop.permute.xlu1 %1028 }
  0xef   : > { %v1061_v18 = vpack.c.bf16 %v1050_v52, %v1049_v13  ;;  %v940_v6 = vadd.f32 %v924_v22, %v873_v51  ;;  %v926_v10 = vmul.f32 %v5403_v26, %v6745_v8  ;;  %v1052_v46 = vmul.f32 %v1019_v54, %v939_v58  ;;  %v1024_v31 = vpop.permute.xlu0 %1023 }
  0xf0   : > { %v927_v41 = vmul.f32 %v8862_v47, %v6745_v8  ;;  %v1051_v9 = vmul.f32 %v1014_v19, %v938_v42  ;;  %v876_v49 = vadd.f32 %v860_v60, %v809_v32  ;;  %v875_v45 = vadd.f32 %v859_v34, %v808_v20 }
  0xf1   : > { %1070 = vst [vmem:[#allocation2 + $0x60] sm:$0xff] %v1061_v18  ;;  %v1054_v50 = vmul.f32 %v1029_v38, %v941_v27  ;;  %v1053_v62 = vmul.f32 %v1024_v31, %v940_v6 }
  0xf2   : > { %v1062_v23 = vpack.c.bf16 %v1052_v46, %v1051_v9  ;;  %v943_v4 = vadd.f32 %v927_v41, %v876_v49  ;;  %v942_v55 = vadd.f32 %v926_v10, %v875_v45  ;;  %v1039_v35 = vpop.permute.xlu1 %1038 }
  0xf3   : > { %v1063_v30 = vpack.c.bf16 %v1054_v50, %v1053_v62  ;;  %v1034_v2 = vpop.permute.xlu0 %1033 }
  0xf4   : > { %1071 = vst [vmem:[#allocation2 + $0x68] sm:$0xff] %v1062_v23  ;;  %v1056_v39 = vmul.f32 %v1039_v35, %v943_v4  ;;  %v1055_v29 = vmul.f32 %v1034_v2, %v942_v55 }
  0xf5   : > { %1072 = vst [vmem:[#allocation2 + $0x70] sm:$0xff] %v1063_v30 }
  0xf6   : > { %v1064_v8 = vpack.c.bf16 %v1056_v39, %v1055_v29 }
  0xf8   : > { %1073 = vst [vmem:[#allocation2 + $0x78] sm:$0xff] %v1064_v8 }
  0xf9 PF: > { %s5243_s24 = smul.u32 96, %s6013_s21  ;;  %vm1329_vm0 = vcmask 1042432   ;;  %vm1330_vm1 = vcmask 1046532   ;;  %vm1102_vm3 = vsmask.f32 3328  ;;  %s6025_s12 = smov 8  }
  0xfa   : > { %vm6932_vm2 = vmor %vm1329_vm0, %vm1330_vm1  ;;  %vm1103_vm4 = vsmask.f32 7440  ;;  %s6026_s13 = smov 12   ;;  %s6027_s25 = smov 4   ;;  %vm2372_vm6 = vcmask 31744   ;;  %vm2397_vm7 = vcmask 64512  }
  0xfb   : > { %s6930_s11 = scalar_lea.vmem %s8713_s0, %s5243_s24  ;;  %vm6981_vm5 = vmor %vm1102_vm3, %vm1103_vm4  ;;  %s6028_s27 = smov 16   ;;  %vm2414_vm8 = vcmask 97280   ;;  %vm2431_vm9 = vcmask 130048   ;;  %vm2448_vm10 = vcmask 162816   ;;  %vm2465_vm11 = vcmask 195584  }
  0xfc   : > { %v6937_v57 = vld [vmem:[%s6930_s11 + $0x10] sm:$0xf]  ;;  %v6940_v1 = vld [vmem:[%s6930_s11 + $0x14] sm:$0x1]  ;;  %v1298_v37 = vld [vmem:[%s6930_s11 + $0xc] sm:$0xe] }
  0xfd   : > { %v1149_v0 = vshll.u32 %v6940_v1, 16  ;;  %v4809_v44 = vrot.slane %v1298_v37, 9  ;;  %v1341_v25 = vrot.slane %v6937_v57, 5  ;;  %v1344_v59 = vrot.slane %v6940_v1, 5  ;;  %v1079_v15 = vld [vmem:[%s6930_s11 + $0x4] sm:$0xf] }
  0xfe   : > { %v1094_v11 = vld [vmem:[%s6930_s11 + $0x8] sm:$0x1]  ;;  %v1297_v21 = vld [vmem:[%s6930_s11] sm:$0xe]  ;;  %v1334_v63 = vrot.slane %v1079_v15, 5  ;;  %v1115_v12 = vshll.u32 %v1079_v15, 16 }
  0xff   : > { %v1342_v40 = vsel %vm6932_vm2, %v4809_v44, %v1341_v25  ;;  %v1343_v14 = vrot.slane %v1341_v25, 4  ;;  %v1125_v33 = vshll.u32 %v1094_v11, 16  ;;  %v4808_v36 = vrot.slane %v1297_v21, 9  ;;  %v4999_v16 = vld [vmem:[%s6930_s11 + $0xdc] sm:$0xf]  ;;  %s6029_s29 = smov 20  }
 0x100   : > { %v1336_v17 = vrot.slane %v1334_v63, 4  ;;  %v1337_v24 = vrot.slane %v1094_v11, 5  ;;  %v5014_v7 = vld [vmem:[%s6930_s11 + $0xe0] sm:$0x1]  ;;  %v5022_v61 = vld [vmem:[%s6930_s11 + $0xd8] sm:$0xe] }
 0x101   : > { %v1345_v28 = vsel %vm6932_vm2, %v1343_v14, %v1344_v59  ;;  %v1335_v3 = vsel %vm6932_vm2, %v4808_v36, %v1334_v63  ;;  %v5030_v58 = vrot.slane %v5022_v61, 9  ;;  %v3043_v43 = vrot.slane %v4999_v16, 5  ;;  %v1078_v53 = vld [vmem:[%s6930_s11] sm:$0xf]  ;;  %v4818_v52 = vld [vmem:[%s6930_s11 + $0xc] sm:$0xf] }
 0x102   : > { %v4917_v22 = vcombine.low %v1342_v40, %v1345_v28  ;;  %v1338_v56 = vsel %vm6932_vm2, %v1336_v17, %v1337_v24  ;;  %v3046_v48 = vrot.slane %v5014_v7, 5  ;;  %v1106_v42 = vshrl.u32 %v1078_v53, 16  ;;  %v6965_v13 = vld [vmem:[%s6930_s11 + $0x10] sm:$0xf]  ;;  %v4998_v19 = vld [vmem:[%s6930_s11 + $0xd8] sm:$0xf] }
 0x103   : > { %v4916_v51 = vcombine.low %v1335_v3, %v1338_v56  ;;  %v3044_v32 = vsel %vm6932_vm2, %v5030_v58, %v3043_v43  ;;  %v3045_v5 = vrot.slane %v3043_v43, 4  ;;  %v1109_v60 = vshll.u32 %v1078_v53, 16  ;;  %v1080_v45 = vld [vmem:[%s6930_s11 + $0xc] sm:$0xf]  ;;  %s6030_s7 = smov 24   ;;  %s6031_s9 = smov 28  }
 0x104   : > { %2102 = vrot.lane.b32.xlu0 %v4917_v22, %s6025_s12  ;;  %v1108_v20 = vrot.slane %v1106_v42, 4  ;;  %v1117_v34 = vrot.slane %v1115_v12, 5  ;;  %v1119_v18 = vshrl.u32 %v1079_v15, 16  ;;  %v1127_v54 = vrot.slane %v1125_v33, 5  ;;  %v5000_v12 = vld [vmem:[%s6930_s11 + $0xe4] sm:$0xf] }
 0x105   : > { %2100 = vrot.lane.b32.xlu1 %v4916_v51, %s6025_s12  ;;  %v3047_v27 = vsel %vm6932_vm2, %v3045_v5, %v3046_v48  ;;  %v1111_v6 = vrot.slane %v1109_v60, 5  ;;  %v1417_v47 = vshrl.u32 %v4818_v52, 16  ;;  %v1420_v41 = vshll.u32 %v4818_v52, 16  ;;  %v5015_v43 = vld [vmem:[%s6930_s11 + $0xec] sm:$0x1]  ;;  %s6032_s15 = smov 32  }
 0x106   : > { %v5140_v10 = vcombine.low %v3044_v32, %v3047_v27  ;;  %v1121_v46 = vrot.slane %v1119_v18, 4  ;;  %v1430_v9 = vshrl.u32 %v6965_v13, 16  ;;  %v4924_v49 = vcombine.low %v4818_v52, %v6965_v13  ;;  %v5041_v51 = vld [vmem:[%s6930_s11 + $0xe4] sm:$0xf] }
 0x107   : > { %v1112_v23 = vor.u32 %v1111_v6, %v1108_v20  ;;  %v6975_v38 = vrot.slane %v1417_v47, 4  ;;  %v6977_v31 = vrot.slane %v1420_v41, 5  ;;  %v2818_v50 = vshrl.u32 %v4998_v19, 16 }
 0x108   : > { %v1122_v4 = vor.u32 %v1121_v46, %v1117_v34  ;;  %v2821_v55 = vshll.u32 %v4998_v19, 16  ;;  %v2827_v30 = vshll.u32 %v4999_v16, 16  ;;  %v2831_v35 = vshrl.u32 %v4999_v16, 16  ;;  %v5001_v16 = vld [vmem:[%s6930_s11 + $0xe8] sm:$0xf] }
 0x109   : > { %3807 = vrot.lane.b32.xlu1 %v5140_v10, %s6025_s12  ;;  %v1113_v2 = vrot.slane %v1112_v23, 4  ;;  %v2820_v39 = vrot.slane %v2818_v50, 4  ;;  %v2837_v29 = vshll.u32 %v5014_v7, 16  ;;  %v1130_v8 = vshrl.u32 %v1080_v45, 16  ;;  %v5023_v46 = vld [vmem:[%s6930_s11 + $0xe4] sm:$0xe] }
 0x10a   : > { %v1123_v37 = vrot.slane %v1122_v4, 4  ;;  %v2823_v44 = vrot.slane %v2821_v55, 5  ;;  %v2829_v25 = vrot.slane %v2827_v30, 5  ;;  %v2833_v59 = vrot.slane %v2831_v35, 4 }
 0x10b   : > { %v1118_v15 = vsel %vm6981_vm5, %v1113_v2, %v1117_v34  ;;  %v2839_v11 = vrot.slane %v2837_v29, 5  ;;  %v1132_v21 = vrot.slane %v1130_v8, 4  ;;  %v1133_v63 = vshll.u32 %v1080_v45, 16  ;;  %v7005_v34 = vld [vmem:[%s6930_s11 + $0xe8] sm:$0xf] }
 0x10c   : > { %v1128_v40 = vsel %vm6981_vm5, %v1123_v37, %v1127_v54  ;;  %v2824_v14 = vor.u32 %v2823_v44, %v2820_v39  ;;  %v2834_v33 = vor.u32 %v2833_v59, %v2829_v25  ;;  %v1139_v36 = vshll.u32 %v6937_v57, 16  ;;  %v7016_v37 = vld [vmem:[%s6930_s11 + $0x14] sm:$0x1] }
 0x10d   : > { %v4908_v17 = vcombine.low %v1118_v15, %v1128_v40  ;;  %2148 = vrot.lane.b32.xlu1 %v4924_v49, %s6026_s13  ;;  %v1135_v24 = vrot.slane %v1133_v63, 5  ;;  %v1143_v7 = vshrl.u32 %v6937_v57, 16  ;;  %v1151_v61 = vrot.slane %v1149_v0, 5 }
 0x10e   : > { %v2825_v28 = vrot.slane %v2824_v14, 4  ;;  %v2835_v3 = vrot.slane %v2834_v33, 4  ;;  %v1141_v58 = vrot.slane %v1139_v36, 5  ;;  %v2842_v53 = vshrl.u32 %v5000_v12, 16 }
 0x10f   : > { %2060 = vrot.lane.b32.xlu0 %v4908_v17, %s6027_s25  ;;  %v1136_v22 = vor.u32 %v1135_v24, %v1132_v21  ;;  %v1145_v56 = vrot.slane %v1143_v7, 4  ;;  %v2845_v48 = vshll.u32 %v5000_v12, 16  ;;  %v2851_v42 = vshll.u32 %v5001_v16, 16  ;;  %v7025_v21 = vld [vmem:[%s6930_s11 + $0x1c] sm:$0xf] }
 0x110   : > { %v2830_v57 = vsel %vm6981_vm5, %v2825_v28, %v2829_v25  ;;  %v2840_v1 = vsel %vm6981_vm5, %v2835_v3, %v2839_v11  ;;  %v2844_v0 = vrot.slane %v2842_v53, 4  ;;  %v2855_v32 = vshrl.u32 %v5001_v16, 16  ;;  %v4820_v11 = vld [vmem:[%s6930_s11 + $0x18] sm:$0xf]  ;;  %v7046_v53 = vld [vmem:[%s6930_s11 + $0xf4] sm:$0xf] }
 0x111   : > { %v5132_v5 = vcombine.low %v2830_v57, %v2840_v1  ;;  %v1137_v60 = vrot.slane %v1136_v22, 4  ;;  %v1146_v52 = vor.u32 %v1145_v56, %v1141_v58  ;;  %v2847_v20 = vrot.slane %v2845_v48, 5 }
 0x112   : > { %v2853_v18 = vrot.slane %v2851_v42, 5  ;;  %v2857_v54 = vrot.slane %v2855_v32, 4  ;;  %v2861_v19 = vshll.u32 %v5015_v43, 16  ;;  %v3125_v27 = vshrl.u32 %v5041_v51, 16  ;;  %v4842_v32 = vld [vmem:[%s6930_s11 + $0xc] sm:$0xe] }
 0x113   : > { %3767 = vrot.lane.b32.xlu0 %v5132_v5, %s6027_s25  ;;  %v1142_v6 = vsel %vm6981_vm5, %v1137_v60, %v1141_v58  ;;  %v1147_v47 = vrot.slane %v1146_v52, 4  ;;  %v2848_v41 = vor.u32 %v2847_v20, %v2844_v0  ;;  %v3128_v10 = vshll.u32 %v5041_v51, 16 }
 0x114   : > { %v2858_v49 = vor.u32 %v2857_v54, %v2853_v18  ;;  %v2863_v45 = vrot.slane %v2861_v19, 5  ;;  %v3127_v23 = vrot.slane %v3125_v27, 4  ;;  %v3138_v50 = vshrl.u32 %v7005_v34, 16 }
 0x115   : > { %v1152_v4 = vsel %vm6981_vm5, %v1147_v47, %v1151_v61  ;;  %v2849_v55 = vrot.slane %v2848_v41, 4  ;;  %v3130_v30 = vrot.slane %v3128_v10, 5  ;;  %v5148_v35 = vcombine.low %v5041_v51, %v7005_v34  ;;  %v7039_v61 = vld [vmem:[%s6930_s11 + $0xec] sm:$0x1] }
 0x116   : > { %v4909_v2 = vcombine.low %v1142_v6, %v1152_v4  ;;  %v2859_v39 = vrot.slane %v2858_v49, 4  ;;  %v5031_v29 = vrot.slane %v5023_v46, 9  ;;  %v3050_v8 = vrot.slane %v5001_v16, 5  ;;  %v7059_v6 = vld [vmem:[%s6930_s11 + $0x20] sm:$0x1] }
 0x117   : > { %v2854_v44 = vsel %vm6981_vm5, %v2849_v55, %v2853_v18  ;;  %v3053_v25 = vrot.slane %v5015_v43, 5  ;;  %v1423_v59 = vor.u32 %v6977_v31, %v6975_v38  ;;  %v1426_v15 = vshll.u32 %v6965_v13, 16  ;;  %v5043_v43 = vld [vmem:[%s6930_s11 + $0xf0] sm:$0xf]  ;;  %v5065_v49 = vld [vmem:[%s6930_s11 + $0xe4] sm:$0xe] }
 0x118   : > { %2062 = vrot.lane.b32.xlu1 %v4909_v2, %s6027_s25  ;;  %v2864_v63 = vsel %vm6981_vm5, %v2859_v39, %v2863_v45  ;;  %v3051_v12 = vsel %vm6932_vm2, %v5031_v29, %v3050_v8  ;;  %v3052_v40 = vrot.slane %v3050_v8, 4  ;;  %v1432_v14 = vrot.slane %v1430_v9, 4 }
 0x119   : > { %v5133_v38 = vcombine.low %v2854_v44, %v2864_v63  ;;  %v1424_v31 = vrot.slane %v1423_v59, 4  ;;  %v1428_v33 = vrot.slane %v1426_v15, 5  ;;  %v1436_v36 = vshll.u32 %v7016_v37, 16 }
 0x11a   : > { %v3054_v16 = vsel %vm6932_vm2, %v3052_v40, %v3053_v25  ;;  %v1441_v17 = vshrl.u32 %v4820_v11, 16  ;;  %v1444_v24 = vshll.u32 %v4820_v11, 16  ;;  %v1454_v7 = vshrl.u32 %v7025_v21, 16 }
 0x11b   : > { %3769 = vrot.lane.b32.xlu0 %v5133_v38, %s6027_s25  ;;  %v5141_v28 = vcombine.low %v3051_v12, %v3054_v16  ;;  %v1429_v9 = vsel %vm6981_vm5, %v1424_v31, %v1428_v33  ;;  %v1433_v3 = vor.u32 %v1432_v14, %v1428_v33  ;;  %v1438_v58 = vrot.slane %v1436_v36, 5  ;;  %v7079_v12 = vld [vmem:[%s6930_s11 + $0xf8] sm:$0x1] }
 0x11c   : > { %3855 = vrot.lane.b32.xlu1 %v5148_v35, %s6026_s13  ;;  %v1443_v22 = vrot.slane %v1441_v17, 4  ;;  %v1446_v56 = vrot.slane %v1444_v24, 5  ;;  %v4925_v48 = vcombine.low %v4820_v11, %v7025_v21  ;;  %v3131_v42 = vor.u32 %v3130_v30, %v3127_v23  ;;  %v7082_v14 = vld [vmem:[%s6930_s11 + $0x18] sm:$0xf] }
 0x11d   : > { %v1434_v51 = vrot.slane %v1433_v3, 4  ;;  %v3134_v57 = vshll.u32 %v7005_v34, 16  ;;  %v3140_v1 = vrot.slane %v3138_v50, 4  ;;  %v3144_v0 = vshll.u32 %v7039_v61, 16 }
 0x11e   : > { %v3132_v5 = vrot.slane %v3131_v42, 4  ;;  %v3149_v60 = vshrl.u32 %v5043_v43, 16  ;;  %v3152_v52 = vshll.u32 %v5043_v43, 16  ;;  %v3162_v20 = vshrl.u32 %v7046_v53, 16 }
 0x11f   : > { %3809 = vrot.lane.b32.xlu0 %v5141_v28, %s6025_s12  ;;  %v1439_v18 = vsel %vm6981_vm5, %v1434_v51, %v1438_v58  ;;  %v3136_v54 = vrot.slane %v3134_v57, 5  ;;  %v3146_v19 = vrot.slane %v3144_v0, 5  ;;  %v5149_v27 = vcombine.low %v5043_v43, %v7046_v53  ;;  %v7104_v0 = vld [vmem:[%s6930_s11 + $0xf0] sm:$0xf] }
 0x120   : > { %v4932_v47 = vcombine.low %v1429_v9, %v1439_v18  ;;  %v3151_v41 = vrot.slane %v3149_v60, 4  ;;  %v3154_v10 = vrot.slane %v3152_v52, 5  ;;  %v4850_v46 = vrot.slane %v4842_v32, 9  ;;  %v7107_v32 = vld [vmem:[%s6930_s11 + $0xf4] sm:$0xf] }
 0x121   : > { %v3137_v45 = vsel %vm6981_vm5, %v3132_v5, %v3136_v54  ;;  %v3141_v23 = vor.u32 %v3140_v1, %v3136_v54  ;;  %v1642_v50 = vrot.slane %v6965_v13, 5  ;;  %v1645_v4 = vrot.slane %v7016_v37, 5  ;;  %v5066_v18 = vld [vmem:[%s6930_s11 + $0xf0] sm:$0xe] }
 0x122   : > { %2188 = vrot.lane.b32.xlu1 %v4932_v47, %s6028_s27  ;;  %v1447_v55 = vor.u32 %v1446_v56, %v1443_v22  ;;  %v1450_v30 = vshll.u32 %v7025_v21, 16  ;;  %v1456_v35 = vrot.slane %v1454_v7, 4  ;;  %v1460_v2 = vshll.u32 %v7059_v6, 16 }
 0x123   : > { %2150 = vrot.lane.b32.xlu0 %v4925_v48, %s6026_s13  ;;  %v3142_v39 = vrot.slane %v3141_v23, 4  ;;  %v1643_v29 = vsel %vm6932_vm2, %v4850_v46, %v1642_v50  ;;  %v1644_v13 = vrot.slane %v1642_v50, 4  ;;  %v5073_v8 = vrot.slane %v5065_v49, 9  ;;  %v4843_v48 = vld [vmem:[%s6930_s11 + $0x18] sm:$0xe] }
 0x124   : > { %v1448_v37 = vrot.slane %v1447_v55, 4  ;;  %v1452_v44 = vrot.slane %v1450_v30, 5  ;;  %v1462_v25 = vrot.slane %v1460_v2, 5  ;;  %v3350_v59 = vrot.slane %v7005_v34, 5  ;;  %v7087_v34 = vld [vmem:[%s6930_s11 + $0x1c] sm:$0xf] }
 0x125   : > { %v3147_v15 = vsel %vm6981_vm5, %v3142_v39, %v3146_v19  ;;  %v1646_v11 = vsel %vm6932_vm2, %v1644_v13, %v1645_v4  ;;  %v3353_v63 = vrot.slane %v7039_v61, 5  ;;  %v3155_v40 = vor.u32 %v3154_v10, %v3151_v41  ;;  %v7126_v4 = vld [vmem:[%s6930_s11 + $0x20] sm:$0x1]  ;;  %v7132_v2 = vld [vmem:[%s6930_s11 + $0x24] sm:$0xf] }
 0x126   : > { %v5156_v38 = vcombine.low %v3137_v45, %v3147_v15  ;;  %v4940_v31 = vcombine.low %v1643_v29, %v1646_v11  ;;  %v1453_v33 = vsel %vm6981_vm5, %v1448_v37, %v1452_v44  ;;  %v1457_v36 = vor.u32 %v1456_v35, %v1452_v44  ;;  %v7139_v37 = vld [vmem:[%s6930_s11 + $0x28] sm:$0xf] }
 0x127   : > { %3857 = vrot.lane.b32.xlu0 %v5149_v27, %s6026_s13  ;;  %v3351_v16 = vsel %vm6932_vm2, %v5073_v8, %v3350_v59  ;;  %v3352_v17 = vrot.slane %v3350_v59, 4  ;;  %v3156_v24 = vrot.slane %v3155_v40, 4  ;;  %v3158_v7 = vshll.u32 %v7046_v53, 16  ;;  %v7148_v40 = vld [vmem:[%s6930_s11 + $0xf8] sm:$0x1] }
 0x128   : > { %3895 = vrot.lane.b32.xlu1 %v5156_v38, %s6028_s27  ;;  %v1458_v61 = vrot.slane %v1457_v36, 4  ;;  %v3164_v28 = vrot.slane %v3162_v20, 4  ;;  %v3168_v9 = vshll.u32 %v7079_v12, 16  ;;  %v1725_v3 = vshrl.u32 %v7082_v14, 16  ;;  %v7155_v36 = vld [vmem:[%s6930_s11 + $0xfc] sm:$0xf] }
 0x129   : > { %v3354_v58 = vsel %vm6932_vm2, %v3352_v17, %v3353_v63  ;;  %v3160_v43 = vrot.slane %v3158_v7, 5  ;;  %v1728_v22 = vshll.u32 %v7082_v14, 16  ;;  %v1738_v56 = vshrl.u32 %v7087_v34, 16 }
 0x12a   : > { %v1463_v42 = vsel %vm6981_vm5, %v1458_v61, %v1462_v25  ;;  %v5164_v51 = vcombine.low %v3351_v16, %v3354_v58  ;;  %v3170_v57 = vrot.slane %v3168_v9, 5  ;;  %v1727_v1 = vrot.slane %v1725_v3, 4  ;;  %v7161_v61 = vld [vmem:[%s6930_s11 + $0x100] sm:$0xf] }
 0x12b   : > { %v4933_v5 = vcombine.low %v1453_v33, %v1463_v42  ;;  %v3161_v60 = vsel %vm6981_vm5, %v3156_v24, %v3160_v43  ;;  %v3165_v52 = vor.u32 %v3164_v28, %v3160_v43  ;;  %v1730_v20 = vrot.slane %v1728_v22, 5  ;;  %v4884_v42 = vld [vmem:[%s6930_s11 + $0x18] sm:$0xe] }
 0x12c   : > { %2228 = vrot.lane.b32.xlu1 %v4940_v31, %s6029_s29  ;;  %v4948_v54 = vcombine.low %v7082_v14, %v7087_v34  ;;  %v4851_v19 = vrot.slane %v4843_v48, 9  ;;  %v1649_v27 = vrot.slane %v7025_v21, 5  ;;  %v1652_v47 = vrot.slane %v7059_v6, 5 }
 0x12d   : > { %2190 = vrot.lane.b32.xlu0 %v4933_v5, %s6028_s27  ;;  %v3166_v41 = vrot.slane %v3165_v52, 4  ;;  %v3432_v10 = vshrl.u32 %v7104_v0, 16  ;;  %v3435_v46 = vshll.u32 %v7104_v0, 16  ;;  %v3445_v49 = vshrl.u32 %v7107_v32, 16 }
 0x12e   : > { %v1650_v45 = vsel %vm6932_vm2, %v4851_v19, %v1649_v27  ;;  %v1651_v23 = vrot.slane %v1649_v27, 4  ;;  %v5172_v21 = vcombine.low %v7104_v0, %v7107_v32  ;;  %v5074_v50 = vrot.slane %v5066_v18, 9  ;;  %v7176_v18 = vld [vmem:[%s6930_s11 + $0x2c] sm:$0x1] }
 0x12f   : > { %v3171_v6 = vsel %vm6981_vm5, %v3166_v41, %v3170_v57  ;;  %v3434_v55 = vrot.slane %v3432_v10, 4  ;;  %v3437_v30 = vrot.slane %v3435_v46, 5  ;;  %v3357_v35 = vrot.slane %v7046_v53, 5  ;;  %v5108_v10 = vld [vmem:[%s6930_s11 + $0xf0] sm:$0xe] }
 0x130   : > { %3935 = vrot.lane.b32.xlu1 %v5164_v51, %s6029_s29  ;;  %v5157_v39 = vcombine.low %v3161_v60, %v3171_v6  ;;  %v1653_v29 = vsel %vm6932_vm2, %v1651_v23, %v1652_v47  ;;  %v3360_v13 = vrot.slane %v7079_v12, 5  ;;  %v1731_v8 = vor.u32 %v1730_v20, %v1727_v1 }
 0x131   : > { %v4941_v44 = vcombine.low %v1650_v45, %v1653_v29  ;;  %v3358_v25 = vsel %vm6932_vm2, %v5074_v50, %v3357_v35  ;;  %v3359_v53 = vrot.slane %v3357_v35, 4  ;;  %v1734_v59 = vshll.u32 %v7087_v34, 16 }
 0x132   : > { %3897 = vrot.lane.b32.xlu0 %v5157_v39, %s6028_s27  ;;  %v1732_v15 = vrot.slane %v1731_v8, 4  ;;  %v1740_v11 = vrot.slane %v1738_v56, 4  ;;  %v1744_v63 = vshll.u32 %v7126_v4, 16  ;;  %v1749_v12 = vshrl.u32 %v7132_v2, 16 }
 0x133   : > { %v3361_v14 = vsel %vm6932_vm2, %v3359_v53, %v3360_v13  ;;  %v1736_v38 = vrot.slane %v1734_v59, 5  ;;  %v1752_v31 = vshll.u32 %v7132_v2, 16  ;;  %v1762_v33 = vshrl.u32 %v7139_v37, 16 }
 0x134   : > { %2276 = vrot.lane.b32.xlu1 %v4948_v54, %s6030_s7  ;;  %v5165_v16 = vcombine.low %v3358_v25, %v3361_v14  ;;  %v1746_v17 = vrot.slane %v1744_v63, 5  ;;  %v1751_v24 = vrot.slane %v1749_v12, 4  ;;  %v4949_v7 = vcombine.low %v7132_v2, %v7139_v37  ;;  %v2534_v54 = vld [vmem:[#allocation2] sm:$0xff] }
 0x135   : > { %v1737_v28 = vsel %vm6981_vm5, %v1732_v15, %v1736_v38  ;;  %v1741_v9 = vor.u32 %v1740_v11, %v1736_v38  ;;  %v1754_v3 = vrot.slane %v1752_v31, 5  ;;  %v3438_v58 = vor.u32 %v3437_v30, %v3434_v55  ;;  %5722 = vmatprep.subr.bf16.mxu0 %v2534_v54  ;;  %v7202_v11 = vld [vmem:[%s6930_s11 + $0x104] sm:$0x1]  ;;  %v4885_v63 = vld [vmem:[%s6930_s11 + $0x24] sm:$0xe] }
 0x136   : > { %2230 = vrot.lane.b32.xlu0 %v4941_v44, %s6029_s29  ;;  %v3441_v43 = vshll.u32 %v7107_v32, 16  ;;  %v3447_v22 = vrot.slane %v3445_v49, 4  ;;  %v3451_v56 = vshll.u32 %v7148_v40, 16  ;;  %v3456_v48 = vshrl.u32 %v7155_v36, 16  ;;  %5723 = vmatpush3.bf16.msra.mxu0 %v2534_v54  ;;  %v4232_v44 = vld [vmem:[#allocation2 + $0x40] sm:$0xff]  ;;  %v4234_v54 = vld [vmem:[#allocation2 + $0x50] sm:$0xff] }
 0x137   : > { %v1742_v51 = vrot.slane %v1741_v9, 4  ;;  %v3439_v57 = vrot.slane %v3438_v58, 4  ;;  %v3459_v1 = vshll.u32 %v7155_v36, 16  ;;  %v3469_v0 = vshrl.u32 %v7161_v61, 16  ;;  %5754 = vmatprep.subr.bf16.mxu1 %v4232_v44  ;;  %v1082_v9 = vld [vmem:[%s6930_s11 + $0x18] sm:$0xf] }
 0x138   : > { %3983 = vrot.lane.b32.xlu1 %v5172_v21, %s6030_s7  ;;  %v3443_v5 = vrot.slane %v3441_v43, 5  ;;  %v3453_v60 = vrot.slane %v3451_v56, 5  ;;  %v3458_v52 = vrot.slane %v3456_v48, 4  ;;  %v5173_v20 = vcombine.low %v7155_v36, %v7161_v61  ;;  %v2535_v21 = vld [vmem:[#allocation2 + $0x8] sm:$0xff]  ;;  %5755 = vmatpush3.bf16.msra.mxu1 %v4232_v44  ;;  %v7219_v56 = vld [vmem:[%s6930_s11 + $0x1c] sm:$0xf] }
 0x139   : > { %v1747_v19 = vsel %vm6981_vm5, %v1742_v51, %v1746_v17  ;;  %v3461_v27 = vrot.slane %v3459_v1, 5  ;;  %v4892_v47 = vrot.slane %v4884_v42, 9  ;;  %v1950_v41 = vrot.slane %v7087_v34, 5  ;;  %5724 = vmatprep.subr.bf16.mxu0 %v2535_v21  ;;  %v4233_v48 = vld [vmem:[#allocation2 + $0x48] sm:$0xff]  ;;  %v7226_v1 = vld [vmem:[%s6930_s11 + $0x20] sm:$0x1] }
 0x13a   : > { %3937 = vrot.lane.b32.xlu0 %v5165_v16, %s6029_s29  ;;  %v4956_v46 = vcombine.low %v1737_v28, %v1747_v19  ;;  %v3444_v49 = vsel %vm6981_vm5, %v3439_v57, %v3443_v5  ;;  %v3448_v45 = vor.u32 %v3447_v22, %v3443_v5  ;;  %v1953_v23 = vrot.slane %v7126_v4, 5  ;;  %5725 = vmatpush3.bf16.msra.mxu0 %v2535_v21  ;;  %v2536_v16 = vld [vmem:[#allocation2 + $0x10] sm:$0xff]  ;;  %v2537_v5 = vld [vmem:[#allocation2 + $0x18] sm:$0xff] }
 0x13b   : > { %v7188_v50 = vsel %vm6932_vm2, %v4892_v47, %v1950_v41  ;;  %v1952_v6 = vrot.slane %v1950_v41, 4  ;;  %v1755_v55 = vor.u32 %v1754_v3, %v1751_v24  ;;  %v1758_v34 = vshll.u32 %v7139_v37, 16  ;;  %5726 = vmatprep.subr.bf16.mxu0 %v2536_v16  ;;  %5756 = vmatprep.subr.bf16.mxu1 %v4233_v48 }
 0x13c   : > { %2316 = vrot.lane.b32.xlu1 %v4956_v46, %s6031_s9  ;;  %v3449_v30 = vrot.slane %v3448_v45, 4  ;;  %v1764_v35 = vrot.slane %v1762_v33, 4  ;;  %v1768_v4 = vshll.u32 %v7176_v18, 16  ;;  %v5116_v2 = vrot.slane %v5108_v10, 9  ;;  %5757 = vmatpush3.bf16.msra.mxu1 %v4233_v48 }
 0x13d   : > { %v1954_v39 = vsel %vm6932_vm2, %v1952_v6, %v1953_v23  ;;  %v1756_v29 = vrot.slane %v1755_v55, 4  ;;  %v1760_v13 = vrot.slane %v1758_v34, 5  ;;  %v3657_v8 = vrot.slane %v7107_v32, 5  ;;  %5758 = vmatprep.subr.bf16.mxu1 %v4234_v54  ;;  %v5002_v23 = vld [vmem:[%s6930_s11 + $0xf0] sm:$0xf] }
 0x13e   : > { %2278 = vrot.lane.b32.xlu0 %v4949_v7, %s6030_s7  ;;  %v3454_v25 = vsel %vm6981_vm5, %v3449_v30, %v3453_v60  ;;  %v4964_v53 = vcombine.low %v7188_v50, %v1954_v39  ;;  %v1770_v59 = vrot.slane %v1768_v4, 5  ;;  %v3660_v15 = vrot.slane %v7148_v40, 5  ;;  %5727 = vmatpush3.bf16.msra.mxu0 %v2536_v16 }
 0x13f   : > { %v5180_v12 = vcombine.low %v3444_v49, %v3454_v25  ;;  %v1761_v32 = vsel %vm6981_vm5, %v1756_v29, %v1760_v13  ;;  %v1765_v14 = vor.u32 %v1764_v35, %v1760_v13  ;;  %v3658_v38 = vsel %vm6932_vm2, %v5116_v2, %v3657_v8  ;;  %5728 = vmatprep.subr.bf16.mxu0 %v2537_v5  ;;  %v7243_v2 = vld [vmem:[%s6930_s11 + $0xf4] sm:$0xf] }
 0x140   : > { %v3659_v31 = vrot.slane %v3657_v8, 4  ;;  %v3462_v33 = vor.u32 %v3461_v27, %v3458_v52  ;;  %v3465_v36 = vshll.u32 %v7161_v61, 16  ;;  %v3471_v40 = vrot.slane %v3469_v0, 4  ;;  %v5109_v0 = vld [vmem:[%s6930_s11 + $0xfc] sm:$0xe]  ;;  %5759 = vmatpush3.bf16.msra.mxu1 %v4234_v54 }
 0x141   : > { %4023 = vrot.lane.b32.xlu1 %v5180_v12, %s6031_s9  ;;  %v1766_v17 = vrot.slane %v1765_v14, 4  ;;  %v3475_v24 = vshll.u32 %v7202_v11, 16  ;;  %v4893_v7 = vrot.slane %v4885_v63, 9  ;;  %v1957_v28 = vrot.slane %v7139_v37, 5  ;;  %v7248_v8 = vld [vmem:[%s6930_s11 + $0xf8] sm:$0x1] }
 0x142   : > { %3985 = vrot.lane.b32.xlu0 %v5173_v20, %s6030_s7  ;;  %v3661_v3 = vsel %vm6932_vm2, %v3659_v31, %v3660_v15  ;;  %v3463_v58 = vrot.slane %v3462_v33, 4  ;;  %v3467_v43 = vrot.slane %v3465_v36, 5  ;;  %v1960_v22 = vrot.slane %v7176_v18, 5  ;;  %5729 = vmatpush3.bf16.msra.mxu0 %v2537_v5  ;;  %v2538_v36 = vld [vmem:[#allocation2 + $0x20] sm:$0xff]  ;;  %v7271_v5 = vld [vmem:[%s6930_s11 + $0x2c] sm:$0x1] }
 0x143   : > { %v1771_v42 = vsel %vm6981_vm5, %v1766_v17, %v1770_v59  ;;  %v5188_v51 = vcombine.low %v3658_v38, %v3661_v3  ;;  %v3477_v57 = vrot.slane %v3475_v24, 5  ;;  %v1958_v37 = vsel %vm6932_vm2, %v4893_v7, %v1957_v28  ;;  %v1084_v7 = vld [vmem:[%s6930_s11 + $0x24] sm:$0xf]  ;;  %5730 = vmatprep.subr.bf16.mxu0 %v2538_v36 }
 0x144   : > { %v4957_v60 = vcombine.low %v1761_v32, %v1771_v42  ;;  %v3468_v52 = vsel %vm6981_vm5, %v3463_v58, %v3467_v43  ;;  %v3472_v20 = vor.u32 %v3471_v40, %v3467_v43  ;;  %v1959_v18 = vrot.slane %v1957_v28, 4  ;;  %v7264_v28 = vld [vmem:[%s6930_s11 + $0x28] sm:$0xf] }
 0x145   : > { %2356 = vrot.lane.b32.xlu1 %v4964_v53, %s6032_s15  ;;  %v1154_v19 = vshrl.u32 %v1082_v9, 16  ;;  %v1157_v27 = vshll.u32 %v1082_v9, 16  ;;  %v1163_v47 = vshll.u32 %v7219_v56, 16  ;;  %v1167_v41 = vshrl.u32 %v7219_v56, 16 }
 0x146   : > { %2318 = vrot.lane.b32.xlu0 %v4957_v60, %s6031_s9  ;;  %v3473_v10 = vrot.slane %v3472_v20, 4  ;;  %v1961_v46 = vsel %vm6932_vm2, %v1959_v18, %v1960_v22  ;;  %v1173_v49 = vshll.u32 %v7226_v1, 16  ;;  %v5117_v45 = vrot.slane %v5109_v0, 9  ;;  %5731 = vmatpush3.bf16.msra.mxu0 %v2538_v36 }
 0x147   : > { %v4965_v21 = vcombine.low %v1958_v37, %v1961_v46  ;;  %v1156_v50 = vrot.slane %v1154_v19, 4  ;;  %v1159_v6 = vrot.slane %v1157_v27, 5  ;;  %v1165_v55 = vrot.slane %v1163_v47, 5  ;;  %v2539_v37 = vld [vmem:[#allocation2 + $0x28] sm:$0xff]  ;;  %v5024_v19 = vld [vmem:[%s6930_s11 + $0xf0] sm:$0xe] }
 0x148   : > { %v3478_v34 = vsel %vm6981_vm5, %v3473_v10, %v3477_v57  ;;  %v1169_v30 = vrot.slane %v1167_v41, 4  ;;  %v1175_v35 = vrot.slane %v1173_v49, 5  ;;  %v3664_v4 = vrot.slane %v7161_v61, 5  ;;  %v4235_v57 = vld [vmem:[#allocation2 + $0x58] sm:$0xff]  ;;  %5732 = vmatprep.subr.bf16.mxu0 %v2539_v37  ;;  %v4236_v27 = vld [vmem:[#allocation2 + $0x60] sm:$0xff]  ;;  %v2540_v49 = vld [vmem:[#allocation2 + $0x30] sm:$0xff] }
 0x149   : > { %4063 = vrot.lane.b32.xlu1 %v5188_v51, %s6032_s15  ;;  %v5181_v39 = vcombine.low %v3468_v52, %v3478_v34  ;;  %v1160_v29 = vor.u32 %v1159_v6, %v1156_v50  ;;  %v3667_v13 = vrot.slane %v7202_v11, 5  ;;  %v2866_v44 = vshrl.u32 %v5002_v23, 16  ;;  %v1299_v11 = vld [vmem:[%s6930_s11 + $0x18] sm:$0xe]  ;;  %5760 = vmatprep.subr.bf16.mxu1 %v4235_v57  ;;  %v5004_v6 = vld [vmem:[%s6930_s11 + $0xfc] sm:$0xf] }
 0x14a   : > { %v1170_v25 = vor.u32 %v1169_v30, %v1165_v55  ;;  %v3665_v53 = vsel %vm6932_vm2, %v5117_v45, %v3664_v4  ;;  %v3666_v59 = vrot.slane %v3664_v4, 4  ;;  %v2869_v15 = vshll.u32 %v5002_v23, 16  ;;  %5761 = vmatpush3.bf16.msra.mxu1 %v4235_v57  ;;  %5733 = vmatpush3.bf16.msra.mxu0 %v2539_v37 }
 0x14b   : > { %4025 = vrot.lane.b32.xlu0 %v5181_v39, %s6031_s9  ;;  %v1161_v61 = vrot.slane %v1160_v29, 4  ;;  %v2868_v63 = vrot.slane %v2866_v44, 4  ;;  %v2875_v12 = vshll.u32 %v7243_v2, 16  ;;  %v2879_v32 = vshrl.u32 %v7243_v2, 16  ;;  %5762 = vmatprep.subr.bf16.mxu1 %v4236_v27 }
 0x14c   : > { %v1171_v14 = vrot.slane %v1170_v25, 4  ;;  %v3668_v38 = vsel %vm6932_vm2, %v3666_v59, %v3667_v13  ;;  %v2871_v31 = vrot.slane %v2869_v15, 5  ;;  %v2885_v33 = vshll.u32 %v7248_v8, 16  ;;  %5734 = vmatprep.subr.bf16.mxu0 %v2540_v49  ;;  %v7294_v25 = vld [vmem:[%s6930_s11 + $0x104] sm:$0x1] }
 0x14d   : > { %2358 = vrot.lane.b32.xlu1 %v4965_v21, %s6032_s15  ;;  %v1166_v40 = vsel %vm6981_vm5, %v1161_v61, %v1165_v55  ;;  %v5189_v16 = vcombine.low %v3665_v53, %v3668_v38  ;;  %v2877_v17 = vrot.slane %v2875_v12, 5  ;;  %v2881_v24 = vrot.slane %v2879_v32, 4  ;;  %v7289_v55 = vld [vmem:[%s6930_s11 + $0x100] sm:$0xf]  ;;  %v4237_v53 = vld [vmem:[#allocation2 + $0x68] sm:$0xff]  ;;  %v2541_v12 = vld [vmem:[#allocation2 + $0x38] sm:$0xff] }
 0x14e   : > { %v1176_v9 = vsel %vm6981_vm5, %v1171_v14, %v1175_v35  ;;  %v2872_v3 = vor.u32 %v2871_v31, %v2868_v63  ;;  %v2887_v58 = vrot.slane %v2885_v33, 5  ;;  %v4810_v43 = vrot.slane %v1299_v11, 9  ;;  %v4822_v14 = vld [vmem:[%s6930_s11 + $0x24] sm:$0xf]  ;;  %5763 = vmatpush3.bf16.msra.mxu1 %v4236_v27  ;;  %5735 = vmatpush3.bf16.msra.mxu0 %v2540_v49 }
 0x14f   : > { %v4910_v22 = vcombine.low %v1166_v40, %v1176_v9  ;;  %v2882_v48 = vor.u32 %v2881_v24, %v2877_v17  ;;  %v1348_v42 = vrot.slane %v7219_v56, 5  ;;  %v1351_v51 = vrot.slane %v7226_v1, 5  ;;  %v7306_v40 = vld [vmem:[%s6930_s11 + $0x28] sm:$0xf]  ;;  %5764 = vmatprep.subr.bf16.mxu1 %v4237_v53  ;;  %5736 = vmatprep.subr.bf16.mxu0 %v2541_v12  ;;  %v1300_v9 = vld [vmem:[%s6930_s11 + $0x24] sm:$0xe] }
 0x150   : > { %v2873_v0 = vrot.slane %v2872_v3, 4  ;;  %v1178_v60 = vshrl.u32 %v1084_v7, 16  ;;  %v1181_v52 = vshll.u32 %v1084_v7, 16  ;;  %v1187_v20 = vshll.u32 %v7264_v28, 16 }
 0x151   : > { %2064 = vrot.lane.b32.xlu0 %v4910_v22, %s6027_s25  ;;  %4065 = vrot.lane.b32.xlu1 %v5189_v16, %s6032_s15  ;;  %v2883_v18 = vrot.slane %v2882_v48, 4  ;;  %v1349_v56 = vsel %vm6932_vm2, %v4810_v43, %v1348_v42  ;;  %v1350_v1 = vrot.slane %v1348_v42, 4  ;;  %v1191_v54 = vshrl.u32 %v7264_v28, 16  ;;  %v5045_v48 = vld [vmem:[%s6930_s11 + $0xfc] sm:$0xf]  ;;  %v4238_v42 = vld [vmem:[#allocation2 + $0x70] sm:$0xff] }
 0x152   : > { %v2878_v47 = vsel %vm6981_vm5, %v2873_v0, %v2877_v17  ;;  %v1180_v41 = vrot.slane %v1178_v60, 4  ;;  %v1183_v10 = vrot.slane %v1181_v52, 5  ;;  %v1189_v46 = vrot.slane %v1187_v20, 5  ;;  %v7317_v60 = vld [vmem:[%s6930_s11 + $0x100] sm:$0xf]  ;;  %5765 = vmatpush3.bf16.msra.mxu1 %v4237_v53  ;;  %5737 = vmatpush3.bf16.msra.mxu0 %v2541_v12 }
 0x153   : > { %v2888_v45 = vsel %vm6981_vm5, %v2883_v18, %v2887_v58  ;;  %v1352_v23 = vsel %vm6932_vm2, %v1350_v1, %v1351_v51  ;;  %v1193_v21 = vrot.slane %v1191_v54, 4  ;;  %v1197_v50 = vshll.u32 %v7271_v5, 16  ;;  %v5025_v1 = vld [vmem:[%s6930_s11 + $0xfc] sm:$0xe]  ;;  %5766 = vmatprep.subr.bf16.mxu1 %v4238_v42  ;;  %v7345_v53 = vld [vmem:[%s6930_s11 + $0x34] sm:$0xf] }
 0x154   : > { %v5134_v34 = vcombine.low %v2878_v47, %v2888_v45  ;;  %v4918_v30 = vcombine.low %v1349_v56, %v1352_v23  ;;  %v1184_v35 = vor.u32 %v1183_v10, %v1180_v41  ;;  %v5032_v4 = vrot.slane %v5024_v19, 9  ;;  %v4239_v41 = vld [vmem:[#allocation2 + $0x78] sm:$0xff] }
 0x155   : > { %v1194_v39 = vor.u32 %v1193_v21, %v1189_v46  ;;  %v1199_v29 = vrot.slane %v1197_v50, 5  ;;  %v3057_v13 = vrot.slane %v7243_v2, 5  ;;  %v3060_v44 = vrot.slane %v7248_v8, 5  ;;  %v7334_v50 = vld [vmem:[%s6930_s11 + $0x2c] sm:$0x1] }
 0x156   : > { %3771 = vrot.lane.b32.xlu0 %v5134_v34, %s6027_s25  ;;  %2104 = vrot.lane.b32.xlu1 %v4918_v30, %s6025_s12  ;;  %v1185_v59 = vrot.slane %v1184_v35, 4  ;;  %v2890_v15 = vshrl.u32 %v5004_v6, 16  ;;  %v2893_v61 = vshll.u32 %v5004_v6, 16  ;;  %v2899_v63 = vshll.u32 %v7289_v55, 16 }
 0x157   : > { %v1195_v32 = vrot.slane %v1194_v39, 4  ;;  %v3058_v2 = vsel %vm6932_vm2, %v5032_v4, %v3057_v13  ;;  %v3059_v11 = vrot.slane %v3057_v13, 4  ;;  %v2903_v8 = vshrl.u32 %v7289_v55, 16  ;;  %5767 = vmatpush3.bf16.msra.mxu1 %v4238_v42  ;;  %v7338_v4 = vld [vmem:[%s6930_s11 + $0x30] sm:$0xf] }
 0x158   : > { %v1190_v38 = vsel %vm6981_vm5, %v1185_v59, %v1189_v46  ;;  %v2892_v31 = vrot.slane %v2890_v15, 4  ;;  %v2895_v33 = vrot.slane %v2893_v61, 5  ;;  %v2901_v36 = vrot.slane %v2899_v63, 5  ;;  %5768 = vmatprep.subr.bf16.mxu1 %v4239_v41 }
 0x159   : > { %v1200_v16 = vsel %vm6981_vm5, %v1195_v32, %v1199_v29  ;;  %v3061_v17 = vsel %vm6932_vm2, %v3059_v11, %v3060_v44  ;;  %v2905_v24 = vrot.slane %v2903_v8, 4  ;;  %v2909_v7 = vshll.u32 %v7294_v25, 16 }
 0x15a   : > { %v4911_v3 = vcombine.low %v1190_v38, %v1200_v16  ;;  %v5142_v58 = vcombine.low %v3058_v2, %v3061_v17  ;;  %v2896_v43 = vor.u32 %v2895_v33, %v2892_v31  ;;  %v1465_v22 = vshrl.u32 %v4822_v14, 16  ;;  %v7357_v38 = vld [vmem:[%s6930_s11 + $0x104] sm:$0x1]  ;;  %v5047_v17 = vld [vmem:[%s6930_s11 + $0x108] sm:$0xf] }
 0x15b   : > { %v2906_v51 = vor.u32 %v2905_v24, %v2901_v36  ;;  %v2911_v57 = vrot.slane %v2909_v7, 5  ;;  %v1468_v37 = vshll.u32 %v4822_v14, 16  ;;  %v1478_v0 = vshrl.u32 %v7306_v40, 16  ;;  %5769 = vmatpush3.bf16.msra.mxu1 %v4239_v41  ;;  %v7365_v24 = vld [vmem:[%s6930_s11 + $0x10c] sm:$0xf] }
 0x15c   : > { %2066 = vrot.lane.b32.xlu0 %v4911_v3, %s6027_s25  ;;  %3811 = vrot.lane.b32.xlu1 %v5142_v58, %s6025_s12  ;;  %v2897_v52 = vrot.slane %v2896_v43, 4  ;;  %v1467_v20 = vrot.slane %v1465_v22, 4  ;;  %v4926_v18 = vcombine.low %v4822_v14, %v7306_v40  ;;  %v4811_v56 = vrot.slane %v1300_v9, 9  ;;  %v4844_v43 = vld [vmem:[%s6930_s11 + $0x24] sm:$0xe] }
 0x15d   : > { %v2907_v54 = vrot.slane %v2906_v51, 4  ;;  %v1470_v19 = vrot.slane %v1468_v37, 5  ;;  %v1355_v27 = vrot.slane %v7264_v28, 5  ;;  %v1358_v47 = vrot.slane %v7271_v5, 5 }
 0x15e   : > { %v2902_v10 = vsel %vm6981_vm5, %v2897_v52, %v2901_v36  ;;  %v3173_v46 = vshrl.u32 %v5045_v48, 16  ;;  %v3176_v49 = vshll.u32 %v5045_v48, 16  ;;  %v3186_v45 = vshrl.u32 %v7317_v60, 16 }
 0x15f   : > { %v2912_v23 = vsel %vm6981_vm5, %v2907_v54, %v2911_v57  ;;  %v1356_v21 = vsel %vm6932_vm2, %v4811_v56, %v1355_v27  ;;  %v1357_v28 = vrot.slane %v1355_v27, 4  ;;  %v5150_v5 = vcombine.low %v5045_v48, %v7317_v60  ;;  %v7376_v54 = vld [vmem:[%s6930_s11 + $0x38] sm:$0x1] }
 0x160   : > { %v5135_v6 = vcombine.low %v2902_v10, %v2912_v23  ;;  %2152 = vrot.lane.b32.xlu1 %v4926_v18, %s6026_s13  ;;  %v3175_v34 = vrot.slane %v3173_v46, 4  ;;  %v3178_v30 = vrot.slane %v3176_v49, 5  ;;  %v5033_v35 = vrot.slane %v5025_v1, 9  ;;  %v5067_v10 = vld [vmem:[%s6930_s11 + $0xfc] sm:$0xe] }
 0x161   : > { %v1359_v39 = vsel %vm6932_vm2, %v1357_v28, %v1358_v47  ;;  %v3064_v29 = vrot.slane %v7289_v55, 5  ;;  %v3067_v13 = vrot.slane %v7294_v25, 5  ;;  %v1471_v44 = vor.u32 %v1470_v19, %v1467_v20 }
 0x162   : > { %3773 = vrot.lane.b32.xlu0 %v5135_v6, %s6027_s25  ;;  %v4919_v59 = vcombine.low %v1356_v21, %v1359_v39  ;;  %v1474_v15 = vshll.u32 %v7306_v40, 16  ;;  %v1480_v61 = vrot.slane %v1478_v0, 4  ;;  %v1484_v63 = vshll.u32 %v7334_v50, 16 }
 0x163   : > { %v3065_v12 = vsel %vm6932_vm2, %v5033_v35, %v3064_v29  ;;  %v3066_v55 = vrot.slane %v3064_v29, 4  ;;  %v1472_v32 = vrot.slane %v1471_v44, 4  ;;  %v1489_v25 = vshrl.u32 %v7338_v4, 16 }
 0x164   : > { %3859 = vrot.lane.b32.xlu1 %v5150_v5, %s6026_s13  ;;  %v1476_v2 = vrot.slane %v1474_v15, 5  ;;  %v1486_v11 = vrot.slane %v1484_v63, 5  ;;  %v1492_v8 = vshll.u32 %v7338_v4, 16  ;;  %v1502_v14 = vshrl.u32 %v7345_v53, 16  ;;  %v7402_v63 = vld [vmem:[%s6930_s11 + $0x30] sm:$0xf] }
 0x165   : > { %v3068_v31 = vsel %vm6932_vm2, %v3066_v55, %v3067_v13  ;;  %v1491_v33 = vrot.slane %v1489_v25, 4  ;;  %v4927_v36 = vcombine.low %v7338_v4, %v7345_v53  ;;  %v3179_v16 = vor.u32 %v3178_v30, %v3175_v34 }
 0x166   : > { %2106 = vrot.lane.b32.xlu0 %v4919_v59, %s6025_s12  ;;  %v5143_v7 = vcombine.low %v3065_v12, %v3068_v31  ;;  %v1477_v9 = vsel %vm6981_vm5, %v1472_v32, %v1476_v2  ;;  %v1481_v3 = vor.u32 %v1480_v61, %v1476_v2  ;;  %v1494_v58 = vrot.slane %v1492_v8, 5  ;;  %v7399_v61 = vld [vmem:[%s6930_s11 + $0x110] sm:$0x1] }
 0x167   : > { %v3180_v22 = vrot.slane %v3179_v16, 4  ;;  %v3182_v48 = vshll.u32 %v7317_v60, 16  ;;  %v3188_v42 = vrot.slane %v3186_v45, 4  ;;  %v3192_v51 = vshll.u32 %v7357_v38, 16 }
 0x168   : > { %v1482_v57 = vrot.slane %v1481_v3, 4  ;;  %v3197_v37 = vshrl.u32 %v5047_v17, 16  ;;  %v3200_v0 = vshll.u32 %v5047_v17, 16  ;;  %v3210_v52 = vshrl.u32 %v7365_v24, 16 }
 0x169   : > { %v3184_v20 = vrot.slane %v3182_v48, 5  ;;  %v3194_v18 = vrot.slane %v3192_v51, 5  ;;  %v5151_v56 = vcombine.low %v5047_v17, %v7365_v24  ;;  %v4852_v1 = vrot.slane %v4844_v43, 9 }
 0x16a   : > { %3813 = vrot.lane.b32.xlu0 %v5143_v7, %s6025_s12  ;;  %v1487_v19 = vsel %vm6981_vm5, %v1482_v57, %v1486_v11  ;;  %v3199_v27 = vrot.slane %v3197_v37, 4  ;;  %v3202_v47 = vrot.slane %v3200_v0, 5  ;;  %v1656_v41 = vrot.slane %v7306_v40, 5  ;;  %v7427_v37 = vld [vmem:[%s6930_s11 + $0x10c] sm:$0xf] }
 0x16b   : > { %v4934_v46 = vcombine.low %v1477_v9, %v1487_v19  ;;  %v3185_v49 = vsel %vm6981_vm5, %v3180_v22, %v3184_v20  ;;  %v3189_v45 = vor.u32 %v3188_v42, %v3184_v20  ;;  %v1659_v23 = vrot.slane %v7334_v50, 5  ;;  %v4845_v9 = vld [vmem:[%s6930_s11 + $0x30] sm:$0xe]  ;;  %v7424_v22 = vld [vmem:[%s6930_s11 + $0x108] sm:$0xf] }
 0x16c   : > { %v1657_v21 = vsel %vm6932_vm2, %v4852_v1, %v1656_v41  ;;  %v1658_v28 = vrot.slane %v1656_v41, 4  ;;  %v1495_v5 = vor.u32 %v1494_v58, %v1491_v33  ;;  %v1498_v6 = vshll.u32 %v7345_v53, 16  ;;  %v5068_v0 = vld [vmem:[%s6930_s11 + $0x108] sm:$0xe] }
 0x16d   : > { %2192 = vrot.lane.b32.xlu1 %v4934_v46, %s6028_s27  ;;  %v3190_v40 = vrot.slane %v3189_v45, 4  ;;  %v1504_v34 = vrot.slane %v1502_v14, 4  ;;  %v1508_v30 = vshll.u32 %v7376_v54, 16  ;;  %v5075_v35 = vrot.slane %v5067_v10, 9  ;;  %v7410_v14 = vld [vmem:[%s6930_s11 + $0x34] sm:$0xf] }
 0x16e   : > { %2154 = vrot.lane.b32.xlu0 %v4927_v36, %s6026_s13  ;;  %v1660_v50 = vsel %vm6932_vm2, %v1658_v28, %v1659_v23  ;;  %v1496_v4 = vrot.slane %v1495_v5, 4  ;;  %v1500_v39 = vrot.slane %v1498_v6, 5  ;;  %v3364_v29 = vrot.slane %v7317_v60, 5  ;;  %v7449_v28 = vld [vmem:[%s6930_s11 + $0x38] sm:$0x1] }
 0x16f   : > { %v3195_v13 = vsel %vm6981_vm5, %v3190_v40, %v3194_v18  ;;  %v4942_v44 = vcombine.low %v1657_v21, %v1660_v50  ;;  %v1510_v59 = vrot.slane %v1508_v30, 5  ;;  %v3367_v15 = vrot.slane %v7357_v38, 5  ;;  %v7452_v5 = vld [vmem:[%s6930_s11 + $0x3c] sm:$0xf] }
 0x170   : > { %v5158_v12 = vcombine.low %v3185_v49, %v3195_v13  ;;  %v1501_v55 = vsel %vm6981_vm5, %v1496_v4, %v1500_v39  ;;  %v1505_v32 = vor.u32 %v1504_v34, %v1500_v39  ;;  %v3365_v60 = vsel %vm6932_vm2, %v5075_v35, %v3364_v29  ;;  %v7462_v39 = vld [vmem:[%s6930_s11 + $0x40] sm:$0xf] }
 0x171   : > { %v3366_v25 = vrot.slane %v3364_v29, 4  ;;  %v3203_v2 = vor.u32 %v3202_v47, %v3199_v27  ;;  %v3206_v11 = vshll.u32 %v7365_v24, 16  ;;  %v3212_v8 = vrot.slane %v3210_v52, 4 }
 0x172   : > { %3899 = vrot.lane.b32.xlu1 %v5158_v12, %s6028_s27  ;;  %3861 = vrot.lane.b32.xlu0 %v5151_v56, %s6026_s13  ;;  %v1506_v38 = vrot.slane %v1505_v32, 4  ;;  %v3216_v31 = vshll.u32 %v7399_v61, 16  ;;  %v1773_v33 = vshrl.u32 %v7402_v63, 16  ;;  %v1776_v36 = vshll.u32 %v7402_v63, 16 }
 0x173   : > { %v3368_v16 = vsel %vm6932_vm2, %v3366_v25, %v3367_v15  ;;  %v3204_v17 = vrot.slane %v3203_v2, 4  ;;  %v3208_v7 = vrot.slane %v3206_v11, 5  ;;  %v1786_v43 = vshrl.u32 %v7410_v14, 16 }
 0x174   : > { %v1511_v3 = vsel %vm6981_vm5, %v1506_v38, %v1510_v59  ;;  %v5166_v58 = vcombine.low %v3365_v60, %v3368_v16  ;;  %v3218_v51 = vrot.slane %v3216_v31, 5  ;;  %v1775_v57 = vrot.slane %v1773_v33, 4  ;;  %v7476_v60 = vld [vmem:[%s6930_s11 + $0x114] sm:$0xf] }
 0x175   : > { %v4935_v48 = vcombine.low %v1501_v55, %v1511_v3  ;;  %v3213_v42 = vor.u32 %v3212_v8, %v3208_v7  ;;  %v1778_v52 = vrot.slane %v1776_v36, 5  ;;  %v4853_v20 = vrot.slane %v4845_v9, 9 }
 0x176   : > { %2232 = vrot.lane.b32.xlu1 %v4942_v44, %s6029_s29  ;;  %v1663_v18 = vrot.slane %v7345_v53, 5  ;;  %v1666_v56 = vrot.slane %v7376_v54, 5  ;;  %v3209_v1 = vsel %vm6981_vm5, %v3204_v17, %v3208_v7  ;;  %v3480_v27 = vshrl.u32 %v7424_v22, 16  ;;  %v7464_v29 = vpop.permute.xlu0 %2102  ;;  %v7487_v17 = vld [vmem:[%s6930_s11 + $0x118] sm:$0xf] }
 0x177   : > { %2194 = vrot.lane.b32.xlu0 %v4935_v48, %s6028_s27  ;;  %v3214_v19 = vrot.slane %v3213_v42, 4  ;;  %v3483_v47 = vshll.u32 %v7424_v22, 16  ;;  %v4950_v41 = vcombine.low %v7402_v63, %v7410_v14  ;;  %v3493_v53 = vshrl.u32 %v7427_v37, 16  ;;  %v7441_v49 = vpop.permute.xlu1 %2100 }
 0x178   : > { %v1665_v10 = vrot.slane %v1663_v18, 4  ;;  %v5076_v46 = vrot.slane %v5068_v0, 9  ;;  %v1664_v45 = vsel %vm6932_vm2, %v4853_v20, %v1663_v18  ;;  %v3482_v23 = vrot.slane %v3480_v27, 4 }
 0x179   : > { %v3219_v54 = vsel %vm6981_vm5, %v3214_v19, %v3218_v51  ;;  %v3371_v21 = vrot.slane %v7365_v24, 5  ;;  %v3374_v34 = vrot.slane %v7399_v61, 5  ;;  %v1779_v30 = vor.u32 %v1778_v52, %v1775_v57  ;;  %v7470_v61 = vld [vmem:[%s6930_s11 + $0x110] sm:$0x1] }
 0x17a   : > { %3939 = vrot.lane.b32.xlu1 %v5166_v58, %s6029_s29  ;;  %v5159_v6 = vcombine.low %v3209_v1, %v3219_v54  ;;  %v1667_v40 = vsel %vm6932_vm2, %v1665_v10, %v1666_v56  ;;  %v3485_v35 = vrot.slane %v3483_v47, 5  ;;  %v1782_v4 = vshll.u32 %v7410_v14, 16  ;;  %v7503_v47 = vld [vmem:[%s6930_s11 + $0x44] sm:$0x1] }
 0x17b   : > { %v3372_v50 = vsel %vm6932_vm2, %v5076_v46, %v3371_v21  ;;  %v3373_v24 = vrot.slane %v3371_v21, 4  ;;  %v4943_v13 = vcombine.low %v1664_v45, %v1667_v40  ;;  %v1788_v44 = vrot.slane %v1786_v43, 4  ;;  %v7482_v38 = vpop.permute.xlu1 %3807  ;;  %v4886_v43 = vld [vmem:[%s6930_s11 + $0x30] sm:$0xe] }
 0x17c   : > { %3901 = vrot.lane.b32.xlu0 %v5159_v6, %s6028_s27  ;;  %v1792_v59 = vshll.u32 %v7449_v28, 16  ;;  %v1797_v15 = vshrl.u32 %v7452_v5, 16  ;;  %v1780_v12 = vrot.slane %v1779_v30, 4  ;;  %v1784_v55 = vrot.slane %v1782_v4, 5 }
 0x17d   : > { %v3375_v63 = vsel %vm6932_vm2, %v3373_v24, %v3374_v34  ;;  %v1800_v32 = vshll.u32 %v7452_v5, 16  ;;  %v5174_v25 = vcombine.low %v7424_v22, %v7427_v37  ;;  %v1810_v8 = vshrl.u32 %v7462_v39, 16  ;;  %v5110_v34 = vld [vmem:[%s6930_s11 + $0x108] sm:$0xe] }
 0x17e   : > { %2280 = vrot.lane.b32.xlu1 %v4950_v41, %s6030_s7  ;;  %v5167_v2 = vcombine.low %v3372_v50, %v3375_v63  ;;  %v1794_v11 = vrot.slane %v1792_v59, 5  ;;  %v1789_v31 = vor.u32 %v1788_v44, %v1784_v55  ;;  %v1799_v33 = vrot.slane %v1797_v15, 4  ;;  %v5924_v59 = vld [vmem:[%s6930_s11 + $0x4] sm:$0xf]  ;;  %v5925_v15 = vld [vmem:[%s6930_s11] sm:$0xf] }
 0x17f   : > { %v4951_v36 = vcombine.low %v7452_v5, %v7462_v39  ;;  %v3486_v16 = vor.u32 %v3485_v35, %v3482_v23  ;;  %v3489_v7 = vshll.u32 %v7427_v37, 16  ;;  %v3495_v9 = vrot.slane %v3493_v53, 4  ;;  %v7507_v54 = vpop.permute.xlu1 %2148 }
 0x180   : > { %2234 = vrot.lane.b32.xlu0 %v4943_v13, %s6029_s29  ;;  %v3499_v3 = vshll.u32 %v7470_v61, 16  ;;  %v3504_v58 = vshrl.u32 %v7476_v60, 16  ;;  %v1785_v22 = vsel %vm6981_vm5, %v1780_v12, %v1784_v55  ;;  %v1790_v48 = vrot.slane %v1789_v31, 4  ;;  %v7529_v12 = vld [vmem:[%s6930_s11 + $0x11c] sm:$0x1] }
 0x181   : > { %v1802_v42 = vrot.slane %v1800_v32, 5  ;;  %v3507_v51 = vshll.u32 %v7476_v60, 16  ;;  %v2061_v57 = vpop.permute.xlu0 %2060  ;;  %v3487_v0 = vrot.slane %v3486_v16, 4  ;;  %v3491_v52 = vrot.slane %v3489_v7, 5 }
 0x182   : > { %3987 = vrot.lane.b32.xlu1 %v5174_v25, %s6030_s7  ;;  %v3501_v20 = vrot.slane %v3499_v3, 5  ;;  %v3517_v18 = vshrl.u32 %v7487_v17, 16  ;;  %v1795_v56 = vsel %vm6981_vm5, %v1790_v48, %v1794_v11  ;;  %v3506_v1 = vrot.slane %v3504_v58, 4 }
 0x183   : > { %v4894_v19 = vrot.slane %v4886_v43, 9  ;;  %v1964_v27 = vrot.slane %v7410_v14, 5  ;;  %v4958_v41 = vcombine.low %v1785_v22, %v1795_v56  ;;  %v3496_v10 = vor.u32 %v3495_v9, %v3491_v52  ;;  %v4887_v43 = vld [vmem:[%s6930_s11 + $0x3c] sm:$0xe]  ;;  %v7553_v56 = vld [vmem:[%s6930_s11 + $0x34] sm:$0xf] }
 0x184   : > { %3941 = vrot.lane.b32.xlu0 %v5167_v2, %s6029_s29  ;;  %v3509_v53 = vrot.slane %v3507_v51, 5  ;;  %v1967_v46 = vrot.slane %v7449_v28, 5  ;;  %v1803_v21 = vor.u32 %v1802_v42, %v1799_v33  ;;  %v1806_v14 = vshll.u32 %v7462_v39, 16  ;;  %v1086_v42 = vld [vmem:[%s6930_s11 + $0x30] sm:$0xf] }
 0x185   : > { %v1965_v45 = vsel %vm6932_vm2, %v4894_v19, %v1964_v27  ;;  %v1966_v23 = vrot.slane %v1964_v27, 4  ;;  %v3492_v5 = vsel %vm6981_vm5, %v3487_v0, %v3491_v52  ;;  %v3497_v6 = vrot.slane %v3496_v10, 4  ;;  %v7521_v4 = vpop.permute.xlu0 %3767 }
 0x186   : > { %2320 = vrot.lane.b32.xlu1 %v4958_v41, %s6031_s9  ;;  %v1812_v40 = vrot.slane %v1810_v8, 4  ;;  %v1816_v28 = vshll.u32 %v7503_v47, 16  ;;  %v5175_v30 = vcombine.low %v7476_v60, %v7487_v17  ;;  %v1804_v50 = vrot.slane %v1803_v21, 4 }
 0x187   : > { %v1968_v35 = vsel %vm6932_vm2, %v1966_v23, %v1967_v46  ;;  %v1808_v24 = vrot.slane %v1806_v14, 5  ;;  %v3502_v13 = vsel %vm6981_vm5, %v3497_v6, %v3501_v20  ;;  %v4900_v63 = vcombine.low %v5925_v15, %v5924_v59  ;;  %v5006_v59 = vld [vmem:[%s6930_s11 + $0x108] sm:$0xf] }
 0x188   : > { %2282 = vrot.lane.b32.xlu0 %v4951_v36, %s6030_s7  ;;  %v4966_v44 = vcombine.low %v1965_v45, %v1968_v35  ;;  %v5182_v55 = vcombine.low %v3492_v5, %v3502_v13  ;;  %v1818_v60 = vrot.slane %v1816_v28, 5  ;;  %v5118_v25 = vrot.slane %v5110_v34, 9  ;;  %v7564_v45 = vld [vmem:[%s6930_s11 + $0x38] sm:$0x1]  ;;  %v5111_v28 = vld [vmem:[%s6930_s11 + $0x114] sm:$0xe] }
 0x189   : > { %v1813_v32 = vor.u32 %v1812_v40, %v1808_v24  ;;  %v3671_v2 = vrot.slane %v7427_v37, 5  ;;  %v3674_v11 = vrot.slane %v7470_v61, 5  ;;  %v3510_v8 = vor.u32 %v3509_v53, %v3506_v1 }
 0x18a   : > { %v3513_v31 = vshll.u32 %v7487_v17, 16  ;;  %v7534_v33 = vpop.permute.xlu1 %2062  ;;  %4027 = vrot.lane.b32.xlu1 %v5182_v55, %s6031_s9  ;;  %v1809_v36 = vsel %vm6981_vm5, %v1804_v50, %v1808_v24  ;;  %v3519_v7 = vrot.slane %v3517_v18, 4  ;;  %v3523_v9 = vshll.u32 %v7529_v12, 16 }
 0x18b   : > { %v1814_v16 = vrot.slane %v1813_v32, 4  ;;  %v3672_v37 = vsel %vm6932_vm2, %v5118_v25, %v3671_v2  ;;  %v3673_v61 = vrot.slane %v3671_v2, 4  ;;  %v3511_v3 = vrot.slane %v3510_v8, 4  ;;  %v7586_v25 = vld [vmem:[%s6930_s11 + $0x10c] sm:$0xf] }
 0x18c   : > { %3989 = vrot.lane.b32.xlu0 %v5175_v30, %s6030_s7  ;;  %v3515_v58 = vrot.slane %v3513_v31, 5  ;;  %v2375_v48 = vsel %vm2372_vm6, %v4900_v63, %v2061_v57  ;;  %v3525_v18 = vrot.slane %v3523_v9, 5  ;;  %v4895_v27 = vrot.slane %v4887_v43, 9  ;;  %v5927_v8 = vld [vmem:[%s6930_s11 + $0xd8] sm:$0xf] }
 0x18d   : > { %v1819_v22 = vsel %vm6981_vm5, %v1814_v16, %v1818_v60  ;;  %v7548_v51 = vpop.permute.xlu0 %3769  ;;  %v3675_v52 = vsel %vm6932_vm2, %v3673_v61, %v3674_v11  ;;  %v1971_v10 = vrot.slane %v7462_v39, 5  ;;  %v1974_v53 = vrot.slane %v7503_v47, 5  ;;  %v5926_v11 = vld [vmem:[%s6930_s11 + $0xdc] sm:$0xf] }
 0x18e   : > { %v4959_v0 = vcombine.low %v1809_v36, %v1819_v22  ;;  %v3520_v20 = vor.u32 %v3519_v7, %v3515_v58  ;;  %v7555_v1 = vpop.permute.xlu1 %3855  ;;  %2360 = vrot.lane.b32.xlu1 %v4966_v44, %s6032_s15  ;;  %v5190_v19 = vcombine.low %v3672_v37, %v3675_v52  ;;  %v3516_v57 = vsel %vm6981_vm5, %v3511_v3, %v3515_v58 }
 0x18f   : > { %v1202_v46 = vshrl.u32 %v1086_v42, 16  ;;  %v1205_v23 = vshll.u32 %v1086_v42, 16  ;;  %v1211_v21 = vshll.u32 %v7553_v56, 16  ;;  %v1215_v14 = vshrl.u32 %v7553_v56, 16 }
 0x190   : > { %2322 = vrot.lane.b32.xlu0 %v4959_v0, %s6031_s9  ;;  %v3521_v41 = vrot.slane %v3520_v20, 4  ;;  %v1972_v39 = vsel %vm6932_vm2, %v4895_v27, %v1971_v10  ;;  %v1973_v40 = vrot.slane %v1971_v10, 4  ;;  %v2399_v24 = vsel %vm2397_vm7, %v2375_v48, %v7441_v49  ;;  %v1301_v0 = vld [vmem:[%s6930_s11 + $0x30] sm:$0xe] }
 0x191   : > { %v7568_v5 = vpop.permute.xlu0 %3809  ;;  %v1204_v47 = vrot.slane %v1202_v46, 4  ;;  %v1207_v30 = vrot.slane %v1205_v23, 5  ;;  %v1213_v35 = vrot.slane %v1211_v21, 5  ;;  %v1217_v50 = vrot.slane %v1215_v14, 4  ;;  %v1088_v23 = vld [vmem:[%s6930_s11 + $0x3c] sm:$0xf] }
 0x192   : > { %v3526_v6 = vsel %vm6981_vm5, %v3521_v41, %v3525_v18  ;;  %4067 = vrot.lane.b32.xlu1 %v5190_v19, %s6032_s15  ;;  %v1975_v13 = vsel %vm6932_vm2, %v1973_v40, %v1974_v53  ;;  %v1221_v44 = vshll.u32 %v7564_v45, 16  ;;  %v5119_v60 = vrot.slane %v5111_v28, 9  ;;  %v7622_v21 = vld [vmem:[%s6930_s11 + $0x40] sm:$0xf]  ;;  %v5928_v14 = vld [vmem:[%s6930_s11 + $0x10] sm:$0xf] }
 0x193   : > { %v5183_v34 = vcombine.low %v3516_v57, %v3526_v6  ;;  %v4967_v63 = vcombine.low %v1972_v39, %v1975_v13  ;;  %v1208_v55 = vor.u32 %v1207_v30, %v1204_v47  ;;  %v1218_v32 = vor.u32 %v1217_v50, %v1213_v35  ;;  %v5929_v6 = vld [vmem:[%s6930_s11 + $0xc] sm:$0xf]  ;;  %v5930_v40 = vld [vmem:[%s6930_s11 + $0xe4] sm:$0xf]  ;;  %v5931_v47 = vld [vmem:[%s6930_s11 + $0xe8] sm:$0xf] }
 0x194   : > { %v7582_v15 = vpop.permute.xlu1 %2188  ;;  %v7592_v49 = vsel %vm2414_vm8, %v2399_v24, %v7507_v54  ;;  %v5124_v31 = vcombine.low %v5927_v8, %v5926_v11  ;;  %v1223_v36 = vrot.slane %v1221_v44, 5  ;;  %v3678_v16 = vrot.slane %v7487_v17, 5  ;;  %v7602_v54 = vld [vmem:[%s6930_s11 + $0x110] sm:$0x1]  ;;  %v7633_v44 = vld [vmem:[%s6930_s11 + $0x44] sm:$0x1] }
 0x195   : > { %4029 = vrot.lane.b32.xlu0 %v5183_v34, %s6031_s9  ;;  %v7588_v2 = vpop.permute.xlu0 %2150  ;;  %v1209_v7 = vrot.slane %v1208_v55, 4  ;;  %v1219_v9 = vrot.slane %v1218_v32, 4  ;;  %v3681_v37 = vrot.slane %v7529_v12, 5  ;;  %v2914_v61 = vshrl.u32 %v5006_v59, 16 }
 0x196   : > { %2362 = vrot.lane.b32.xlu1 %v4967_v63, %s6032_s15  ;;  %v3679_v3 = vsel %vm6932_vm2, %v5119_v60, %v3678_v16  ;;  %v3680_v58 = vrot.slane %v3678_v16, 4  ;;  %v2917_v43 = vshll.u32 %v5006_v59, 16  ;;  %v2923_v22 = vshll.u32 %v7586_v25, 16 }
 0x197   : > { %v1214_v17 = vsel %vm6981_vm5, %v1209_v7, %v1213_v35  ;;  %v1224_v48 = vsel %vm6981_vm5, %v1219_v9, %v1223_v36  ;;  %v2916_v42 = vrot.slane %v2914_v61, 4  ;;  %v2927_v12 = vshrl.u32 %v7586_v25, 16 }
 0x198   : > { %v4912_v20 = vcombine.low %v1214_v17, %v1224_v48  ;;  %v3682_v18 = vsel %vm6932_vm2, %v3680_v58, %v3681_v37  ;;  %v2919_v19 = vrot.slane %v2917_v43, 5  ;;  %v2925_v57 = vrot.slane %v2923_v22, 5  ;;  %v5026_v58 = vld [vmem:[%s6930_s11 + $0x108] sm:$0xe] }
 0x199   : > { %v7611_v52 = vpop.permute.xlu0 %3857  ;;  %v4081_v41 = vsel %vm2372_vm6, %v5124_v31, %v7521_v4  ;;  %v5191_v10 = vcombine.low %v3679_v3, %v3682_v18  ;;  %v2929_v53 = vrot.slane %v2927_v12, 4  ;;  %v2933_v46 = vshll.u32 %v7602_v54, 16 }
 0x19a   : > { %v7615_v27 = vpop.permute.xlu1 %3895  ;;  %2068 = vrot.lane.b32.xlu0 %v4912_v20, %s6027_s25  ;;  %v4901_v39 = vcombine.low %v5929_v6, %v5928_v14  ;;  %v5125_v28 = vcombine.low %v5930_v40, %v5931_v47  ;;  %v2920_v34 = vor.u32 %v2919_v19, %v2916_v42  ;;  %v4812_v30 = vrot.slane %v1301_v0, 9  ;;  %v5008_v42 = vld [vmem:[%s6930_s11 + $0x114] sm:$0xf] }
 0x19b   : > { %4069 = vrot.lane.b32.xlu1 %v5191_v10, %s6032_s15  ;;  %v2930_v4 = vor.u32 %v2929_v53, %v2925_v57  ;;  %v2935_v35 = vrot.slane %v2933_v46, 5  ;;  %v1362_v50 = vrot.slane %v7553_v56, 5  ;;  %v1365_v24 = vrot.slane %v7564_v45, 5 }
 0x19c   : > { %v2921_v13 = vrot.slane %v2920_v34, 4  ;;  %v1226_v59 = vshrl.u32 %v1088_v23, 16  ;;  %v1229_v63 = vshll.u32 %v1088_v23, 16  ;;  %v1235_v55 = vshll.u32 %v7622_v21, 16  ;;  %v7674_v23 = vld [vmem:[%s6930_s11 + $0x11c] sm:$0x1] }
 0x19d   : > { %v2931_v60 = vrot.slane %v2930_v4, 4  ;;  %v1363_v11 = vsel %vm6932_vm2, %v4812_v30, %v1362_v50  ;;  %v1364_v8 = vrot.slane %v1362_v50, 4  ;;  %v1239_v56 = vshrl.u32 %v7622_v21, 16  ;;  %v4826_v4 = vld [vmem:[%s6930_s11 + $0x3c] sm:$0xf] }
 0x19e   : > { %v7636_v32 = vpop.permute.xlu1 %2228  ;;  %v2926_v45 = vsel %vm6981_vm5, %v2921_v13, %v2925_v57  ;;  %v1228_v36 = vrot.slane %v1226_v59, 4  ;;  %v1231_v16 = vrot.slane %v1229_v63, 5  ;;  %v1237_v7 = vrot.slane %v1235_v55, 5  ;;  %v7661_v57 = vld [vmem:[%s6930_s11 + $0x118] sm:$0xf] }
 0x19f   : > { %v7641_v31 = vpop.permute.xlu0 %2190  ;;  %v2936_v9 = vsel %vm6981_vm5, %v2931_v60, %v2935_v35  ;;  %v1366_v37 = vsel %vm6932_vm2, %v1364_v8, %v1365_v24  ;;  %v1241_v61 = vrot.slane %v1239_v56, 4  ;;  %v1245_v3 = vshll.u32 %v7633_v44, 16  ;;  %v7691_v59 = vld [vmem:[%s6930_s11 + $0x40] sm:$0xf]  ;;  %v1302_v8 = vld [vmem:[%s6930_s11 + $0x3c] sm:$0xe] }
 0x1a0   : > { %v2378_v43 = vsel %vm2372_vm6, %v4901_v39, %v7534_v33  ;;  %v5136_v22 = vcombine.low %v2926_v45, %v2936_v9  ;;  %v4920_v17 = vcombine.low %v1363_v11, %v1366_v37  ;;  %v1232_v48 = vor.u32 %v1231_v16, %v1228_v36 }
 0x1a1   : > { %v4084_v0 = vsel %vm2372_vm6, %v5125_v28, %v7548_v51  ;;  %v4104_v20 = vsel %vm2397_vm7, %v4081_v41, %v7482_v38  ;;  %v1242_v18 = vor.u32 %v1241_v61, %v1237_v7  ;;  %v1247_v19 = vrot.slane %v1245_v3, 5 }
 0x1a2   : > { %v7654_v12 = vpop.permute.xlu1 %3935  ;;  %3775 = vrot.lane.b32.xlu0 %v5136_v22, %s6027_s25  ;;  %v7666_v33 = vsel %vm2414_vm8, %v4104_v20, %v7555_v1  ;;  %2108 = vrot.lane.b32.xlu1 %v4920_v17, %s6025_s12  ;;  %v1233_v10 = vrot.slane %v1232_v48, 4  ;;  %v5034_v53 = vrot.slane %v5026_v58, 9  ;;  %v3071_v46 = vrot.slane %v7586_v25, 5  ;;  %v5049_v22 = vld [vmem:[%s6930_s11 + $0x114] sm:$0xf] }
 0x1a3   : > { %v1243_v38 = vrot.slane %v1242_v18, 4  ;;  %v3074_v41 = vrot.slane %v7602_v54, 5  ;;  %v2938_v14 = vshrl.u32 %v5008_v42, 16  ;;  %v2941_v6 = vshll.u32 %v5008_v42, 16  ;;  %v7713_v17 = vld [vmem:[%s6930_s11 + $0x118] sm:$0xf] }
 0x1a4   : > { %v7670_v51 = vpop.permute.xlu0 %3897  ;;  %v1238_v1 = vsel %vm6981_vm5, %v1233_v10, %v1237_v7  ;;  %v3072_v39 = vsel %vm6932_vm2, %v5034_v53, %v3071_v46  ;;  %v3073_v40 = vrot.slane %v3071_v46, 4  ;;  %v2947_v25 = vshll.u32 %v7661_v57, 16 }
 0x1a5   : > { %v1248_v54 = vsel %vm6981_vm5, %v1243_v38, %v1247_v19  ;;  %v2940_v28 = vrot.slane %v2938_v14, 4  ;;  %v2943_v34 = vrot.slane %v2941_v6, 5  ;;  %v2951_v30 = vshrl.u32 %v7661_v57, 16 }
 0x1a6   : > { %v7681_v47 = vpop.permute.xlu1 %2276  ;;  %v4913_v35 = vcombine.low %v1238_v1, %v1248_v54  ;;  %v3075_v50 = vsel %vm6932_vm2, %v3073_v40, %v3074_v41  ;;  %v2949_v24 = vrot.slane %v2947_v25, 5  ;;  %v2957_v13 = vshll.u32 %v7674_v23, 16 }
 0x1a7   : > { %v5144_v55 = vcombine.low %v3072_v39, %v3075_v50  ;;  %v2944_v60 = vor.u32 %v2943_v34, %v2940_v28  ;;  %v2953_v11 = vrot.slane %v2951_v30, 4  ;;  %v4106_v56 = vsel %vm2397_vm7, %v4084_v0, %v7568_v5  ;;  %v7745_v28 = vld [vmem:[%s6930_s11 + $0x44] sm:$0x1]  ;;  %v7748_v34 = vld [vmem:[%s6930_s11 + $0x48] sm:$0xf] }
 0x1a8   : > { %v7693_v63 = vpop.permute.xlu0 %2230  ;;  %2070 = vrot.lane.b32.xlu0 %v4913_v35, %s6027_s25  ;;  %v2401_v45 = vsel %vm2397_vm7, %v2378_v43, %v7464_v29  ;;  %v1513_v36 = vshrl.u32 %v4826_v4, 16  ;;  %v1516_v16 = vshll.u32 %v4826_v4, 16  ;;  %v2959_v61 = vrot.slane %v2957_v13, 5 }
 0x1a9   : > { %3815 = vrot.lane.b32.xlu1 %v5144_v55, %s6025_s12  ;;  %v2945_v9 = vrot.slane %v2944_v60, 4  ;;  %v2954_v37 = vor.u32 %v2953_v11, %v2949_v24  ;;  %v4928_v3 = vcombine.low %v4826_v4, %v7691_v59  ;;  %v2433_v5 = vsel %vm2431_vm9, %v7592_v49, %v7582_v15  ;;  %v5027_v15 = vld [vmem:[%s6930_s11 + $0x114] sm:$0xe]  ;;  %v7761_v60 = vld [vmem:[%s6930_s11 + $0x4c] sm:$0xf] }
 0x1aa   : > { %v7701_v7 = vpop.permute.xlu1 %3983  ;;  %v2418_v58 = vsel %vm2414_vm8, %v2401_v45, %v7588_v2  ;;  %v4813_v29 = vrot.slane %v1302_v8, 9  ;;  %v1369_v43 = vrot.slane %v7622_v21, 5  ;;  %v1526_v20 = vshrl.u32 %v7691_v59, 16 }
 0x1ab   : > { %v2950_v42 = vsel %vm6981_vm5, %v2945_v9, %v2949_v24  ;;  %v2955_v0 = vrot.slane %v2954_v37, 4  ;;  %v1372_v18 = vrot.slane %v7633_v44, 5  ;;  %v1515_v49 = vrot.slane %v1513_v36, 4 }
 0x1ac   : > { %v7715_v48 = vpop.permute.xlu0 %3937  ;;  %v1518_v19 = vrot.slane %v1516_v16, 5  ;;  %v1371_v2 = vrot.slane %v1369_v43, 4  ;;  %v1370_v53 = vsel %vm6932_vm2, %v4813_v29, %v1369_v43  ;;  %v3221_v46 = vshrl.u32 %v5049_v22, 16 }
 0x1ad   : > { %v2960_v10 = vsel %vm6981_vm5, %v2955_v0, %v2959_v61  ;;  %2156 = vrot.lane.b32.xlu1 %v4928_v3, %s6026_s13  ;;  %v3224_v38 = vshll.u32 %v5049_v22, 16  ;;  %v5152_v14 = vcombine.low %v5049_v22, %v7713_v17  ;;  %v5035_v6 = vrot.slane %v5027_v15, 9  ;;  %v5051_v3 = vld [vmem:[%s6930_s11 + $0x120] sm:$0xf] }
 0x1ae   : > { %v7722_v21 = vpop.permute.xlu1 %2316  ;;  %v5137_v44 = vcombine.low %v2950_v42, %v2960_v10  ;;  %v1373_v41 = vsel %vm6932_vm2, %v1371_v2, %v1372_v18  ;;  %v4136_v39 = vsel %vm2431_vm9, %v7666_v33, %v7615_v27  ;;  %v4122_v40 = vsel %vm2414_vm8, %v4106_v56, %v7611_v52 }
 0x1af   : > { %v7741_v25 = vsel %vm2448_vm10, %v2433_v5, %v7636_v32  ;;  %v3078_v54 = vrot.slane %v7661_v57, 5  ;;  %v4921_v30 = vcombine.low %v1370_v53, %v1373_v41  ;;  %v3234_v4 = vshrl.u32 %v7713_v17, 16 }
 0x1b0   : > { %v7732_v1 = vpop.permute.xlu0 %2278  ;;  %3777 = vrot.lane.b32.xlu0 %v5137_v44, %s6027_s25  ;;  %v3081_v27 = vrot.slane %v7674_v23, 5  ;;  %v1519_v33 = vor.u32 %v1518_v19, %v1515_v49  ;;  %v1522_v57 = vshll.u32 %v7691_v59, 16  ;;  %v1528_v35 = vrot.slane %v1526_v20, 4  ;;  %v7791_v20 = vld [vmem:[%s6930_s11 + $0x124] sm:$0xf] }
 0x1b1   : > { %3863 = vrot.lane.b32.xlu1 %v5152_v14, %s6026_s13  ;;  %v3079_v52 = vsel %vm6932_vm2, %v5035_v6, %v3078_v54  ;;  %v3080_v32 = vrot.slane %v3078_v54, 4  ;;  %v3223_v24 = vrot.slane %v3221_v46, 4  ;;  %v3226_v13 = vrot.slane %v3224_v38, 5  ;;  %v4846_v38 = vld [vmem:[%s6930_s11 + $0x3c] sm:$0xe] }
 0x1b2   : > { %v1532_v55 = vshll.u32 %v7745_v28, 16  ;;  %v1537_v23 = vshrl.u32 %v7748_v34, 16  ;;  %v2435_v8 = vsel %vm2431_vm9, %v2418_v58, %v7641_v31  ;;  %v1520_v45 = vrot.slane %v1519_v33, 4  ;;  %v7781_v31 = vld [vmem:[%s6930_s11 + $0x11c] sm:$0x1] }
 0x1b3   : > { %v7757_v50 = vpop.permute.xlu1 %4023  ;;  %v3082_v56 = vsel %vm6932_vm2, %v3080_v32, %v3081_v27  ;;  %v1524_v36 = vrot.slane %v1522_v57, 5  ;;  %v7773_v9 = vsel %vm2448_vm10, %v4136_v39, %v7654_v12  ;;  %v7777_v37 = vsel %vm2431_vm9, %v4122_v40, %v7670_v51 }
 0x1b4   : > { %v7764_v11 = vpop.permute.xlu0 %3985  ;;  %2110 = vrot.lane.b32.xlu0 %v4921_v30, %s6025_s12  ;;  %v5145_v16 = vcombine.low %v3079_v52, %v3082_v56  ;;  %v1540_v61 = vshll.u32 %v7748_v34, 16  ;;  %v1534_v58 = vrot.slane %v1532_v55, 5  ;;  %v1550_v29 = vshrl.u32 %v7761_v60, 16 }
 0x1b5   : > { %v1529_v5 = vor.u32 %v1528_v35, %v1524_v36  ;;  %v4929_v43 = vcombine.low %v7748_v34, %v7761_v60  ;;  %v1539_v12 = vrot.slane %v1537_v23, 4  ;;  %v3227_v42 = vor.u32 %v3226_v13, %v3223_v24 }
 0x1b6   : > { %v3230_v51 = vshll.u32 %v7713_v17, 16  ;;  %v3236_v0 = vrot.slane %v3234_v4, 4  ;;  %v1525_v15 = vsel %vm6981_vm5, %v1520_v45, %v1524_v36  ;;  %v3240_v19 = vshll.u32 %v7781_v31, 16  ;;  %v7810_v4 = vld [vmem:[%s6930_s11 + $0x50] sm:$0x1] }
 0x1b7   : > { %v7787_v22 = vpop.permute.xlu1 %2356  ;;  %v1530_v49 = vrot.slane %v1529_v5, 4  ;;  %v3245_v2 = vshrl.u32 %v5051_v3, 16  ;;  %v1542_v10 = vrot.slane %v1540_v61, 5  ;;  %v3228_v53 = vrot.slane %v3227_v42, 4 }
 0x1b8   : > { %v7793_v18 = vpop.permute.xlu0 %2318  ;;  %3817 = vrot.lane.b32.xlu0 %v5145_v16, %s6025_s12  ;;  %v3232_v46 = vrot.slane %v3230_v51, 5  ;;  %v7804_v41 = vsel %vm2448_vm10, %v2435_v8, %v7693_v63  ;;  %v3248_v14 = vshll.u32 %v5051_v3, 16  ;;  %v5153_v6 = vcombine.low %v5051_v3, %v7791_v20 }
 0x1b9   : > { %v1535_v44 = vsel %vm6981_vm5, %v1530_v49, %v1534_v58  ;;  %v3242_v34 = vrot.slane %v3240_v19, 5  ;;  %v3247_v30 = vrot.slane %v3245_v2, 4  ;;  %v4854_v33 = vrot.slane %v4846_v38, 9  ;;  %v4868_v49 = vld [vmem:[%s6930_s11 + $0x48] sm:$0xf] }
 0x1ba   : > { %v4936_v40 = vcombine.low %v1525_v15, %v1535_v44  ;;  %v3237_v54 = vor.u32 %v3236_v0, %v3232_v46  ;;  %v3233_v27 = vsel %vm6981_vm5, %v3228_v53, %v3232_v46  ;;  %v1670_v52 = vrot.slane %v7691_v59, 5 }
 0x1bb   : > { %v7807_v39 = vpop.permute.xlu1 %4063  ;;  %v1673_v63 = vrot.slane %v7745_v28, 5  ;;  %v1543_v35 = vor.u32 %v1542_v10, %v1539_v12  ;;  %v1546_v24 = vshll.u32 %v7761_v60, 16  ;;  %v1552_v13 = vrot.slane %v1550_v29, 4  ;;  %v5069_v28 = vld [vmem:[%s6930_s11 + $0x114] sm:$0xe] }
 0x1bc   : > { %2196 = vrot.lane.b32.xlu1 %v4936_v40, %s6028_s27  ;;  %2158 = vrot.lane.b32.xlu0 %v4929_v43, %s6026_s13  ;;  %v3238_v57 = vrot.slane %v3237_v54, 4  ;;  %v3250_v55 = vrot.slane %v3248_v14, 5  ;;  %v1671_v23 = vsel %vm6932_vm2, %v4854_v33, %v1670_v52  ;;  %v1672_v8 = vrot.slane %v1670_v52, 4  ;;  %v7836_v29 = vld [vmem:[%s6930_s11 + $0x128] sm:$0x1] }
 0x1bd   : > { %v7816_v32 = vpop.permute.xlu0 %4025  ;;  %v1556_v59 = vshll.u32 %v7810_v4, 16  ;;  %v3258_v36 = vshrl.u32 %v7791_v20, 16  ;;  %v1544_v16 = vrot.slane %v1543_v35, 4  ;;  %v1548_v61 = vrot.slane %v1546_v24, 5 }
 0x1be   : > { %v3243_v45 = vsel %vm6981_vm5, %v3238_v57, %v3242_v34  ;;  %v2467_v3 = vsel %vm2465_vm11, %v7741_v25, %v7681_v47  ;;  %v1674_v58 = vsel %vm6932_vm2, %v1672_v8, %v1673_v63  ;;  %vm2482_vm12 = vcmask 228352  }
 0x1bf   : > { %v7825_v56 = vpop.permute.xlu1 %2358  ;;  %v5160_v5 = vcombine.low %v3233_v27, %v3243_v45  ;;  %v4944_v43 = vcombine.low %v1671_v23, %v1674_v58  ;;  %v1553_v12 = vor.u32 %v1552_v13, %v1548_v61  ;;  %v1558_v42 = vrot.slane %v1556_v59, 5  ;;  %v5070_v45 = vld [vmem:[%s6930_s11 + $0x120] sm:$0xe] }
 0x1c0   : > { %3865 = vrot.lane.b32.xlu0 %v5153_v6, %s6026_s13  ;;  %v5077_v51 = vrot.slane %v5069_v28, 9  ;;  %v3378_v0 = vrot.slane %v7713_v17, 5  ;;  %v3381_v15 = vrot.slane %v7781_v31, 5  ;;  %v3251_v47 = vor.u32 %v3250_v55, %v3247_v30  ;;  %v4847_v30 = vld [vmem:[%s6930_s11 + $0x48] sm:$0xe] }
 0x1c1   : > { %3903 = vrot.lane.b32.xlu1 %v5160_v5, %s6028_s27  ;;  %v3254_v25 = vshll.u32 %v7791_v20, 16  ;;  %v1549_v10 = vsel %vm6981_vm5, %v1544_v16, %v1548_v61  ;;  %v1554_v53 = vrot.slane %v1553_v12, 4  ;;  %v3260_v46 = vrot.slane %v3258_v36, 4  ;;  %v7896_v5 = vld [vmem:[%s6930_s11 + $0x124] sm:$0xf] }
 0x1c2   : > { %v3264_v38 = vshll.u32 %v7836_v29, 16  ;;  %v3379_v17 = vsel %vm6932_vm2, %v5077_v51, %v3378_v0  ;;  %v3380_v31 = vrot.slane %v3378_v0, 4  ;;  %v3252_v44 = vrot.slane %v3251_v47, 4  ;;  %v7902_v51 = vld [vmem:[%s6930_s11 + $0x50] sm:$0x1] }
 0x1c3   : > { %v7844_v19 = vpop.permute.xlu0 %2064  ;;  %v7846_v2 = vpop.permute.xlu1 %4065  ;;  %v3256_v14 = vrot.slane %v3254_v25, 5  ;;  %v4168_v6 = vsel %vm2465_vm11, %v7773_v9, %v7701_v7  ;;  %v4154_v40 = vsel %vm2448_vm10, %v7777_v37, %v7715_v48  ;;  %v1559_v54 = vsel %vm6981_vm5, %v1554_v53, %v1558_v42  ;;  %v7871_v37 = vld [vmem:[%s6930_s11 + $0x4c] sm:$0xf] }
 0x1c4   : > { %v1821_v34 = vshrl.u32 %v4868_v49, 16  ;;  %v4937_v27 = vcombine.low %v1549_v10, %v1559_v54  ;;  %v3382_v33 = vsel %vm6932_vm2, %v3380_v31, %v3381_v15  ;;  %v3266_v63 = vrot.slane %v3264_v38, 5  ;;  %v4870_v31 = vld [vmem:[%s6930_s11 + $0x54] sm:$0xf]  ;;  %v7924_v54 = vld [vmem:[%s6930_s11 + $0x58] sm:$0xf] }
 0x1c5   : > { %2236 = vrot.lane.b32.xlu1 %v4944_v43, %s6029_s29  ;;  %v3261_v52 = vor.u32 %v3260_v46, %v3256_v14  ;;  %v2484_v7 = vsel %vm2482_vm12, %v2467_v3, %v7722_v21  ;;  %v2469_v48 = vsel %vm2465_vm11, %v7804_v41, %v7732_v1  ;;  %v5168_v9 = vcombine.low %v3379_v17, %v3382_v33  ;;  %v5092_v1 = vld [vmem:[%s6930_s11 + $0x120] sm:$0xf]  ;;  %v7930_v33 = vld [vmem:[%s6930_s11 + $0x128] sm:$0x1] }
 0x1c6   : > { %v1824_v57 = vshll.u32 %v4868_v49, 16  ;;  %2198 = vrot.lane.b32.xlu0 %v4937_v27, %s6028_s27  ;;  %v3257_v13 = vsel %vm6981_vm5, %v3252_v44, %v3256_v14  ;;  %v4855_v21 = vrot.slane %v4847_v30, 9  ;;  %v1677_v23 = vrot.slane %v7761_v60, 5 }
 0x1c7   : > { %v3262_v55 = vrot.slane %v3261_v52, 4  ;;  %v4184_v41 = vsel %vm2482_vm12, %v4168_v6, %v7757_v50  ;;  %v4170_v8 = vsel %vm2465_vm11, %v4154_v40, %v7764_v11  ;;  %v1823_v59 = vrot.slane %v1821_v34, 4 }
 0x1c8   : > { %v7873_v35 = vpop.permute.xlu0 %3771  ;;  %v7875_v24 = vpop.permute.xlu1 %2104  ;;  %v1680_v28 = vrot.slane %v7810_v4, 5  ;;  %v4952_v16 = vcombine.low %v4868_v49, %v7871_v37  ;;  %v1678_v60 = vsel %vm6932_vm2, %v4855_v21, %v1677_v23  ;;  %v1679_v61 = vrot.slane %v1677_v23, 4 }
 0x1c9   : > { %3943 = vrot.lane.b32.xlu1 %v5168_v9, %s6029_s29  ;;  %v3267_v36 = vsel %vm6981_vm5, %v3262_v55, %v3266_v63  ;;  %v1826_v3 = vrot.slane %v1824_v57, 5  ;;  %v1834_v11 = vshrl.u32 %v7871_v37, 16  ;;  %v3528_v4 = vshrl.u32 %v5092_v1, 16  ;;  %v5094_v57 = vld [vmem:[%s6930_s11 + $0x12c] sm:$0xf] }
 0x1ca   : > { %v5161_v50 = vcombine.low %v3257_v13, %v3267_v36  ;;  %v1681_v58 = vsel %vm6932_vm2, %v1679_v61, %v1680_v28  ;;  %v3531_v43 = vshll.u32 %v5092_v1, 16  ;;  %v5078_v12 = vrot.slane %v5070_v45, 9 }
 0x1cb   : > { %v3385_v42 = vrot.slane %v7791_v20, 5  ;;  %v4945_v0 = vcombine.low %v1678_v60, %v1681_v58  ;;  %v3388_v15 = vrot.slane %v7836_v29, 5  ;;  %vm2499_vm13 = vcmask 261120  }
 0x1cc   : > { %3905 = vrot.lane.b32.xlu0 %v5161_v50, %s6028_s27  ;;  %vm2516_vm14 = vcmask 293888   ;;  %v5176_v49 = vcombine.low %v5092_v1, %v7896_v5  ;;  %v2501_v53 = vsel %vm2499_vm13, %v2484_v7, %v7787_v22  ;;  %v1827_v29 = vor.u32 %v1826_v3, %v1823_v59  ;;  %v4888_v50 = vld [vmem:[%s6930_s11 + $0x48] sm:$0xe] }
 0x1cd   : > { %2284 = vrot.lane.b32.xlu1 %v4952_v16, %s6030_s7  ;;  %v3386_v20 = vsel %vm6932_vm2, %v5078_v12, %v3385_v42  ;;  %v3387_v10 = vrot.slane %v3385_v42, 4  ;;  %5738 = vmatprep.mubr.msk.bf16.mxu0 %vm2516_vm14, %v2501_v53  ;;  %v1830_v46 = vshll.u32 %v7871_v37, 16  ;;  %v1836_v38 = vrot.slane %v1834_v11, 4 }
 0x1ce   : > { %v7906_v47 = vpop.permute.xlu0 %2066  ;;  %v7908_v25 = vpop.permute.xlu1 %3811  ;;  %v1840_v17 = vshll.u32 %v7902_v51, 16  ;;  %v3530_v44 = vrot.slane %v3528_v4, 4  ;;  %v3533_v14 = vrot.slane %v3531_v43, 5  ;;  %v3541_v6 = vshrl.u32 %v7896_v5, 16 }
 0x1cf   : > { %v3389_v40 = vsel %vm6932_vm2, %v3387_v10, %v3388_v15  ;;  %v2486_v22 = vsel %vm2482_vm12, %v2469_v48, %v7793_v18  ;;  %v1828_v30 = vrot.slane %v1827_v29, 4  ;;  %v1832_v27 = vrot.slane %v1830_v46, 5 }
 0x1d0   : > { %2238 = vrot.lane.b32.xlu0 %v4945_v0, %s6029_s29  ;;  %v5169_v34 = vcombine.low %v3386_v20, %v3389_v40  ;;  %v4186_v52 = vsel %vm2482_vm12, %v4170_v8, %v7816_v32  ;;  %v1845_v63 = vshrl.u32 %v4870_v31, 16  ;;  %v1848_v7 = vshll.u32 %v4870_v31, 16 }
 0x1d1   : > { %3991 = vrot.lane.b32.xlu1 %v5176_v49, %s6030_s7  ;;  %v4200_v9 = vsel %vm2499_vm13, %v4184_v41, %v7807_v39  ;;  %v1837_v18 = vor.u32 %v1836_v38, %v1832_v27  ;;  %v1842_v48 = vrot.slane %v1840_v17, 5  ;;  %v1858_v55 = vshrl.u32 %v7924_v54, 16  ;;  %v7965_v49 = vld [vmem:[%s6930_s11 + $0x5c] sm:$0x1] }
 0x1d2   : > { %v7938_v13 = vpop.permute.xlu1 %2152  ;;  %5770 = vmatprep.mubr.msk.bf16.mxu1 %vm2516_vm14, %v4200_v9  ;;  %v2503_v21 = vsel %vm2499_vm13, %v2486_v22, %v7825_v56  ;;  %v3534_v32 = vor.u32 %v3533_v14, %v3530_v44  ;;  %v3537_v1 = vshll.u32 %v7896_v5, 16  ;;  %v3543_v39 = vrot.slane %v3541_v6, 4  ;;  %v7954_v56 = vld [vmem:[%s6930_s11 + $0x130] sm:$0xf]  ;;  %v5112_v6 = vld [vmem:[%s6930_s11 + $0x120] sm:$0xe] }
 0x1d3   : > { %v3547_v41 = vshll.u32 %v7930_v33, 16  ;;  %5739 = vmatmul.mubr.msk.bf16.vlgmr.msra.gmra.mrb[0].mxu0 %vm2516_vm14, %v2503_v21  ;;  %v1833_v8 = vsel %vm6981_vm5, %v1828_v30, %v1832_v27  ;;  %v1838_v59 = vrot.slane %v1837_v18, 4  ;;  %v4953_v28 = vcombine.low %v4870_v31, %v7924_v54  ;;  %v5935_v18 = vld [vmem:[%s6930_s11 + $0xf4] sm:$0xf] }
 0x1d4   : > { %v7944_v23 = vpop.permute.xlu0 %3773  ;;  %3945 = vrot.lane.b32.xlu0 %v5169_v34, %s6029_s29  ;;  %v3552_v45 = vshrl.u32 %v5094_v57, 16  ;;  %v1847_v36 = vrot.slane %v1845_v63, 4  ;;  %v1850_v16 = vrot.slane %v1848_v7, 5  ;;  %v3535_v60 = vrot.slane %v3534_v32, 4  ;;  %v5933_v63 = vld [vmem:[%s6930_s11 + $0x1c] sm:$0xf] }
 0x1d5   : > { %v3539_v61 = vrot.slane %v3537_v1, 5  ;;  %v1843_v3 = vsel %vm6981_vm5, %v1838_v59, %v1842_v48  ;;  %v3549_v11 = vrot.slane %v3547_v41, 5  ;;  %v3555_v58 = vshll.u32 %v5094_v57, 16  ;;  %v7994_v21 = vld [vmem:[%s6930_s11 + $0x134] sm:$0x1] }
 0x1d6   : > { %v3554_v4 = vrot.slane %v3552_v45, 4  ;;  %v4960_v12 = vcombine.low %v1833_v8, %v1843_v3  ;;  %v5177_v0 = vcombine.low %v5094_v57, %v7954_v56  ;;  %v4202_v15 = vsel %vm2499_vm13, %v4186_v52, %v7846_v2  ;;  %v7967_v20 = vpop.permute.xlu1 %3859  ;;  %v5932_v52 = vld [vmem:[%s6930_s11 + $0x18] sm:$0xf]  ;;  %v5934_v57 = vld [vmem:[%s6930_s11 + $0xf0] sm:$0xf] }
 0x1d7   : > { %v3544_v42 = vor.u32 %v3543_v39, %v3539_v61  ;;  %v3540_v10 = vsel %vm6981_vm5, %v3535_v60, %v3539_v61  ;;  %v4896_v53 = vrot.slane %v4888_v50, 9  ;;  %v1978_v29 = vrot.slane %v7871_v37, 5  ;;  %5771 = vmatmul.mubr.msk.bf16.vlgmr.msra.gmra.mrb[0].mxu1 %vm2516_vm14, %v4202_v15  ;;  %v5937_v15 = vld [vmem:[%s6930_s11 + $0x28] sm:$0xf] }
 0x1d8   : > { %v7959_v43 = vpop.permute.xlu0 %2106  ;;  %2286 = vrot.lane.b32.xlu0 %v4953_v28, %s6030_s7  ;;  %v1981_v46 = vrot.slane %v7902_v51, 5  ;;  %2324 = vrot.lane.b32.xlu1 %v4960_v12, %s6031_s9  ;;  %v1851_v38 = vor.u32 %v1850_v16, %v1847_v36  ;;  %v1854_v17 = vshll.u32 %v7924_v54, 16  ;;  %v1860_v31 = vrot.slane %v1858_v55, 4 }
 0x1d9   : > { %v3545_v2 = vrot.slane %v3544_v42, 4  ;;  %v3557_v44 = vrot.slane %v3555_v58, 5  ;;  %v1979_v14 = vsel %vm6932_vm2, %v4896_v53, %v1978_v29  ;;  %v1980_v37 = vrot.slane %v1978_v29, 4  ;;  %v1090_v29 = vld [vmem:[%s6930_s11 + $0x48] sm:$0xf] }
 0x1da   : > { %v1864_v51 = vshll.u32 %v7965_v49, 16  ;;  %v3565_v34 = vshrl.u32 %v7954_v56, 16  ;;  %v1852_v30 = vrot.slane %v1851_v38, 4  ;;  %v1856_v27 = vrot.slane %v1854_v17, 5 }
 0x1db   : > { %v3550_v22 = vsel %vm6981_vm5, %v3545_v2, %v3549_v11  ;;  %v4902_v7 = vcombine.low %v5932_v52, %v5933_v63  ;;  %v5126_v48 = vcombine.low %v5934_v57, %v5935_v18  ;;  %v1982_v55 = vsel %vm6932_vm2, %v1980_v37, %v1981_v46  ;;  %v4889_v11 = vld [vmem:[%s6930_s11 + $0x54] sm:$0xe] }
 0x1dc   : > { %v7981_v40 = vpop.permute.xlu0 %3813  ;;  %v5184_v9 = vcombine.low %v3540_v10, %v3550_v22  ;;  %3993 = vrot.lane.b32.xlu0 %v5177_v0, %s6030_s7  ;;  %v4968_v32 = vcombine.low %v1979_v14, %v1982_v55  ;;  %v1861_v1 = vor.u32 %v1860_v31, %v1856_v27  ;;  %v1866_v39 = vrot.slane %v1864_v51, 5  ;;  %v5936_v0 = vld [vmem:[%s6930_s11 + $0x24] sm:$0xf] }
 0x1dd   : > { %v5120_v41 = vrot.slane %v5112_v6, 9  ;;  %v1857_v59 = vsel %vm6981_vm5, %v1852_v30, %v1856_v27  ;;  %v3685_v28 = vrot.slane %v7896_v5, 5  ;;  %v3688_v45 = vrot.slane %v7930_v33, 5  ;;  %v8035_v6 = vld [vmem:[%s6930_s11 + $0x50] sm:$0x1] }
 0x1de   : > { %4031 = vrot.lane.b32.xlu1 %v5184_v9, %s6031_s9  ;;  %v3558_v36 = vor.u32 %v3557_v44, %v3554_v4  ;;  %v1862_v60 = vrot.slane %v1861_v1, 4  ;;  %v3561_v61 = vshll.u32 %v7954_v56, 16  ;;  %v3567_v50 = vrot.slane %v3565_v34, 4 }
 0x1df   : > { %v7996_v8 = vpop.permute.xlu1 %2192  ;;  %v3571_v3 = vshll.u32 %v7994_v21, 16  ;;  %v2381_v58 = vsel %vm2372_vm6, %v4902_v7, %v7844_v19  ;;  %v3686_v5 = vsel %vm6932_vm2, %v5120_v41, %v3685_v28  ;;  %v3687_v12 = vrot.slane %v3685_v28, 4  ;;  %v5010_v41 = vld [vmem:[%s6930_s11 + $0x120] sm:$0xf] }
 0x1e0   : > { %v8003_v16 = vpop.permute.xlu0 %2154  ;;  %v3559_v33 = vrot.slane %v3558_v36, 4  ;;  %v8014_v4 = vsel %vm2372_vm6, %v5126_v48, %v7873_v35  ;;  %v1867_v42 = vsel %vm6981_vm5, %v1862_v60, %v1866_v39  ;;  %v4903_v10 = vcombine.low %v5936_v0, %v5937_v15  ;;  %v8026_v35 = vld [vmem:[%s6930_s11 + $0x4c] sm:$0xf]  ;;  %v5938_v36 = vld [vmem:[%s6930_s11 + $0xfc] sm:$0xf] }
 0x1e1   : > { %v3563_v53 = vrot.slane %v3561_v61, 5  ;;  %v4961_v19 = vcombine.low %v1857_v59, %v1867_v42  ;;  %v3689_v46 = vsel %vm6932_vm2, %v3687_v12, %v3688_v45  ;;  %v4897_v2 = vrot.slane %v4889_v11, 9  ;;  %v5113_v48 = vld [vmem:[%s6930_s11 + $0x12c] sm:$0xe]  ;;  %v5939_v60 = vld [vmem:[%s6930_s11 + $0x100] sm:$0xf] }
 0x1e2   : > { %2364 = vrot.lane.b32.xlu1 %v4968_v32, %s6032_s15  ;;  %v1985_v38 = vrot.slane %v7924_v54, 5  ;;  %v5192_v44 = vcombine.low %v3686_v5, %v3689_v46  ;;  %v3573_v51 = vrot.slane %v3571_v3, 5  ;;  %v1988_v34 = vrot.slane %v7965_v49, 5  ;;  %v8066_v3 = vld [vmem:[%s6930_s11 + $0x124] sm:$0xf] }
 0x1e3   : > { %v3564_v14 = vsel %vm6981_vm5, %v3559_v33, %v3563_v53  ;;  %v3568_v37 = vor.u32 %v3567_v50, %v3563_v53  ;;  %2326 = vrot.lane.b32.xlu0 %v4961_v19, %s6031_s9  ;;  %v1250_v30 = vshrl.u32 %v1090_v29, 16  ;;  %v1253_v52 = vshll.u32 %v1090_v29, 16  ;;  %v8073_v42 = vld [vmem:[%s6930_s11 + $0x128] sm:$0x1] }
 0x1e4   : > { %v8028_v17 = vpop.permute.xlu1 %3899  ;;  %v8030_v31 = vpop.permute.xlu0 %3861  ;;  %v1986_v54 = vsel %vm6932_vm2, %v4897_v2, %v1985_v38  ;;  %v1987_v22 = vrot.slane %v1985_v38, 4  ;;  %v1259_v63 = vshll.u32 %v8026_v35, 16  ;;  %v1263_v7 = vshrl.u32 %v8026_v35, 16 }
 0x1e5   : > { %v3569_v27 = vrot.slane %v3568_v37, 4  ;;  %v8045_v9 = vsel %vm2397_vm7, %v2381_v58, %v7875_v24  ;;  %v1252_v49 = vrot.slane %v1250_v30, 4  ;;  %v1269_v18 = vshll.u32 %v8035_v6, 16 }
 0x1e6   : > { %4071 = vrot.lane.b32.xlu1 %v5192_v44, %s6032_s15  ;;  %v1989_v57 = vsel %vm6932_vm2, %v1987_v22, %v1988_v34  ;;  %v1255_v39 = vrot.slane %v1253_v52, 5  ;;  %v1261_v24 = vrot.slane %v1259_v63, 5  ;;  %v8061_v28 = vsel %vm2372_vm6, %v4903_v10, %v7906_v47  ;;  %v1303_v22 = vld [vmem:[%s6930_s11 + $0x48] sm:$0xe]  ;;  %v8092_v63 = vld [vmem:[%s6930_s11 + $0x54] sm:$0xf] }
 0x1e7   : > { %v3574_v32 = vsel %vm6981_vm5, %v3569_v27, %v3573_v51  ;;  %v4969_v1 = vcombine.low %v1986_v54, %v1989_v57  ;;  %v5127_v61 = vcombine.low %v5938_v36, %v5939_v60  ;;  %v1265_v50 = vrot.slane %v1263_v7, 4  ;;  %v8095_v7 = vld [vmem:[%s6930_s11 + $0x58] sm:$0xf] }
 0x1e8   : > { %v8052_v55 = vpop.permute.xlu1 %2232  ;;  %v5185_v45 = vcombine.low %v3564_v14, %v3574_v32  ;;  %v1256_v11 = vor.u32 %v1255_v39, %v1252_v49  ;;  %v1271_v58 = vrot.slane %v1269_v18, 5  ;;  %v5121_v5 = vrot.slane %v5113_v48, 9 }
 0x1e9   : > { %v8057_v59 = vpop.permute.xlu0 %2194  ;;  %v3692_v12 = vrot.slane %v7954_v56, 5  ;;  %v1266_v33 = vor.u32 %v1265_v50, %v1261_v24  ;;  %v3695_v47 = vrot.slane %v7994_v21, 5  ;;  %v2962_v0 = vshrl.u32 %v5010_v41, 16 }
 0x1ea   : > { %4033 = vrot.lane.b32.xlu0 %v5185_v45, %s6031_s9  ;;  %2366 = vrot.lane.b32.xlu1 %v4969_v1, %s6032_s15  ;;  %v2965_v15 = vshll.u32 %v5010_v41, 16  ;;  %v1257_v53 = vrot.slane %v1256_v11, 4  ;;  %v2971_v56 = vshll.u32 %v8066_v3, 16  ;;  %v2975_v21 = vshrl.u32 %v8066_v3, 16  ;;  %v8110_v1 = vld [vmem:[%s6930_s11 + $0x5c] sm:$0x1] }
 0x1eb   : > { %v3693_v29 = vsel %vm6932_vm2, %v5121_v5, %v3692_v12  ;;  %v3694_v19 = vrot.slane %v3692_v12, 4  ;;  %v1267_v46 = vrot.slane %v1266_v33, 4  ;;  %v2964_v2 = vrot.slane %v2962_v0, 4 }
 0x1ec   : > { %v8075_v10 = vpop.permute.xlu1 %3939  ;;  %v2967_v38 = vrot.slane %v2965_v15, 5  ;;  %v1262_v14 = vsel %vm6981_vm5, %v1257_v53, %v1261_v24  ;;  %v2973_v51 = vrot.slane %v2971_v56, 5  ;;  %v2981_v54 = vshll.u32 %v8073_v42, 16 }
 0x1ed   : > { %v3696_v37 = vsel %vm6932_vm2, %v3694_v19, %v3695_v47  ;;  %v1272_v34 = vsel %vm6981_vm5, %v1267_v46, %v1271_v58  ;;  %v2977_v52 = vrot.slane %v2975_v21, 4  ;;  %v8102_v49 = vsel %vm2397_vm7, %v8014_v4, %v7908_v25  ;;  %v5028_v47 = vld [vmem:[%s6930_s11 + $0x120] sm:$0xe]  ;;  %v8135_v19 = vld [vmem:[%s6930_s11 + $0x12c] sm:$0xf] }
 0x1ee   : > { %v8081_v44 = vpop.permute.xlu0 %3901  ;;  %v5193_v30 = vcombine.low %v3693_v29, %v3696_v37  ;;  %v2968_v27 = vor.u32 %v2967_v38, %v2964_v2  ;;  %v8106_v18 = vsel %vm2372_vm6, %v5127_v61, %v7944_v23  ;;  %v1379_v48 = vrot.slane %v8035_v6, 5  ;;  %v8146_v37 = vld [vmem:[%s6930_s11 + $0x134] sm:$0x1] }
 0x1ef   : > { %v4914_v32 = vcombine.low %v1262_v14, %v1272_v34  ;;  %v2978_v24 = vor.u32 %v2977_v52, %v2973_v51  ;;  %v2983_v41 = vrot.slane %v2981_v54, 5  ;;  %v4814_v45 = vrot.slane %v1303_v22, 9  ;;  %v8143_v14 = vld [vmem:[%s6930_s11 + $0x130] sm:$0xf] }
 0x1f0   : > { %v8097_v57 = vpop.permute.xlu1 %2280  ;;  %4073 = vrot.lane.b32.xlu1 %v5193_v30, %s6032_s15  ;;  %v2969_v39 = vrot.slane %v2968_v27, 4  ;;  %v1376_v25 = vrot.slane %v8026_v35, 5  ;;  %v1274_v23 = vshrl.u32 %v8092_v63, 16  ;;  %v1277_v4 = vshll.u32 %v8092_v63, 16 }
 0x1f1   : > { %2072 = vrot.lane.b32.xlu0 %v4914_v32, %s6027_s25  ;;  %v1283_v6 = vshll.u32 %v8095_v7, 16  ;;  %v2979_v61 = vrot.slane %v2978_v24, 4  ;;  %v1287_v50 = vshrl.u32 %v8095_v7, 16  ;;  %v1293_v11 = vshll.u32 %v8110_v1, 16 }
 0x1f2   : > { %v8113_v36 = vpop.permute.xlu0 %2234  ;;  %v2974_v60 = vsel %vm6981_vm5, %v2969_v39, %v2973_v51  ;;  %v1377_v35 = vsel %vm6932_vm2, %v4814_v45, %v1376_v25  ;;  %v1378_v5 = vrot.slane %v1376_v25, 4  ;;  %v1276_v12 = vrot.slane %v1274_v23, 4  ;;  %v4830_v23 = vld [vmem:[%s6930_s11 + $0x54] sm:$0xf] }
 0x1f3   : > { %v1279_v33 = vrot.slane %v1277_v4, 5  ;;  %v2420_v0 = vsel %vm2414_vm8, %v8045_v9, %v7938_v13  ;;  %v2984_v15 = vsel %vm6981_vm5, %v2979_v61, %v2983_v41  ;;  %v1285_v53 = vrot.slane %v1283_v6, 5 }
 0x1f4   : > { %v8124_v58 = vpop.permute.xlu1 %3987  ;;  %v1289_v29 = vrot.slane %v1287_v50, 4  ;;  %v3088_v46 = vrot.slane %v8073_v42, 5  ;;  %v5138_v2 = vcombine.low %v2974_v60, %v2984_v15  ;;  %v1380_v38 = vsel %vm6932_vm2, %v1378_v5, %v1379_v48  ;;  %v8168_v50 = vld [vmem:[%s6930_s11 + $0x58] sm:$0xf] }
 0x1f5   : > { %v1280_v21 = vor.u32 %v1279_v33, %v1276_v12  ;;  %v4922_v13 = vcombine.low %v1377_v35, %v1380_v38  ;;  %v1295_v51 = vrot.slane %v1293_v11, 5  ;;  %v5036_v54 = vrot.slane %v5028_v47, 9  ;;  %v1304_v33 = vld [vmem:[%s6930_s11 + $0x54] sm:$0xe] }
 0x1f6   : > { %v8137_v56 = vpop.permute.xlu0 %3941  ;;  %v1290_v9 = vor.u32 %v1289_v29, %v1285_v53  ;;  %3779 = vrot.lane.b32.xlu0 %v5138_v2, %s6027_s25  ;;  %v3085_v42 = vrot.slane %v8066_v3, 5  ;;  %v2986_v30 = vshrl.u32 %v8135_v19, 16  ;;  %v2989_v27 = vshll.u32 %v8135_v19, 16 }
 0x1f7   : > { %v1281_v34 = vrot.slane %v1280_v21, 4  ;;  %2112 = vrot.lane.b32.xlu1 %v4922_v13, %s6025_s12  ;;  %v2995_v48 = vshll.u32 %v8143_v14, 16  ;;  %v2999_v32 = vshrl.u32 %v8143_v14, 16  ;;  %v3005_v39 = vshll.u32 %v8146_v37, 16 }
 0x1f8   : > { %v8148_v22 = vpop.permute.xlu1 %2320  ;;  %v1291_v52 = vrot.slane %v1290_v9, 4  ;;  %v3086_v41 = vsel %vm6932_vm2, %v5036_v54, %v3085_v42  ;;  %v3087_v45 = vrot.slane %v3085_v42, 4  ;;  %v2988_v25 = vrot.slane %v2986_v30, 4  ;;  %v8196_v30 = vld [vmem:[%s6930_s11 + $0x130] sm:$0xf] }
 0x1f9   : > { %v1286_v3 = vsel %vm6981_vm5, %v1281_v34, %v1285_v53  ;;  %v2991_v6 = vrot.slane %v2989_v27, 5  ;;  %v2997_v60 = vrot.slane %v2995_v48, 5  ;;  %v3001_v61 = vrot.slane %v2999_v32, 4 }
 0x1fa   : > { %v8158_v24 = vpop.permute.xlu0 %2282  ;;  %v1296_v4 = vsel %vm6981_vm5, %v1291_v52, %v1295_v51  ;;  %v2405_v11 = vsel %vm2397_vm7, %v8061_v28, %v7959_v43  ;;  %v4124_v35 = vsel %vm2414_vm8, %v8102_v49, %v7967_v20  ;;  %v3089_v12 = vsel %vm6932_vm2, %v3087_v45, %v3088_v46  ;;  %v5029_v46 = vld [vmem:[%s6930_s11 + $0x12c] sm:$0xe] }
 0x1fb   : > { %v4915_v5 = vcombine.low %v1286_v3, %v1296_v4  ;;  %v5146_v15 = vcombine.low %v3086_v41, %v3089_v12  ;;  %v2992_v53 = vor.u32 %v2991_v6, %v2988_v25  ;;  %v3002_v29 = vor.u32 %v3001_v61, %v2997_v60  ;;  %v5053_v51 = vld [vmem:[%s6930_s11 + $0x12c] sm:$0xf]  ;;  %v8220_v61 = vld [vmem:[%s6930_s11 + $0x5c] sm:$0x1] }
 0x1fc   : > { %v8179_v47 = vpop.permute.xlu1 %4027  ;;  %v3007_v2 = vrot.slane %v3005_v39, 5  ;;  %v4110_v43 = vsel %vm2397_vm7, %v8106_v18, %v7981_v40  ;;  %v1561_v20 = vshrl.u32 %v4830_v23, 16  ;;  %v1564_v28 = vshll.u32 %v4830_v23, 16 }
 0x1fd   : > { %2074 = vrot.lane.b32.xlu0 %v4915_v5, %s6027_s25  ;;  %v4930_v49 = vcombine.low %v4830_v23, %v8168_v50  ;;  %3819 = vrot.lane.b32.xlu1 %v5146_v15, %s6025_s12  ;;  %v2993_v38 = vrot.slane %v2992_v53, 4  ;;  %v3003_v21 = vrot.slane %v3002_v29, 4  ;;  %v4815_v13 = vrot.slane %v1304_v33, 9  ;;  %v4832_v15 = vld [vmem:[%s6930_s11 + $0x60] sm:$0xf] }
 0x1fe   : > { %v1383_v9 = vrot.slane %v8095_v7, 5  ;;  %v8190_v54 = vpop.permute.xlu0 %3989  ;;  %v2437_v40 = vsel %vm2431_vm9, %v2420_v0, %v7996_v8  ;;  %v1563_v18 = vrot.slane %v1561_v20, 4  ;;  %v1566_v34 = vrot.slane %v1564_v28, 5  ;;  %v8237_v28 = vld [vmem:[%s6930_s11 + $0x64] sm:$0xf] }
 0x1ff   : > { %v1386_v42 = vrot.slane %v8110_v1, 5  ;;  %v2998_v52 = vsel %vm6981_vm5, %v2993_v38, %v2997_v60  ;;  %v3008_v48 = vsel %vm6981_vm5, %v3003_v21, %v3007_v2  ;;  %v2422_v8 = vsel %vm2414_vm8, %v2405_v11, %v8003_v16 }
 0x200   : > { %v8198_v27 = vpop.permute.xlu1 %2360  ;;  %v1384_v32 = vsel %vm6932_vm2, %v4815_v13, %v1383_v9  ;;  %v1385_v39 = vrot.slane %v1383_v9, 4  ;;  %v5139_v0 = vcombine.low %v2998_v52, %v3008_v48  ;;  %v1574_v1 = vshrl.u32 %v8168_v50, 16  ;;  %v8243_v13 = vld [vmem:[%s6930_s11 + $0x134] sm:$0x1] }
 0x201   : > { %v3269_v3 = vshrl.u32 %v5053_v51, 16  ;;  %2160 = vrot.lane.b32.xlu1 %v4930_v49, %s6026_s13  ;;  %v3272_v45 = vshll.u32 %v5053_v51, 16  ;;  %v5154_v25 = vcombine.low %v5053_v51, %v8196_v30  ;;  %v5037_v23 = vrot.slane %v5029_v46, 9 }
 0x202   : > { %v1387_v41 = vsel %vm6932_vm2, %v1385_v39, %v1386_v42  ;;  %3781 = vrot.lane.b32.xlu0 %v5139_v0, %s6027_s25  ;;  %v4140_v4 = vsel %vm2431_vm9, %v4124_v35, %v8028_v17  ;;  %v4126_v16 = vsel %vm2414_vm8, %v4110_v43, %v8030_v31  ;;  %v3092_v60 = vrot.slane %v8143_v14, 5  ;;  %v8227_v53 = vpop.permute.xlu0 %2322 }
 0x203   : > { %v4923_v6 = vcombine.low %v1384_v32, %v1387_v41  ;;  %v2454_v11 = vsel %vm2448_vm10, %v2437_v40, %v8052_v55  ;;  %v3282_v5 = vshrl.u32 %v8196_v30, 16  ;;  %v3095_v12 = vrot.slane %v8146_v37, 5 }
 0x204   : > { %v1567_v33 = vor.u32 %v1566_v34, %v1563_v18  ;;  %v8229_v17 = vpop.permute.xlu1 %4067  ;;  %v3093_v31 = vsel %vm6932_vm2, %v5037_v23, %v3092_v60  ;;  %v3094_v35 = vrot.slane %v3092_v60, 4  ;;  %v1570_v29 = vshll.u32 %v8168_v50, 16  ;;  %v4848_v60 = vld [vmem:[%s6930_s11 + $0x54] sm:$0xe] }
 0x205   : > { %v1576_v2 = vrot.slane %v1574_v1, 4  ;;  %v3271_v55 = vrot.slane %v3269_v3, 4  ;;  %v3274_v43 = vrot.slane %v3272_v45, 5  ;;  %3867 = vrot.lane.b32.xlu1 %v5154_v25, %s6026_s13  ;;  %v1580_v37 = vshll.u32 %v8220_v61, 16  ;;  %v8268_v25 = vld [vmem:[%s6930_s11 + $0x13c] sm:$0xf] }
 0x206   : > { %v1568_v20 = vrot.slane %v1567_v33, 4  ;;  %2114 = vrot.lane.b32.xlu0 %v4923_v6, %s6025_s12  ;;  %v3096_v49 = vsel %vm6932_vm2, %v3094_v35, %v3095_v12  ;;  %v1572_v46 = vrot.slane %v1570_v29, 5  ;;  %v1585_v38 = vshrl.u32 %v4832_v15, 16 }
 0x207   : > { %v1588_v21 = vshll.u32 %v4832_v15, 16  ;;  %v2439_v9 = vsel %vm2431_vm9, %v2422_v8, %v8057_v59  ;;  %v5147_v51 = vcombine.low %v3093_v31, %v3096_v49  ;;  %v8249_v40 = vsel %vm2448_vm10, %v4140_v4, %v8075_v10  ;;  %v5055_v10 = vld [vmem:[%s6930_s11 + $0x138] sm:$0xf]  ;;  %v8260_v0 = vpop.permute.xlu0 %4029  ;;  %v8282_v31 = vld [vmem:[%s6930_s11 + $0x68] sm:$0x1] }
 0x208   : > { %v8253_v18 = vsel %vm2431_vm9, %v4126_v16, %v8081_v44  ;;  %v1577_v34 = vor.u32 %v1576_v2, %v1572_v46  ;;  %v1582_v42 = vrot.slane %v1580_v37, 5  ;;  %v1598_v52 = vshrl.u32 %v8237_v28, 16  ;;  %v8262_v1 = vpop.permute.xlu1 %2362 }
 0x209   : > { %v4931_v48 = vcombine.low %v4832_v15, %v8237_v28  ;;  %v3275_v32 = vor.u32 %v3274_v43, %v3271_v55  ;;  %v3278_v39 = vshll.u32 %v8196_v30, 16  ;;  %v3284_v59 = vrot.slane %v3282_v5, 4 }
 0x20a   : > { %v3288_v8 = vshll.u32 %v8243_v13, 16  ;;  %3821 = vrot.lane.b32.xlu0 %v5147_v51, %s6025_s12  ;;  %v1573_v44 = vsel %vm6981_vm5, %v1568_v20, %v1572_v46  ;;  %v1578_v3 = vrot.slane %v1577_v34, 4  ;;  %v1587_v41 = vrot.slane %v1585_v38, 4  ;;  %v5071_v38 = vld [vmem:[%s6930_s11 + $0x12c] sm:$0xe] }
 0x20b   : > { %v1590_v45 = vrot.slane %v1588_v21, 5  ;;  %v8272_v23 = vsel %vm2465_vm11, %v2454_v11, %v8097_v57  ;;  %v8276_v4 = vsel %vm2448_vm10, %v2439_v9, %v8113_v36  ;;  %v3276_v16 = vrot.slane %v3275_v32, 4 }
 0x20c   : > { %v3280_v6 = vrot.slane %v3278_v39, 5  ;;  %v1583_v5 = vsel %vm6981_vm5, %v1578_v3, %v1582_v42  ;;  %v3290_v12 = vrot.slane %v3288_v8, 5  ;;  %v3293_v33 = vshrl.u32 %v5055_v10, 16  ;;  %v8294_v21 = vpop.permute.xlu0 %2068 }
 0x20d   : > { %v3296_v15 = vshll.u32 %v5055_v10, 16  ;;  %v4938_v35 = vcombine.low %v1573_v44, %v1583_v5  ;;  %v5155_v36 = vcombine.low %v5055_v10, %v8268_v25  ;;  %v4856_v29 = vrot.slane %v4848_v60, 9  ;;  %v8296_v9 = vpop.permute.xlu1 %4069  ;;  %v8308_v44 = vld [vmem:[%s6930_s11 + $0x140] sm:$0x1] }
 0x20e   : > { %v3281_v57 = vsel %vm6981_vm5, %v3276_v16, %v3280_v6  ;;  %v3285_v11 = vor.u32 %v3284_v59, %v3280_v6  ;;  %2162 = vrot.lane.b32.xlu0 %v4931_v48, %s6026_s13  ;;  %v1684_v2 = vrot.slane %v8168_v50, 5  ;;  %v1687_v55 = vrot.slane %v8220_v61, 5 }
 0x20f   : > { %v1591_v43 = vor.u32 %v1590_v45, %v1587_v41  ;;  %2200 = vrot.lane.b32.xlu1 %v4938_v35, %s6028_s27  ;;  %v1594_v37 = vshll.u32 %v8237_v28, 16  ;;  %v1600_v49 = vrot.slane %v1598_v52, 4  ;;  %v1604_v46 = vshll.u32 %v8282_v31, 16 }
 0x210   : > { %v3286_v20 = vrot.slane %v3285_v11, 4  ;;  %v3295_v51 = vrot.slane %v3293_v33, 4  ;;  %v3298_v34 = vrot.slane %v3296_v15, 5  ;;  %v1685_v50 = vsel %vm6932_vm2, %v4856_v29, %v1684_v2  ;;  %v4872_v33 = vld [vmem:[%s6930_s11 + $0x60] sm:$0xf] }
 0x211   : > { %v1686_v61 = vrot.slane %v1684_v2, 4  ;;  %v3306_v48 = vshrl.u32 %v8268_v25, 16  ;;  %v1592_v52 = vrot.slane %v1591_v43, 4  ;;  %v1596_v32 = vrot.slane %v1594_v37, 5  ;;  %v4849_v43 = vld [vmem:[%s6930_s11 + $0x60] sm:$0xe] }
 0x212   : > { %v3291_v42 = vsel %vm6981_vm5, %v3286_v20, %v3290_v12  ;;  %3869 = vrot.lane.b32.xlu0 %v5155_v36, %s6026_s13  ;;  %v5079_v8 = vrot.slane %v5071_v38, 9  ;;  %v3392_v10 = vrot.slane %v8196_v30, 5  ;;  %v1606_v45 = vrot.slane %v1604_v46, 5 }
 0x213   : > { %v5162_v39 = vcombine.low %v3281_v57, %v3291_v42  ;;  %v1688_v59 = vsel %vm6932_vm2, %v1686_v61, %v1687_v55  ;;  %v1601_v41 = vor.u32 %v1600_v49, %v1596_v32  ;;  %v3395_v16 = vrot.slane %v8243_v13, 5 }
 0x214   : > { %v4946_v3 = vcombine.low %v1685_v50, %v1688_v59  ;;  %v3393_v6 = vsel %vm6932_vm2, %v5079_v8, %v3392_v10  ;;  %v3394_v60 = vrot.slane %v3392_v10, 4  ;;  %v3299_v5 = vor.u32 %v3298_v34, %v3295_v51  ;;  %v8319_v13 = vpop.permute.xlu0 %3775  ;;  %v8321_v11 = vpop.permute.xlu1 %2108  ;;  %v8336_v51 = vld [vmem:[%s6930_s11 + $0x64] sm:$0xf] }
 0x215   : > { %3907 = vrot.lane.b32.xlu1 %v5162_v39, %s6028_s27  ;;  %v3302_v12 = vshll.u32 %v8268_v25, 16  ;;  %v1597_v30 = vsel %vm6981_vm5, %v1592_v52, %v1596_v32  ;;  %v1602_v15 = vrot.slane %v1601_v41, 4  ;;  %v3308_v35 = vrot.slane %v3306_v48, 4  ;;  %v8367_v41 = vld [vmem:[%s6930_s11 + $0x13c] sm:$0xf] }
 0x216   : > { %v3312_v57 = vshll.u32 %v8308_v44, 16  ;;  %v4172_v36 = vsel %vm2465_vm11, %v8249_v40, %v8124_v58  ;;  %v3396_v29 = vsel %vm6932_vm2, %v3394_v60, %v3395_v16  ;;  %v3300_v2 = vrot.slane %v3299_v5, 4 }
 0x217   : > { %v3304_v55 = vrot.slane %v3302_v12, 5  ;;  %v4158_v20 = vsel %vm2448_vm10, %v8253_v18, %v8137_v56  ;;  %v1607_v37 = vsel %vm6981_vm5, %v1602_v15, %v1606_v45  ;;  %v5170_v49 = vcombine.low %v3393_v6, %v3396_v29 }
 0x218   : > { %v1869_v46 = vshrl.u32 %v4872_v33, 16  ;;  %v4939_v38 = vcombine.low %v1597_v30, %v1607_v37  ;;  %v3314_v40 = vrot.slane %v3312_v57, 5  ;;  %v1872_v34 = vshll.u32 %v4872_v33, 16  ;;  %v8377_v30 = vld [vmem:[%s6930_s11 + $0x68] sm:$0x1] }
 0x219   : > { %2240 = vrot.lane.b32.xlu1 %v4946_v3, %s6029_s29  ;;  %v3309_v58 = vor.u32 %v3308_v35, %v3304_v55  ;;  %v2488_v50 = vsel %vm2482_vm12, %v8272_v23, %v8148_v22  ;;  %v2473_v56 = vsel %vm2465_vm11, %v8276_v4, %v8158_v24  ;;  %v4188_v18 = vsel %vm2482_vm12, %v4172_v36, %v8179_v47  ;;  %v5096_v22 = vld [vmem:[%s6930_s11 + $0x138] sm:$0xf]  ;;  %v8392_v37 = vld [vmem:[%s6930_s11 + $0x70] sm:$0xf] }
 0x21a   : > { %v4857_v61 = vrot.slane %v4849_v43, 9  ;;  %2202 = vrot.lane.b32.xlu0 %v4939_v38, %s6028_s27  ;;  %v3305_v42 = vsel %vm6981_vm5, %v3300_v2, %v3304_v55  ;;  %v1691_v52 = vrot.slane %v8237_v28, 5  ;;  %v1694_v32 = vrot.slane %v8282_v31, 5  ;;  %v5072_v4 = vld [vmem:[%s6930_s11 + $0x138] sm:$0xe]  ;;  %v8356_v59 = vpop.permute.xlu0 %2070 }
 0x21b   : > { %v3310_v48 = vrot.slane %v3309_v58, 4  ;;  %v1871_v23 = vrot.slane %v1869_v46, 4  ;;  %v1874_v39 = vrot.slane %v1872_v34, 5  ;;  %v1882_v24 = vshrl.u32 %v8336_v51, 16  ;;  %v8358_v8 = vpop.permute.xlu1 %3815  ;;  %v4874_v2 = vld [vmem:[%s6930_s11 + $0x6c] sm:$0xf] }
 0x21c   : > { %v2505_v47 = vsel %vm2499_vm13, %v2488_v50, %v8198_v27  ;;  %v4954_v31 = vcombine.low %v4872_v33, %v8336_v51  ;;  %v1692_v10 = vsel %vm6932_vm2, %v4857_v61, %v1691_v52  ;;  %v1693_v3 = vrot.slane %v1691_v52, 4  ;;  %v8403_v50 = vld [vmem:[%s6930_s11 + $0x140] sm:$0x1]  ;;  %v5098_v52 = vld [vmem:[%s6930_s11 + $0x144] sm:$0xf] }
 0x21d   : > { %3947 = vrot.lane.b32.xlu1 %v5170_v49, %s6029_s29  ;;  %v3315_v28 = vsel %vm6981_vm5, %v3310_v48, %v3314_v40  ;;  %5742 = vmatprep.mubr.msk.bf16.mxu0 %vm2516_vm14, %v2505_v47  ;;  %v4174_v45 = vsel %vm2465_vm11, %v4158_v20, %v8190_v54  ;;  %v3576_v16 = vshrl.u32 %v5096_v22, 16  ;;  %v3579_v6 = vshll.u32 %v5096_v22, 16 }
 0x21e   : > { %v5163_v27 = vcombine.low %v3305_v42, %v3315_v28  ;;  %v1695_v60 = vsel %vm6932_vm2, %v1693_v3, %v1694_v32  ;;  %v5080_v5 = vrot.slane %v5072_v4, 9  ;;  %v3399_v12 = vrot.slane %v8268_v25, 5 }
 0x21f   : > { %v3402_v33 = vrot.slane %v8308_v44, 5  ;;  %v4947_v15 = vcombine.low %v1692_v10, %v1695_v60  ;;  %v5178_v35 = vcombine.low %v5096_v22, %v8367_v41  ;;  %v4204_v54 = vsel %vm2499_vm13, %v4188_v18, %v8229_v17  ;;  %v8396_v46 = vpop.permute.xlu1 %2156  ;;  %v8422_v10 = vld [vmem:[%s6930_s11 + $0x148] sm:$0xf] }
 0x220   : > { %3909 = vrot.lane.b32.xlu0 %v5163_v27, %s6028_s27  ;;  %v1875_v57 = vor.u32 %v1874_v39, %v1871_v23  ;;  %v3400_v36 = vsel %vm6932_vm2, %v5080_v5, %v3399_v12  ;;  %v3401_v25 = vrot.slane %v3399_v12, 4  ;;  %v1878_v44 = vshll.u32 %v8336_v51, 16  ;;  %5774 = vmatprep.mubr.msk.bf16.mxu1 %vm2516_vm14, %v4204_v54 }
 0x221   : > { %2288 = vrot.lane.b32.xlu1 %v4954_v31, %s6030_s7  ;;  %v1884_v29 = vrot.slane %v1882_v24, 4  ;;  %v3578_v55 = vrot.slane %v3576_v16, 4  ;;  %v3581_v43 = vrot.slane %v3579_v6, 5  ;;  %v3589_v20 = vshrl.u32 %v8367_v41, 16  ;;  %v4890_v6 = vld [vmem:[%s6930_s11 + $0x60] sm:$0xe] }
 0x222   : > { %v1888_v17 = vshll.u32 %v8377_v30, 16  ;;  %v8394_v49 = vpop.permute.xlu0 %3777  ;;  %v2490_v38 = vsel %vm2482_vm12, %v2473_v56, %v8227_v53  ;;  %v3403_v58 = vsel %vm6932_vm2, %v3401_v25, %v3402_v33  ;;  %v1876_v40 = vrot.slane %v1875_v57, 4  ;;  %v8434_v25 = vld [vmem:[%s6930_s11 + $0x74] sm:$0x1] }
 0x223   : > { %v1880_v34 = vrot.slane %v1878_v44, 5  ;;  %v5171_v18 = vcombine.low %v3400_v36, %v3403_v58  ;;  %v4190_v61 = vsel %vm2482_vm12, %v4174_v45, %v8260_v0  ;;  %v1893_v42 = vshrl.u32 %v4874_v2, 16  ;;  %v8426_v60 = vpop.permute.xlu1 %3863 }
 0x224   : > { %2242 = vrot.lane.b32.xlu0 %v4947_v15, %s6029_s29  ;;  %v1896_v48 = vshll.u32 %v4874_v2, 16  ;;  %v1890_v56 = vrot.slane %v1888_v17, 5  ;;  %v1906_v32 = vshrl.u32 %v8392_v37, 16  ;;  %v2507_v22 = vsel %vm2499_vm13, %v2490_v38, %v8262_v1 }
 0x225   : > { %3995 = vrot.lane.b32.xlu1 %v5178_v35, %s6030_s7  ;;  %v1885_v53 = vor.u32 %v1884_v29, %v1880_v34  ;;  %v3582_v23 = vor.u32 %v3581_v43, %v3578_v55  ;;  %v3585_v39 = vshll.u32 %v8367_v41, 16  ;;  %v3591_v24 = vrot.slane %v3589_v20, 4  ;;  %5743 = vmatmul.mubr.msk.bf16.gmra.mrb[4].mxu0 %vm2516_vm14, %v2507_v22  ;;  %v5107_v22 = vld [vmem:[%s6930_s11 + $0x14c] sm:$0x1] }
 0x226   : > { %v3595_v0 = vshll.u32 %v8403_v50, 16  ;;  %v8416_v47 = vpop.permute.xlu0 %2110  ;;  %v1881_v4 = vsel %vm6981_vm5, %v1876_v40, %v1880_v34  ;;  %v4955_v31 = vcombine.low %v4874_v2, %v8392_v37  ;;  %v3600_v1 = vshrl.u32 %v5098_v52, 16 }
 0x227   : > { %v1886_v28 = vrot.slane %v1885_v53, 4  ;;  %v1895_v3 = vrot.slane %v1893_v42, 4  ;;  %v1898_v27 = vrot.slane %v1896_v48, 5  ;;  %v3583_v45 = vrot.slane %v3582_v23, 4 }
 0x228   : > { %3949 = vrot.lane.b32.xlu0 %v5171_v18, %s6029_s29  ;;  %v3587_v16 = vrot.slane %v3585_v39, 5  ;;  %v3597_v12 = vrot.slane %v3595_v0, 5  ;;  %v3602_v33 = vrot.slane %v3600_v1, 4  ;;  %v3603_v15 = vshll.u32 %v5098_v52, 16 }
 0x229   : > { %v1891_v5 = vsel %vm6981_vm5, %v1886_v28, %v1890_v56  ;;  %v5179_v57 = vcombine.low %v5098_v52, %v8422_v10  ;;  %v4206_v36 = vsel %vm2499_vm13, %v4190_v61, %v8296_v9  ;;  %v4898_v2 = vrot.slane %v4890_v6, 9  ;;  %v5115_v6 = vld [vmem:[%s6930_s11 + $0x144] sm:$0xe] }
 0x22a   : > { %v4962_v35 = vcombine.low %v1881_v4, %v1891_v5  ;;  %v3592_v54 = vor.u32 %v3591_v24, %v3587_v16  ;;  %v8436_v44 = vpop.permute.xlu0 %3817  ;;  %v3588_v29 = vsel %vm6981_vm5, %v3583_v45, %v3587_v16  ;;  %v1992_v55 = vrot.slane %v8336_v51, 5  ;;  %5775 = vmatmul.mubr.msk.bf16.gmra.mrb[4].mxu1 %vm2516_vm14, %v4206_v36 }
 0x22b   : > { %v1995_v43 = vrot.slane %v8377_v30, 5  ;;  %v1899_v20 = vor.u32 %v1898_v27, %v1895_v3  ;;  %v1902_v17 = vshll.u32 %v8392_v37, 16  ;;  %v1908_v38 = vrot.slane %v1906_v32, 4  ;;  %v5114_v30 = vld [vmem:[%s6930_s11 + $0x138] sm:$0xe] }
 0x22c   : > { %2328 = vrot.lane.b32.xlu1 %v4962_v35, %s6031_s9  ;;  %2290 = vrot.lane.b32.xlu0 %v4955_v31, %s6030_s7  ;;  %v3593_v9 = vrot.slane %v3592_v54, 4  ;;  %v3605_v58 = vrot.slane %v3603_v15, 5  ;;  %v1993_v40 = vsel %vm6932_vm2, %v4898_v2, %v1992_v55  ;;  %v1994_v34 = vrot.slane %v1992_v55, 4 }
 0x22d   : > { %v1912_v51 = vshll.u32 %v8434_v25, 16  ;;  %v3613_v61 = vshrl.u32 %v8422_v10, 16  ;;  %v1900_v42 = vrot.slane %v1899_v20, 4  ;;  %v1904_v48 = vrot.slane %v1902_v17, 5 }
 0x22e   : > { %v3598_v18 = vsel %vm6981_vm5, %v3593_v9, %v3597_v12  ;;  %v8453_v52 = vpop.permute.xlu1 %2196  ;;  %v8455_v53 = vpop.permute.xlu0 %2158  ;;  %v1996_v32 = vsel %vm6932_vm2, %v1994_v34, %v1995_v43  ;;  %v5122_v0 = vrot.slane %v5114_v30, 9  ;;  %v3699_v28 = vrot.slane %v8367_v41, 5 }
 0x22f   : > { %v5186_v56 = vcombine.low %v3588_v29, %v3598_v18  ;;  %v4970_v23 = vcombine.low %v1993_v40, %v1996_v32  ;;  %v1909_v39 = vor.u32 %v1908_v38, %v1904_v48  ;;  %v1914_v24 = vrot.slane %v1912_v51, 5 }
 0x230   : > { %3997 = vrot.lane.b32.xlu0 %v5179_v57, %s6030_s7  ;;  %v1905_v4 = vsel %vm6981_vm5, %v1900_v42, %v1904_v48  ;;  %v3702_v31 = vrot.slane %v8403_v50, 5  ;;  %v3606_v1 = vor.u32 %v3605_v58, %v3602_v33  ;;  %v3609_v27 = vshll.u32 %v8422_v10, 16  ;;  %v4891_v33 = vld [vmem:[%s6930_s11 + $0x6c] sm:$0xe] }
 0x231   : > { %4035 = vrot.lane.b32.xlu1 %v5186_v56, %s6031_s9  ;;  %v1910_v3 = vrot.slane %v1909_v39, 4  ;;  %v3615_v45 = vrot.slane %v3613_v61, 4  ;;  %v3619_v16 = vshll.u32 %v5107_v22, 16  ;;  %v3700_v5 = vsel %vm6932_vm2, %v5122_v0, %v3699_v28 }
 0x232   : > { %v3701_v12 = vrot.slane %v3699_v28, 4  ;;  %v8472_v35 = vpop.permute.xlu0 %3865  ;;  %v3607_v54 = vrot.slane %v3606_v1, 4  ;;  %v3611_v50 = vrot.slane %v3609_v27, 5  ;;  %v5123_v29 = vrot.slane %v5115_v6, 9  ;;  %v5940_v28 = vld [vmem:[%s6930_s11 + $0x30] sm:$0xf] }
 0x233   : > { %v8470_v15 = vpop.permute.xlu1 %3903  ;;  %v1915_v41 = vsel %vm6981_vm5, %v1910_v3, %v1914_v24  ;;  %v3706_v2 = vrot.slane %v8422_v10, 5  ;;  %v3621_v9 = vrot.slane %v3619_v16, 5  ;;  %v3709_v38 = vrot.slane %v5107_v22, 5  ;;  %v5943_v16 = vld [vmem:[%s6930_s11 + $0x10c] sm:$0xf] }
 0x234   : > { %v4963_v57 = vcombine.low %v1905_v4, %v1915_v41  ;;  %v3703_v36 = vsel %vm6932_vm2, %v3701_v12, %v3702_v31  ;;  %v3616_v43 = vor.u32 %v3615_v45, %v3611_v50  ;;  %v4899_v58 = vrot.slane %v4891_v33, 9  ;;  %v5941_v31 = vld [vmem:[%s6930_s11 + $0x34] sm:$0xf]  ;;  %v5942_v45 = vld [vmem:[%s6930_s11 + $0x108] sm:$0xf] }
 0x235   : > { %2368 = vrot.lane.b32.xlu1 %v4970_v23, %s6032_s15  ;;  %v5194_v55 = vcombine.low %v3700_v5, %v3703_v36  ;;  %v3707_v20 = vsel %vm6932_vm2, %v5123_v29, %v3706_v2  ;;  %v3708_v17 = vrot.slane %v3706_v2, 4  ;;  %v3612_v34 = vsel %vm6981_vm5, %v3607_v54, %v3611_v50  ;;  %v5945_v36 = vld [vmem:[%s6930_s11 + $0x40] sm:$0xf] }
 0x236   : > { %2330 = vrot.lane.b32.xlu0 %v4963_v57, %s6031_s9  ;;  %v3617_v51 = vrot.slane %v3616_v43, 4  ;;  %v1999_v30 = vrot.slane %v8392_v37, 5  ;;  %v2002_v10 = vrot.slane %v8434_v25, 5  ;;  %v4904_v26 = vcombine.low %v5940_v28, %v5941_v31  ;;  %v5944_v57 = vld [vmem:[%s6930_s11 + $0x3c] sm:$0xf] }
 0x237   : > { %v2237_v40 = vpop.permute.xlu1 %2236  ;;  %v3710_v18 = vsel %vm6932_vm2, %v3708_v17, %v3709_v38  ;;  %v5128_v6 = vcombine.low %v5942_v45, %v5943_v16  ;;  %v5946_v38 = vld [vmem:[%s6930_s11 + $0x114] sm:$0xf] }
 0x238   : > { %v2199_v61 = vpop.permute.xlu0 %2198  ;;  %v3622_v42 = vsel %vm6981_vm5, %v3617_v51, %v3621_v9  ;;  %v5195_v48 = vcombine.low %v3707_v20, %v3710_v18  ;;  %v2000_v56 = vsel %vm6932_vm2, %v4899_v58, %v1999_v30  ;;  %v2001_v32 = vrot.slane %v1999_v30, 4  ;;  %v5947_v58 = vld [vmem:[%s6930_s11 + $0x118] sm:$0xf] }
 0x239   : > { %4075 = vrot.lane.b32.xlu1 %v5194_v55, %s6032_s15  ;;  %v5187_v22 = vcombine.low %v3612_v34, %v3622_v42  ;;  %v2387_v27 = vsel %vm2372_vm6, %v4904_v26, %v8294_v21  ;;  %v4093_v33 = vsel %vm2372_vm6, %v5128_v6, %v8319_v13  ;;  %v4905_v21 = vcombine.low %v5944_v57, %v5945_v36  ;;  %v5948_v36 = vld [vmem:[%s6930_s11 + $0x48] sm:$0xf] }
 0x23a   : > { %v2003_v25 = vsel %vm6932_vm2, %v2001_v32, %v2002_v10  ;;  %v2407_v5 = vsel %vm2397_vm7, %v2387_v27, %v8321_v11  ;;  %v4112_v11 = vsel %vm2397_vm7, %v4093_v33, %v8358_v8 }
 0x23b   : > { %v3944_v37 = vpop.permute.xlu1 %3943  ;;  %4037 = vrot.lane.b32.xlu0 %v5187_v22, %s6031_s9  ;;  %v4971_v62 = vcombine.low %v2000_v56, %v2003_v25  ;;  %v2424_v12 = vsel %vm2414_vm8, %v2407_v5, %v8396_v46  ;;  %v4128_v2 = vsel %vm2414_vm8, %v4112_v11, %v8426_v60  ;;  %v2390_v9 = vsel %vm2372_vm6, %v4905_v21, %v8356_v59  ;;  %v5949_v21 = vld [vmem:[%s6930_s11 + $0x4c] sm:$0xf] }
 0x23c   : > { %v2441_v54 = vsel %vm2431_vm9, %v2424_v12, %v8453_v52  ;;  %v4144_v13 = vsel %vm2431_vm9, %v4128_v2, %v8470_v15  ;;  %v2409_v8 = vsel %vm2397_vm7, %v2390_v9, %v8416_v47  ;;  %v5950_v2 = vld [vmem:[%s6930_s11 + $0x120] sm:$0xf] }
 0x23d   : > { %4077 = vrot.lane.b32.xlu1 %v5195_v48, %s6032_s15  ;;  %v2458_v29 = vsel %vm2448_vm10, %v2441_v54, %v2237_v40  ;;  %v4160_v20 = vsel %vm2448_vm10, %v4144_v13, %v3944_v37  ;;  %v5129_v40 = vcombine.low %v5946_v38, %v5947_v58  ;;  %v2426_v15 = vsel %vm2414_vm8, %v2409_v8, %v8455_v53 }
 0x23e   : > { %v3906_v23 = vpop.permute.xlu0 %3905  ;;  %v2443_v59 = vsel %vm2431_vm9, %v2426_v15, %v2199_v61 }
 0x23f   : > { %v2285_v39 = vpop.permute.xlu1 %2284  ;;  %2370 = vrot.lane.b32.xlu0 %v4971_v62, %s6032_s15  ;;  %v4096_v18 = vsel %vm2372_vm6, %v5129_v40, %v8394_v49  ;;  %v8580_v40 = vld [vmem:[%s8716_s3] ss:$0 sm:$0xff] }
 0x240   : > { %v2475_v46 = vsel %vm2465_vm11, %v2458_v29, %v2285_v39  ;;  %v4114_v53 = vsel %vm2397_vm7, %v4096_v18, %v8436_v44  ;;  %v4906_v29 = vcombine.low %v5948_v36, %v5949_v21 }
 0x241   : > { %v4130_v32 = vsel %vm2414_vm8, %v4114_v53, %v8472_v35 }
 0x242   : > { %v2239_v24 = vpop.permute.xlu0 %2238  ;;  %v4146_v22 = vsel %vm2431_vm9, %v4130_v32, %v3906_v23 }
 0x243   : > { %v3992_v0 = vpop.permute.xlu1 %3991  ;;  %v2460_v10 = vsel %vm2448_vm10, %v2443_v59, %v2239_v24 }
 0x244   : > { %v4176_v60 = vsel %vm2465_vm11, %v4160_v20, %v3992_v0  ;;  %v5131_v20 = vcombine.low %v8135_v19, %v8143_v14 }
 0x246   : > { %v3946_v4 = vpop.permute.xlu0 %3945 }
 0x247   : > { %v4162_v37 = vsel %vm2448_vm10, %v4146_v22, %v3946_v4 }
 0x24a   : > { %v2325_v1 = vpop.permute.xlu1 %2324  ;;  %v2287_v3 = vpop.permute.xlu0 %2286 }
 0x24b   : > { %v2492_v52 = vsel %vm2482_vm12, %v2475_v46, %v2325_v1  ;;  %v2477_v47 = vsel %vm2465_vm11, %v2460_v10, %v2287_v3 }
 0x24e   : > { %v3994_v50 = vpop.permute.xlu0 %3993 }
 0x24f   : > { %v4178_v49 = vsel %vm2465_vm11, %v4162_v37, %v3994_v50 }
 0x250   : > { %v4032_v41 = vpop.permute.xlu1 %4031 }
 0x251   : > { %v4192_v34 = vsel %vm2482_vm12, %v4176_v60, %v4032_v41 }
 0x254   : > { %v2365_v55 = vpop.permute.xlu1 %2364 }
 0x255   : > { %v2509_v43 = vsel %vm2499_vm13, %v2492_v52, %v2365_v55  ;;  %v2327_v17 = vpop.permute.xlu0 %2326  ;;  %v5951_v52 = vld [vmem:[%s6930_s11 + $0x124] sm:$0xf]  ;;  %s4491_s11 = scalar_lea.sflag [#allocation4], %s278_s14 }
 0x256   : > { %5746 = vmatprep.mubr.msk.bf16.mxu0 %vm2516_vm14, %v2509_v43  ;;  %v2494_v42 = vsel %vm2482_vm12, %v2477_v47, %v2327_v17  ;;  %v5130_v55 = vcombine.low %v5950_v2, %v5951_v52  ;;  %v4907_v43 = vcombine.low %v8092_v63, %v8095_v7 }
 0x258   : > { %v4072_v51 = vpop.permute.xlu1 %4071 }
 0x259   : > { %v4208_v30 = vsel %vm2499_vm13, %v4192_v34, %v4072_v51 }
 0x25a   : > { %5778 = vmatprep.mubr.msk.bf16.mxu1 %vm2516_vm14, %v4208_v30 }
 0x25c   : > { %v2367_v48 = vpop.permute.xlu1 %2366  ;;  %v4034_v56 = vpop.permute.xlu0 %4033 }
 0x25d   : > { %v2511_v61 = vsel %vm2499_vm13, %v2494_v42, %v2367_v48  ;;  %v4194_v25 = vsel %vm2482_vm12, %v4178_v49, %v4034_v56 }
 0x25e   : > { %5747 = vmatmul.mubr.msk.bf16.gmra.mrb[8].mxu0 %vm2516_vm14, %v2511_v61 }
 0x262   : > { %v4074_v62 = vpop.permute.xlu1 %4073 }
 0x263   : > { %v2073_v39 = vpop.permute.xlu0 %2072  ;;  %v4210_v44 = vsel %vm2499_vm13, %v4194_v25, %v4074_v62 }
 0x264   : > { %5779 = vmatmul.mubr.msk.bf16.gmra.mrb[8].mxu1 %vm2516_vm14, %v4210_v44  ;;  %v2393_v13 = vsel %vm2372_vm6, %v4906_v29, %v2073_v39 }
 0x268   : > { %v3780_v24 = vpop.permute.xlu0 %3779 }
 0x269   : > { %v2113_v0 = vpop.permute.xlu1 %2112  ;;  %v4099_v38 = vsel %vm2372_vm6, %v5130_v55, %v3780_v24 }
 0x26a   : > { %v2411_v9 = vsel %vm2397_vm7, %v2393_v13, %v2113_v0 }
 0x26f   : > { %v2075_v28 = vpop.permute.xlu0 %2074  ;;  %v3820_v35 = vpop.permute.xlu1 %3819 }
 0x270   : > { %v2396_v63 = vsel %vm2372_vm6, %v4907_v43, %v2075_v28  ;;  %v4116_v7 = vsel %vm2397_vm7, %v4099_v38, %v3820_v35  ;;  %v8606_v35 = vld [vmem:[%s8716_s3 + $0x1] ss:$0 sm:$0xff] }
 0x273   : > { %v2161_v26 = vpop.permute.xlu1 %2160 }
 0x274   : > { %v3782_v31 = vpop.permute.xlu0 %3781  ;;  %v2428_v8 = vsel %vm2414_vm8, %v2411_v9, %v2161_v26 }
 0x275   : > { %v4102_v19 = vsel %vm2372_vm6, %v5131_v20, %v3782_v31 }
 0x277   : > { %v3868_v4 = vpop.permute.xlu1 %3867 }
 0x278   : > { %v2115_v23 = vpop.permute.xlu0 %2114  ;;  %v4132_v34 = vsel %vm2414_vm8, %v4116_v7, %v3868_v4 }
 0x279   : > { %v2413_v14 = vsel %vm2397_vm7, %v2396_v63, %v2115_v23 }
 0x27c   : > { %v3822_v1 = vpop.permute.xlu0 %3821 }
 0x27d   : > { %v4118_v30 = vsel %vm2397_vm7, %v4102_v19, %v3822_v1 }
 0x280   : > { %v2163_v3 = vpop.permute.xlu0 %2162 }
 0x281   : > { %v2201_v27 = vpop.permute.xlu1 %2200  ;;  %v2430_v10 = vsel %vm2414_vm8, %v2413_v14, %v2163_v3 }
 0x282   : > { %v2445_v58 = vsel %vm2431_vm9, %v2428_v8, %v2201_v27 }
 0x284   : > { %v3870_v16 = vpop.permute.xlu0 %3869 }
 0x285   : > { %v4134_v56 = vsel %vm2414_vm8, %v4118_v30, %v3870_v16 }
 0x287   : > { %v3908_v45 = vpop.permute.xlu1 %3907 }
 0x288   : > { %v4148_v53 = vsel %vm2431_vm9, %v4132_v34, %v3908_v45 }
 0x28b   : > { %v2241_v6 = vpop.permute.xlu1 %2240 }
 0x28c   : > { %v8558_v5 = vpop.permute.xlu0 %2202  ;;  %v2462_v15 = vsel %vm2448_vm10, %v2445_v58, %v2241_v6 }
 0x28d   : > { %v2447_v43 = vsel %vm2431_vm9, %v2430_v10, %v8558_v5 }
 0x28f   : > { %v3948_v12 = vpop.permute.xlu1 %3947 }
 0x290   : > { %v4164_v37 = vsel %vm2448_vm10, %v4148_v53, %v3948_v12 }
 0x292   : > { %v3910_v41 = vpop.permute.xlu0 %3909 }
 0x293   : > { %v2289_v54 = vpop.permute.xlu1 %2288  ;;  %v4150_v49 = vsel %vm2431_vm9, %v4134_v56, %v3910_v41 }
 0x294   : > { %v2479_v51 = vsel %vm2465_vm11, %v2462_v15, %v2289_v54 }
 0x296   : > { %v8560_v50 = vpop.permute.xlu0 %2242 }
 0x297   : > { %v3996_v33 = vpop.permute.xlu1 %3995  ;;  %v2464_v8 = vsel %vm2448_vm10, %v2447_v43, %v8560_v50 }
 0x298   : > { %v4180_v24 = vsel %vm2465_vm11, %v4164_v37, %v3996_v33 }
 0x29a   : > { %v3950_v57 = vpop.permute.xlu0 %3949 }
 0x29b   : > { %v4166_v1 = vsel %vm2448_vm10, %v4150_v49, %v3950_v57 }
 0x29e   : > { %v2329_v11 = vpop.permute.xlu1 %2328  ;;  %v8564_v46 = vpop.permute.xlu0 %2290 }
 0x29f   : > { %v2496_v47 = vsel %vm2482_vm12, %v2479_v51, %v2329_v11  ;;  %v2481_v58 = vsel %vm2465_vm11, %v2464_v8, %v8564_v46 }
 0x2a2   : > { %v3998_v17 = vpop.permute.xlu0 %3997 }
 0x2a3   : > { %v4036_v60 = vpop.permute.xlu1 %4035  ;;  %v4182_v11 = vsel %vm2465_vm11, %v4166_v1, %v3998_v17 }
 0x2a4   : > { %v4196_v31 = vsel %vm2482_vm12, %v4180_v24, %v4036_v60 }
 0x2a6   : > { %v5740_v59 = vpop.f32.mrb[0].mxu0 }
 0x2a7   : > { %v2369_v18 = vpop.permute.xlu1 %2368  ;;  %v2648_v42 = vmul.f32 %v5740_v59, %v8580_v40  ;;  %v2576_v48 = vpop.f32.mrb[1].mxu0 }
 0x2a8   : > { %v2513_v61 = vsel %vm2499_vm13, %v2496_v47, %v2369_v18  ;;  %v2646_v32 = vmul.f32 %v8580_v40, %v2576_v48  ;;  %v5741_v22 = vpop.f32.mrb[2].mxu0  ;;  %v2331_v25 = vpop.permute.xlu0 %2330 }
 0x2a9   : > { %5750 = vmatprep.mubr.msk.bf16.mxu0 %vm2516_vm14, %v2513_v61  ;;  %v2680_v62 = vmul.f32 0.01, %v2648_v42  ;;  %v2649_v39 = vmul.f32 %v5741_v22, %v8580_v40  ;;  %v2579_v44 = vpop.f32.mrb[3].mxu0  ;;  %vm2664_vm15 = vcmp.ge.f32.partialorder %v2648_v42, 0.0  ;;  %v2498_v7 = vsel %vm2482_vm12, %v2481_v58, %v2331_v25 }
 0x2aa   : > { %v2678_v0 = vmul.f32 0.01, %v2646_v32  ;;  %v2647_v28 = vmul.f32 %v8580_v40, %v2579_v44  ;;  %vm2662_vm0 = vcmp.ge.f32.partialorder %v2646_v32, 0.0  ;;  %v5772_v4 = vpop.f32.mrb[0].mxu1 }
 0x2ab   : > { %v4076_v26 = vpop.permute.xlu1 %4075  ;;  %vm2665_vm1 = vcmp.ge.f32.partialorder %v2649_v39, 0.0  ;;  %v2681_v23 = vmul.f32 0.01, %v2649_v39  ;;  %v4274_v45 = vpop.f32.mrb[1].mxu1  ;;  %v2696_v16 = vsel %vm2664_vm15, %v2648_v42, %v2680_v62  ;;  %v4347_v12 = vmul.f32 %v5772_v4, %v8606_v35 }
 0x2ac   : > { %v4212_v3 = vsel %vm2499_vm13, %v4196_v31, %v4076_v26  ;;  %vm2663_vm2 = vcmp.ge.f32.partialorder %v2647_v28, 0.0  ;;  %v2679_v27 = vmul.f32 0.01, %v2647_v28  ;;  %v4345_v41 = vmul.f32 %v8606_v35, %v4274_v45  ;;  %v5773_v54 = vpop.f32.mrb[2].mxu1 }
 0x2ad   : > { %5782 = vmatprep.mubr.msk.bf16.mxu1 %vm2516_vm14, %v4212_v3  ;;  %v2697_v6 = vsel %vm2665_vm1, %v2649_v39, %v2681_v23  ;;  %v2694_v33 = vsel %vm2662_vm0, %v2646_v32, %v2678_v0  ;;  %v4348_v57 = vmul.f32 %v5773_v54, %v8606_v35  ;;  %v4277_v29 = vpop.f32.mrb[3].mxu1  ;;  %v4038_v2 = vpop.permute.xlu0 %4037  ;;  %vm4363_vm3 = vcmp.ge.f32.partialorder %v4347_v12, 0.0 }
 0x2ae   : > { %v5541_v36 = vpack.c.bf16 %v2697_v6, %v2696_v16  ;;  %v2695_v21 = vsel %vm2663_vm2, %v2647_v28, %v2679_v27  ;;  %v4379_v13 = vmul.f32 0.01, %v4347_v12  ;;  %v4198_v9 = vsel %vm2482_vm12, %v4182_v11, %v4038_v2 }
 0x2af   : > { %v4078_v52 = vpop.permute.xlu1 %4077  ;;  %v5536_v55 = vpack.c.bf16 %v2695_v21, %v2694_v33  ;;  %vm4364_vm4 = vcmp.ge.f32.partialorder %v4348_v57, 0.0  ;;  %v4380_v20 = vmul.f32 0.01, %v4348_v57  ;;  %v4377_v17 = vmul.f32 0.01, %v4345_v41 }
 0x2b0   : > { %5675 = vst [vmem:[%s6149_s16 + $0x8] sm:$0xff] %v5541_v36   ;;  %v4214_v60 = vsel %vm2499_vm13, %v4198_v9, %v4078_v52  ;;  %v4346_v38 = vmul.f32 %v8606_v35, %v4277_v29  ;;  %v4395_v5 = vsel %vm4363_vm3, %v4347_v12, %v4379_v13  ;;  %vm4361_vm5 = vcmp.ge.f32.partialorder %v4345_v41, 0.0 }
 0x2b1   : > { %5537 = vst [vmem:[%s6149_s16] sm:$0xff] %v5536_v55   ;;  %5783 = vmatmul.mubr.msk.bf16.gmra.mrb[12].mxu1 %vm2516_vm14, %v4214_v60  ;;  %v4396_v63 = vsel %vm4364_vm4, %v4348_v57, %v4380_v20  ;;  %v2371_v15 = vpop.permute.xlu0 %2370  ;;  %v4393_v34 = vsel %vm4361_vm5, %v4345_v41, %v4377_v17 }
 0x2b2   : > { %v5581_v50 = vpack.c.bf16 %v4396_v63, %v4395_v5  ;;  %vm4362_vm6 = vcmp.ge.f32.partialorder %v4346_v38, 0.0  ;;  %v4378_v19 = vmul.f32 0.01, %v4346_v38  ;;  %v2515_v14 = vsel %vm2499_vm13, %v2498_v7, %v2371_v15 }
 0x2b3   : > { %5751 = vmatmul.mubr.msk.bf16.gmra.mrb[12].mxu0 %vm2516_vm14, %v2515_v14 }
 0x2b4   : > { %5683 = vst [vmem:[%s6149_s16 + $0x48] sm:$0xff] %v5581_v50   ;;  %v4394_v51 = vsel %vm4362_vm6, %v4346_v38, %v4378_v19 }
 0x2b5   : > { %v5576_v46 = vpack.c.bf16 %v4394_v51, %v4393_v34 }
 0x2b7   : > { %5682 = vst [vmem:[%s6149_s16 + $0x40] sm:$0xff] %v5576_v46  }
 0x2f8   : > { %v5744_v59 = vpop.f32.mrb[4].mxu0 }
 0x2f9   : > { %v2652_v30 = vmul.f32 %v5744_v59, %v8580_v40  ;;  %v2592_v10 = vpop.f32.mrb[5].mxu0 }
 0x2fa   : > { %v2650_v47 = vmul.f32 %v8580_v40, %v2592_v10  ;;  %v5745_v18 = vpop.f32.mrb[6].mxu0 }
 0x2fb   : > { %v2684_v42 = vmul.f32 0.01, %v2652_v30  ;;  %v2653_v48 = vmul.f32 %v5745_v18, %v8580_v40  ;;  %v2595_v53 = vpop.f32.mrb[7].mxu0  ;;  %vm2668_vm7 = vcmp.ge.f32.partialorder %v2652_v30, 0.0 }
 0x2fc   : > { %v2682_v56 = vmul.f32 0.01, %v2650_v47  ;;  %v2651_v61 = vmul.f32 %v8580_v40, %v2595_v53  ;;  %vm2666_vm8 = vcmp.ge.f32.partialorder %v2650_v47, 0.0 }
 0x2fd   : > { %vm2669_vm9 = vcmp.ge.f32.partialorder %v2653_v48, 0.0  ;;  %v2685_v32 = vmul.f32 0.01, %v2653_v48  ;;  %v5776_v22 = vpop.f32.mrb[4].mxu1  ;;  %v2700_v62 = vsel %vm2668_vm7, %v2652_v30, %v2684_v42 }
 0x2fe   : > { %vm2667_vm10 = vcmp.ge.f32.partialorder %v2651_v61, 0.0  ;;  %v2683_v37 = vmul.f32 0.01, %v2651_v61  ;;  %v4351_v49 = vmul.f32 %v5776_v22, %v8606_v35  ;;  %v4290_v25 = vpop.f32.mrb[5].mxu1  ;;  %v2698_v0 = vsel %vm2666_vm8, %v2650_v47, %v2682_v56 }
 0x2ff   : > { %v2701_v39 = vsel %vm2669_vm9, %v2653_v48, %v2685_v32  ;;  %v4349_v44 = vmul.f32 %v8606_v35, %v4290_v25  ;;  %v5777_v24 = vpop.f32.mrb[6].mxu1 }
 0x300   : > { %v5551_v28 = vpack.c.bf16 %v2701_v39, %v2700_v62  ;;  %v2699_v31 = vsel %vm2667_vm10, %v2651_v61, %v2683_v37  ;;  %v4293_v26 = vpop.f32.mrb[7].mxu1  ;;  %v4383_v4 = vmul.f32 0.01, %v4351_v49  ;;  %v4352_v1 = vmul.f32 %v5777_v24, %v8606_v35 }
 0x301   : > { %v5546_v23 = vpack.c.bf16 %v2699_v31, %v2698_v0  ;;  %vm4367_vm11 = vcmp.ge.f32.partialorder %v4351_v49, 0.0  ;;  %v4381_v3 = vmul.f32 0.01, %v4349_v44  ;;  %v4350_v27 = vmul.f32 %v8606_v35, %v4293_v26 }
 0x302   : > { %5677 = vst [vmem:[%s6149_s16 + $0x18] sm:$0xff] %v5551_v28   ;;  %vm4365_vm12 = vcmp.ge.f32.partialorder %v4349_v44, 0.0  ;;  %vm4368_vm13 = vcmp.ge.f32.partialorder %v4352_v1, 0.0  ;;  %v4384_v45 = vmul.f32 0.01, %v4352_v1  ;;  %v4399_v6 = vsel %vm4367_vm11, %v4351_v49, %v4383_v4 }
 0x303   : > { %5676 = vst [vmem:[%s6149_s16 + $0x10] sm:$0xff] %v5546_v23   ;;  %vm4366_vm14 = vcmp.ge.f32.partialorder %v4350_v27, 0.0  ;;  %v4382_v16 = vmul.f32 0.01, %v4350_v27  ;;  %v4397_v41 = vsel %vm4365_vm12, %v4349_v44, %v4381_v3 }
 0x304   : > { %v4400_v12 = vsel %vm4368_vm13, %v4352_v1, %v4384_v45 }
 0x305   : > { %v5591_v54 = vpack.c.bf16 %v4400_v12, %v4399_v6  ;;  %v4398_v33 = vsel %vm4366_vm14, %v4350_v27, %v4382_v16 }
 0x306   : > { %v5586_v36 = vpack.c.bf16 %v4398_v33, %v4397_v41 }
 0x307   : > { %5685 = vst [vmem:[%s6149_s16 + $0x58] sm:$0xff] %v5591_v54  }
 0x308   : > { %5684 = vst [vmem:[%s6149_s16 + $0x50] sm:$0xff] %v5586_v36  }
 0x331   : > { %v5748_v21 = vpop.f32.mrb[8].mxu0 }
 0x332   : > { %v2656_v57 = vmul.f32 %v5748_v21, %v8580_v40  ;;  %v2608_v29 = vpop.f32.mrb[9].mxu0 }
 0x333   : > { %v2654_v11 = vmul.f32 %v8580_v40, %v2608_v29  ;;  %v5749_v2 = vpop.f32.mrb[10].mxu0 }
 0x334   : > { %v2688_v52 = vmul.f32 0.01, %v2656_v57  ;;  %v2657_v55 = vmul.f32 %v5749_v2, %v8580_v40  ;;  %v2611_v13 = vpop.f32.mrb[11].mxu0  ;;  %vm2672_vm15 = vcmp.ge.f32.partialorder %v2656_v57, 0.0 }
 0x335   : > { %v2686_v43 = vmul.f32 0.01, %v2654_v11  ;;  %v2655_v9 = vmul.f32 %v8580_v40, %v2611_v13  ;;  %vm2670_vm0 = vcmp.ge.f32.partialorder %v2654_v11, 0.0 }
 0x336   : > { %vm2673_vm1 = vcmp.ge.f32.partialorder %v2657_v55, 0.0  ;;  %v2689_v20 = vmul.f32 0.01, %v2657_v55  ;;  %v2704_v17 = vsel %vm2672_vm15, %v2656_v57, %v2688_v52 }
 0x337   : > { %vm2671_vm2 = vcmp.ge.f32.partialorder %v2655_v9, 0.0  ;;  %v2687_v8 = vmul.f32 0.01, %v2655_v9  ;;  %v5780_v60 = vpop.f32.mrb[8].mxu1  ;;  %v2702_v63 = vsel %vm2670_vm0, %v2654_v11, %v2686_v43 }
 0x338   : > { %v2705_v38 = vsel %vm2673_vm1, %v2657_v55, %v2689_v20  ;;  %v4355_v58 = vmul.f32 %v5780_v60, %v8606_v35  ;;  %v4306_v5 = vpop.f32.mrb[9].mxu1 }
 0x339   : > { %v5561_v7 = vpack.c.bf16 %v2705_v38, %v2704_v17  ;;  %v2703_v15 = vsel %vm2671_vm2, %v2655_v9, %v2687_v8  ;;  %v4353_v50 = vmul.f32 %v8606_v35, %v4306_v5  ;;  %v5781_v19 = vpop.f32.mrb[10].mxu1 }
 0x33a   : > { %v5556_v14 = vpack.c.bf16 %v2703_v15, %v2702_v63  ;;  %v4387_v34 = vmul.f32 0.01, %v4355_v58  ;;  %v4356_v51 = vmul.f32 %v5781_v19, %v8606_v35  ;;  %v4309_v46 = vpop.f32.mrb[11].mxu1  ;;  %vm4371_vm3 = vcmp.ge.f32.partialorder %v4355_v58, 0.0 }
 0x33b   : > { %5679 = vst [vmem:[%s6149_s16 + $0x28] sm:$0xff] %v5561_v7   ;;  %v4385_v59 = vmul.f32 0.01, %v4353_v50  ;;  %v4354_v30 = vmul.f32 %v8606_v35, %v4309_v46  ;;  %vm4369_vm4 = vcmp.ge.f32.partialorder %v4353_v50, 0.0 }
 0x33c   : > { %5678 = vst [vmem:[%s6149_s16 + $0x20] sm:$0xff] %v5556_v14   ;;  %vm4372_vm5 = vcmp.ge.f32.partialorder %v4356_v51, 0.0  ;;  %v4388_v10 = vmul.f32 0.01, %v4356_v51  ;;  %v4403_v18 = vsel %vm4371_vm3, %v4355_v58, %v4387_v34 }
 0x33d   : > { %vm4370_vm6 = vcmp.ge.f32.partialorder %v4354_v30, 0.0  ;;  %v4386_v47 = vmul.f32 0.01, %v4354_v30  ;;  %v4401_v48 = vsel %vm4369_vm4, %v4353_v50, %v4385_v59 }
 0x33e   : > { %v4404_v42 = vsel %vm4372_vm5, %v4356_v51, %v4388_v10 }
 0x33f   : > { %v5601_v53 = vpack.c.bf16 %v4404_v42, %v4403_v18  ;;  %v4402_v56 = vsel %vm4370_vm6, %v4354_v30, %v4386_v47 }
 0x340   : > { %v5596_v61 = vpack.c.bf16 %v4402_v56, %v4401_v48 }
 0x341   : > { %5687 = vst [vmem:[%s6149_s16 + $0x68] sm:$0xff] %v5601_v53  }
 0x342   : > { %5686 = vst [vmem:[%s6149_s16 + $0x60] sm:$0xff] %v5596_v61  }
 0x384   : > { %v5784_v32 = vpop.f32.mrb[12].mxu1 }
 0x385   : > { %v4359_v22 = vmul.f32 %v5784_v32, %v8606_v35  ;;  %v4322_v37 = vpop.f32.mrb[13].mxu1 }
 0x386   : > { %v4357_v49 = vmul.f32 %v8606_v35, %v4322_v37  ;;  %v5785_v25 = vpop.f32.mrb[14].mxu1  ;;  %v5752_v62 = vpop.f32.mrb[12].mxu0 }
 0x387   : > { %vm4375_vm7 = vcmp.ge.f32.partialorder %v4359_v22, 0.0  ;;  %v4391_v39 = vmul.f32 0.01, %v4359_v22  ;;  %v4360_v44 = vmul.f32 %v5785_v25, %v8606_v35  ;;  %v4325_v24 = vpop.f32.mrb[15].mxu1  ;;  %v2660_v0 = vmul.f32 %v5752_v62, %v8580_v40  ;;  %v2624_v28 = vpop.f32.mrb[13].mxu0 }
 0x388   : > { %v2658_v31 = vmul.f32 %v8580_v40, %v2624_v28  ;;  %v5753_v26 = vpop.f32.mrb[14].mxu0  ;;  %v4358_v4 = vmul.f32 %v8606_v35, %v4325_v24  ;;  %v4389_v27 = vmul.f32 0.01, %v4357_v49  ;;  %vm4373_vm12 = vcmp.ge.f32.partialorder %v4357_v49, 0.0 }
 0x389   : > { %vm4376_vm8 = vcmp.ge.f32.partialorder %v4360_v44, 0.0  ;;  %v4392_v23 = vmul.f32 0.01, %v4360_v44  ;;  %v2692_v1 = vmul.f32 0.01, %v2660_v0  ;;  %v4407_v3 = vsel %vm4375_vm7, %v4359_v22, %v4391_v39  ;;  %v2627_v16 = vpop.f32.mrb[15].mxu0 }
 0x38a   : > { %v2661_v45 = vmul.f32 %v5753_v26, %v8580_v40  ;;  %vm2676_vm9 = vcmp.ge.f32.partialorder %v2660_v0, 0.0  ;;  %v2690_v6 = vmul.f32 0.01, %v2658_v31  ;;  %v2659_v41 = vmul.f32 %v8580_v40, %v2627_v16 }
 0x38b   : > { %v4408_v12 = vsel %vm4376_vm8, %v4360_v44, %v4392_v23  ;;  %vm2674_vm10 = vcmp.ge.f32.partialorder %v2658_v31, 0.0  ;;  %vm4374_vm14 = vcmp.ge.f32.partialorder %v4358_v4, 0.0  ;;  %v2708_v36 = vsel %vm2676_vm9, %v2660_v0, %v2692_v1 }
 0x38c   : > { %vm2677_vm11 = vcmp.ge.f32.partialorder %v2661_v45, 0.0  ;;  %v2693_v54 = vmul.f32 0.01, %v2661_v45  ;;  %v5611_v33 = vpack.c.bf16 %v4408_v12, %v4407_v3  ;;  %vm2675_vm13 = vcmp.ge.f32.partialorder %v2659_v41, 0.0 }
 0x38d   : > { %v2691_v35 = vmul.f32 0.01, %v2659_v41  ;;  %v4390_v57 = vmul.f32 0.01, %v4358_v4  ;;  %v2706_v29 = vsel %vm2674_vm10, %v2658_v31, %v2690_v6  ;;  %v4405_v40 = vsel %vm4373_vm12, %v4357_v49, %v4389_v27 }
 0x38e   : > { %v2709_v21 = vsel %vm2677_vm11, %v2661_v45, %v2693_v54  ;;  %5689 = vst [vmem:[%s6149_s16 + $0x78] sm:$0xff] %v5611_v33  }
 0x38f   : > { %v5571_v11 = vpack.c.bf16 %v2709_v21, %v2708_v36  ;;  %v2707_v2 = vsel %vm2675_vm13, %v2659_v41, %v2691_v35  ;;  %v4406_v55 = vsel %vm4374_vm14, %v4358_v4, %v4390_v57 }
 0x390   : > { %v5566_v52 = vpack.c.bf16 %v2707_v2, %v2706_v29  ;;  %v5606_v13 = vpack.c.bf16 %v4406_v55, %v4405_v40 }
 0x391   : > { %5681 = vst [vmem:[%s6149_s16 + $0x38] sm:$0xff] %v5571_v11  }
 0x392   : > { %5680 = vst [vmem:[%s6149_s16 + $0x30] sm:$0xff] %v5566_v52   ;;  %5688 = vst [vmem:[%s6149_s16 + $0x70] sm:$0xff] %v5606_v13  }
 0x393   : > { %s5276_s12 = sshll.u32 %s6013_s21, 10  ;;  %s4523_s13 = sshll.u32 %s6149_s16, 4  ;;  %s4524_s13 = int_to_ptr.vmem [resolvable:$true] %s4523_s13 }
 0x394   : > { %s4506_s29 = scalar_lea.hbm %s8718_s5, %s5276_s12  ;;  %s6033_s7 = smov 1024  }
 0x395   : > { %5790 = sst [smem:[#allocation8]] (%p6110_p4), %s6033_s7  ;;  %s6034_s14 = smov 2048  }
 0x396   : > { %5791 = sst [smem:[#allocation8 + $0x1]] (%p6110_p4), %s6034_s14  ;;  %s6035_s9 = smov 16  }
 0x397   : > { %5792 = sst [smem:[#allocation8 + $0x2]] (%p6110_p4), %s6035_s9  ;;  %s6036_s15 = smov 64  }
 0x398   : > { %5793 = sst [smem:[#allocation8 + $0x3]] (%p6110_p4), %s6036_s15  ;;  %s6037_s21 = smov 4  }
 0x399   : > { %5794 = sst [smem:[#allocation8 + $0x4]] (%p6110_p4), %s6036_s15  ;;  %s6038_s16 = smov [#allocation7]  }
 0x39a   : > { %5795 = sst [smem:[#allocation8 + $0x5]] (%p6110_p4), %s6037_s21  ;;  %s6039_s17 = smov 0  }
 0x39b   : > { %5796 = dma.general (%p6110_p4), %s4524_s13, 2048, %s4506_s29, %s4491_s11, %s6038_s16, [#allocation8], %s6039_s17, 0  }
 0x39c PF: > { %p5808_p10 = scmp.ge.s32.totalorder %s6021_s23, 2  ;;  %s4551_s24 = sand.u32 1, %s6001_s18  }
 0x39d   : > { %s4552_s8 = scalar_lea.sflag [#allocation4], %s4551_s24 }
 0x39e   : > { %p5803_p11 = pnand %p5808_p10, %p6117_p8 }
 0x3a0   : > { %5996 = dma.done.wait (!%p5803_p11), %s4552_s8, 2048  }
 0x3a1   : > { %5998 = vsyncadd (!%p5803_p11), %s4552_s8, 4294965248  ;;  %s19_s23 = sadd.s32 1, %s6021_s23   ;;  %s8867_s18 = smov %s6005_s19 }
 0x3a2   : > { %p16_p13 = scmp.ge.s32.totalorder %s19_s23, 4   ;;  %s8868_s19 = smov %s6009_s20 }
 0x3a3   : > { %s8869_s20 = smov %s6123_s6  ;;  %s8870_s21 = smov %s6017_s22 }
 0x3a4   : > { %s8871_s22 = smov %s8873_s26  ;;  %18 = sbr.rel (!%p16_p13) target bundleno = 5 (0x5), region = 109 }
 0x3ab   :  { %4557 = vsyncpa [#allocation4], 1 }
 0x3ac   :  { %4559 = vsyncpa [#allocation4 + $0x1], 1 }
 0x3ad   :  { %4560 = vsyncpa [#allocation5], 1 }
 0x3ae   :  { %4562 = vsyncpa [#allocation5 + $0x1], 1 }

</bundles_post_ra>
